<compile_context>
chip_gen: v5e
topology: v5e:2x2
jax: 0.10.0
libtpu: 0.0.40
codegen_flags: <defaults>
</compile_context>

<pallas_src>
import functools

import jax
import jax.numpy as jnp
from jax.experimental import pallas as pl
from jax.experimental.pallas import tpu as pltpu

_VMEM_LIMIT = 32 * 1024 * 1024  # headroom for the ~10 MiB weight tiles on v5e


# ----------------------------------------------------------------------------
# Pallas kernels (grid-less: full operands resident in VMEM, single step)
# ----------------------------------------------------------------------------
def _linear_kernel(x_ref, w_ref, b_ref, o_ref, *, relu):
    """o = relu?(x @ w + b);  x:[M,K], w:[K,N], b:[1,N]  (conv+BN fused)."""
    acc = jnp.dot(x_ref[...], w_ref[...], preferred_element_type=jnp.float32)
    acc = acc + b_ref[...]
    if relu:
        acc = jnp.maximum(acc, 0.0)
    o_ref[...] = acc.astype(o_ref.dtype)


def _linear_res_kernel(x_ref, w_ref, b_ref, r_ref, o_ref):
    """o = relu(x @ w + b + r): bottleneck conv3 + BN + residual + ReLU fused."""
    acc = jnp.dot(x_ref[...], w_ref[...], preferred_element_type=jnp.float32)
    acc = acc + b_ref[...] + r_ref[...].astype(jnp.float32)
    o_ref[...] = jnp.maximum(acc, 0.0).astype(o_ref.dtype)


def _max_taps_kernel(t_ref, o_ref):
    """o = max over the leading tap axis; t:[T,M,C] -> o:[M,C]  (3x3 maxpool)."""
    acc = t_ref[0]
    for i in range(1, t_ref.shape[0]):
        acc = jnp.maximum(acc, t_ref[i])
    o_ref[...] = acc


def _mean_kernel(x_ref, o_ref):
    """o = mean over axis 1; x:[B,HW,C] -> o:[B,C]  (global average pool)."""
    hw = x_ref.shape[1]
    acc = x_ref[:, 0, :].astype(jnp.float32)
    for i in range(1, hw):
        acc = acc + x_ref[:, i, :].astype(jnp.float32)
    o_ref[...] = (acc * (1.0 / hw)).astype(o_ref.dtype)


# ----------------------------------------------------------------------------
# Pallas wrappers (no grid -> whole arrays as single VMEM blocks)
# ----------------------------------------------------------------------------
def pallas_linear(x2d, w, b, relu):
    M = x2d.shape[0]
    N = w.shape[1]
    return pl.pallas_call(
        functools.partial(_linear_kernel, relu=relu),
        out_shape=jax.ShapeDtypeStruct((M, N), x2d.dtype),
        compiler_params=pltpu.CompilerParams(vmem_limit_bytes=_VMEM_LIMIT),
    )(x2d, w, b)


def pallas_linear_res(x2d, w, b, res2d):
    M = x2d.shape[0]
    N = w.shape[1]
    return pl.pallas_call(
        _linear_res_kernel,
        out_shape=jax.ShapeDtypeStruct((M, N), x2d.dtype),
        compiler_params=pltpu.CompilerParams(vmem_limit_bytes=_VMEM_LIMIT),
    )(x2d, w, b, res2d)


def pallas_max_taps(taps):
    _, M, C = taps.shape
    return pl.pallas_call(
        _max_taps_kernel,
        out_shape=jax.ShapeDtypeStruct((M, C), taps.dtype),
    )(taps)


def pallas_global_avgpool(x3d):
    B, _, C = x3d.shape
    return pl.pallas_call(
        _mean_kernel,
        out_shape=jax.ShapeDtypeStruct((B, C), x3d.dtype),
    )(x3d)


# ----------------------------------------------------------------------------
# Pure-JAX reference implementations of the same fused primitives
# ----------------------------------------------------------------------------
def ref_linear(x2d, w, b, relu):
    y = jnp.dot(x2d, w, precision=jax.lax.Precision.HIGHEST) + b
    return jnp.maximum(y, 0.0) if relu else y


def ref_linear_res(x2d, w, b, res2d):
    y = jnp.dot(x2d, w, precision=jax.lax.Precision.HIGHEST) + b + res2d
    return jnp.maximum(y, 0.0)


def ref_max_taps(taps):
    return jnp.max(taps, axis=0)


def ref_global_avgpool(x3d):
    return jnp.mean(x3d, axis=1)


# ----------------------------------------------------------------------------
# Layout glue (plain JAX): im2col, strided subsampling, pooling taps
# ----------------------------------------------------------------------------
def _im2col(x, k, stride, pad):
    """NHWC -> [B*Ho*Wo, k*k*C] patches (taps ordered (dy, dx, cin))."""
    B, H, W, C = x.shape
    Ho = (H + 2 * pad - k) // stride + 1
    Wo = (W + 2 * pad - k) // stride + 1
    xp = jnp.pad(x, ((0, 0), (pad, pad), (pad, pad), (0, 0)))
    cols = [
        xp[:, dy:dy + stride * Ho:stride, dx:dx + stride * Wo:stride, :]
        for dy in range(k) for dx in range(k)
    ]
    patches = jnp.concatenate(cols, axis=-1)
    return patches.reshape(B * Ho * Wo, k * k * C), B, Ho, Wo


def _conv_bn(x, p, stride, relu, linear_fn):
    """k x k conv with folded BN (+ optional ReLU) as one fused matmul."""
    k = p["k"]
    if k == 1:
        if stride > 1:
            x = x[:, ::stride, ::stride, :]
        B, H, W, C = x.shape
        y = linear_fn(x.reshape(B * H * W, C), p["w"], p["b"], relu)
        return y.reshape(B, H, W, -1)
    x2d, B, Ho, Wo = _im2col(x, k, stride, k // 2)
    y = linear_fn(x2d, p["w"], p["b"], relu)
    return y.reshape(B, Ho, Wo, -1)


def _maxpool_3x3_s2(x, max_fn):
    B, H, W, C = x.shape
    k, s, pad = 3, 2, 1
    Ho = (H + 2 * pad - k) // s + 1
    Wo = (W + 2 * pad - k) // s + 1
    xp = jnp.pad(x, ((0, 0), (pad, pad), (pad, pad), (0, 0)),
                 constant_values=-jnp.inf)
    taps = jnp.stack(
        [xp[:, dy:dy + s * Ho:s, dx:dx + s * Wo:s, :]
         for dy in range(k) for dx in range(k)],
        axis=0,
    ).reshape(k * k, B * Ho * Wo, C)
    return max_fn(taps).reshape(B, Ho, Wo, C)


def _bottleneck(x, blk, linear_fn, linear_res_fn):
    identity = x
    out = _conv_bn(x, blk["conv1"], 1, True, linear_fn)                 # 1x1 + ReLU
    out = _conv_bn(out, blk["conv2"], blk["stride"], True, linear_fn)   # 3x3 + ReLU
    if blk["downsample"] is not None:                                   # 1x1 (no ReLU)
        identity = _conv_bn(x, blk["downsample"], blk["stride"], False, linear_fn)
    B, H, W, C = out.shape
    n_out = blk["conv3"]["w"].shape[1]
    y = linear_res_fn(out.reshape(B * H * W, C), blk["conv3"]["w"],
                      blk["conv3"]["b"], identity.reshape(B * H * W, n_out))
    return y.reshape(B, H, W, n_out)


def encoder_forward(params, x_nchw, fns):
    """ResNet50 feature extractor: NCHW image -> [B, 2048] features."""
    linear_fn, linear_res_fn, max_fn, avg_fn = fns
    x = jnp.transpose(x_nchw, (0, 2, 3, 1))                   # NCHW -> NHWC
    x = _conv_bn(x, params["conv1"], 2, True, linear_fn)      # 7x7/2 + BN + ReLU
    x = _maxpool_3x3_s2(x, max_fn)                            # 3x3/2 maxpool
    for layer in params["layers"]:
        for blk in layer:
            x = _bottleneck(x, blk, linear_fn, linear_res_fn)
    B, H, W, C = x.shape
    return avg_fn(x.reshape(B, H * W, C))                     # avgpool + view(bs,-1)


# ----------------------------------------------------------------------------
# Deterministic parameter construction (BN folded, matmul-ready [K, N] layout)
# ----------------------------------------------------------------------------
def _init_conv_bn(key, k, cin, cout):
    kw, kg, kb, km, kv = jax.random.split(key, 5)
    fan_in = k * k * cin
    w = jax.random.normal(kw, (fan_in, cout), jnp.float32) * (1.0 / fan_in) ** 0.5
    gamma = jax.random.uniform(kg, (cout,), jnp.float32, minval=0.8, maxval=1.2)
    beta = 0.05 * jax.random.normal(kb, (cout,), jnp.float32)
    mean = 0.05 * jax.random.normal(km, (cout,), jnp.float32)
    var = jax.random.uniform(kv, (cout,), jnp.float32, minval=0.8, maxval=1.2)
    scale = gamma / jnp.sqrt(var + 1e-5)
    return {
        "k": k,
        "w": w * scale[None, :],                    # BN scale folded into weight
        "b": (beta - mean * scale).reshape(1, cout),  # BN shift as fused bias
    }


def _make_layer(key, inplanes, planes, blocks, stride):
    layer = []
    keys = jax.random.split(key, blocks)
    for i in range(blocks):
        k1, k2, k3, k4 = jax.random.split(keys[i], 4)
        s = stride if i == 0 else 1
        needs_ds = (s != 1) or (inplanes != planes * 4)
        layer.append({
            "stride": s,
            "conv1": _init_conv_bn(k1, 1, inplanes, planes),
            "conv2": _init_conv_bn(k2, 3, planes, planes),
            "conv3": _init_conv_bn(k3, 1, planes, planes * 4),
            "downsample": _init_conv_bn(k4, 1, inplanes, planes * 4) if needs_ds else None,
        })
        inplanes = planes * 4
    return layer, inplanes


def init_resnet50_encoder(key):
    k_stem, k1, k2, k3, k4 = jax.random.split(key, 5)
    params = {"conv1": _init_conv_bn(k_stem, 7, 3, 64)}
    layers = []
    inplanes = 64
    for k, planes, blocks, stride in ((k1, 64, 3, 1), (k2, 128, 4, 2),
                                      (k3, 256, 6, 2), (k4, 512, 3, 2)):
        layer, inplanes = _make_layer(k, inplanes, planes, blocks, stride)
        layers.append(layer)
    params["layers"] = layers
    return params


if __name__ == "__main__":
    key = jax.random.PRNGKey(0)
    k_params, k_x = jax.random.split(key)

    params = init_resnet50_encoder(k_params)

    batch, height, width = 2, 64, 64
    x = jax.random.normal(k_x, (batch, 3, height, width), jnp.float32)

    pallas_fns = (pallas_linear, pallas_linear_res, pallas_max_taps,
                  pallas_global_avgpool)
    ref_fns = (ref_linear, ref_linear_res, ref_max_taps, ref_global_avgpool)

    feats = encoder_forward(params, x, pallas_fns)
    feats = jax.block_until_ready(feats)

    ref = jax.block_until_ready(encoder_forward(params, x, ref_fns))

    assert feats.shape == (batch, 2048), feats.shape
    assert bool(jnp.all(jnp.isfinite(feats)))
    rel_err = float(jnp.max(jnp.abs(feats - ref)) / (jnp.max(jnp.abs(ref)) + 1e-6))
    assert rel_err < 3e-2, f"mismatch vs reference: rel_err={rel_err}"

    print("KERNEL_OK")
</pallas_src>

<mosaic_0001>
module attributes {stable_mosaic.version = 11 : i64} {
  func.func @_linear_kernel(%arg0: memref<2048x147xf32, #tpu.memory_space<vmem>>, %arg1: memref<147x64xf32, #tpu.memory_space<vmem>>, %arg2: memref<1x64xf32, #tpu.memory_space<vmem>>, %arg3: memref<2048x64xf32, #tpu.memory_space<vmem>>) attributes {dimension_semantics = [], scalar_prefetch = 0 : i64, scratch_operands = 0 : i64, tpu.core_type = #tpu.core_type<tc>} {
    %c0 = arith.constant 0 : index
    %c0_0 = arith.constant 0 : index
    %0 = vector.load %arg0[%c0, %c0_0] : memref<2048x147xf32, #tpu.memory_space<vmem>>, vector<2048x147xf32>
    %c0_1 = arith.constant 0 : index
    %c0_2 = arith.constant 0 : index
    %1 = vector.load %arg1[%c0_1, %c0_2] : memref<147x64xf32, #tpu.memory_space<vmem>>, vector<147x64xf32>
    %cst = arith.constant dense<0.000000e+00> : vector<2048x64xf32>
    %2 = tpu.matmul %0, %1, %cst {dimension_numbers = #tpu.dot_dimension_numbers<[1], [0], [0], [1], [0, 0, 1, 1], [], []>} : vector<2048x147xf32>, vector<147x64xf32>, vector<2048x64xf32> -> vector<2048x64xf32>
    %c0_3 = arith.constant 0 : index
    %c0_4 = arith.constant 0 : index
    %3 = vector.load %arg2[%c0_3, %c0_4] : memref<1x64xf32, #tpu.memory_space<vmem>>, vector<1x64xf32>
    %4 = vector.broadcast %3 : vector<1x64xf32> to vector<2048x64xf32>
    %5 = arith.addf %2, %4 : vector<2048x64xf32>
    %cst_5 = arith.constant 0.000000e+00 : f32
    %6 = vector.broadcast %cst_5 : f32 to vector<2048x64xf32>
    %7 = arith.maximumf %5, %6 : vector<2048x64xf32>
    %c0_6 = arith.constant 0 : index
    %c0_7 = arith.constant 0 : index
    %8 = vector.load %arg3[%c0_6, %c0_7] : memref<2048x64xf32, #tpu.memory_space<vmem>>, vector<2048x64xf32>
    tpu.vector_store %arg3[%c0_6, %c0_7], %7 {strides = array<i32>} : memref<2048x64xf32, #tpu.memory_space<vmem>>, vector<2048x64xf32>,
    return
  }
}

</mosaic_0001>

<bundles_post_ra>
// kernel: tpu_custom_call.1
= control target key start
LH: loop header
LB: loop body
LE: loop exit
PB: predicated region body
PF: predicated region fallthrough
CT: control target
= control target key end

     0   :  { %vm1318_vm0 = vcmask 1042432   ;;  %vm549_vm1 = vcmask 154624   ;;  %vm3148_vm2 = vcmask 523264   ;;  %s7227_s1 = inlined_call_operand.vmem [shape: f32[147,64], index: 1, kind: input, shape index: {}]   ;;  %s7228_s0 = inlined_call_operand.vmem [shape: f32[2048,147], index: 0, kind: input, shape index: {}]   ;;  %s7229_s2 = inlined_call_operand.vmem [shape: f32[1,64], index: 2, kind: input, shape index: {}]   ;;  %s7230_s3 = inlined_call_operand.vmem [shape: f32[2048,64], index: 3, kind: output, shape index: {}]  }
   0x1   :  { %v541_v0 = vld [vmem:[%s7227_s1 + $0x78] sm:$0xff]  ;;  %v3732_v1 = vld [vmem:[%s7227_s1 + $0x90] sm:$0x7]  ;;  %v3740_v3 = vld [vmem:[%s7227_s1 + $0x88] sm:$0xff] }
   0x2   :  { %v540_v2 = vld [vmem:[%s7227_s1 + $0x70] sm:$0xff]  ;;  %1322 = vmatpush.msra.mxu0 %v541_v0  ;;  %3666 = vmatpush.msra.mxu2 %v541_v0  ;;  %v539_v4 = vld [vmem:[%s7227_s1 + $0x68] sm:$0xff]  ;;  %v3750_v5 = vld [vmem:[%s7227_s1 + $0x80] sm:$0xff] }
   0x3   :  { %3667 = vmatpush.msra.mxu3 %v541_v0  ;;  %3409 = vmatpush.msk.msra.mxu1 %vm1318_vm0, %v3732_v1  ;;  %v15_v6 = vld [vmem:[%s7228_s0 + $0x8] sm:$0xff]  ;;  %v538_v7 = vld [vmem:[%s7227_s1 + $0x60] sm:$0xff]  ;;  %v537_v8 = vld [vmem:[%s7227_s1 + $0x58] sm:$0xff] }
   0x4   :  { %1323 = vmatpush.msra.mxu0 %v540_v2  ;;  %3668 = vmatpush.msra.mxu2 %v540_v2  ;;  %v536_v9 = vld [vmem:[%s7227_s1 + $0x50] sm:$0xff]  ;;  %v535_v10 = vld [vmem:[%s7227_s1 + $0x48] sm:$0xff]  ;;  %v17_v11 = vld [vmem:[%s7228_s0 + $0x18] sm:$0xff] }
   0x5   :  { %3669 = vmatpush.msra.mxu3 %v540_v2  ;;  %2121 = vmatpush.msra.mxu1 %v3740_v3  ;;  %v534_v12 = vld [vmem:[%s7227_s1 + $0x40] sm:$0xff]  ;;  %v533_v13 = vld [vmem:[%s7227_s1 + $0x38] sm:$0xff]  ;;  %v532_v14 = vld [vmem:[%s7227_s1 + $0x30] sm:$0xff] }
   0x6   :  { %1324 = vmatpush.msra.mxu0 %v539_v4  ;;  %3670 = vmatpush.msra.mxu2 %v539_v4  ;;  %v531_v15 = vld [vmem:[%s7227_s1 + $0x28] sm:$0xff]  ;;  %v530_v17 = vld [vmem:[%s7227_s1 + $0x20] sm:$0xff]  ;;  %v529_v18 = vld [vmem:[%s7227_s1 + $0x18] sm:$0xff] }
   0x7   :  { %3671 = vmatpush.msra.mxu3 %v539_v4  ;;  %2122 = vmatpush.msra.mxu1 %v3750_v5  ;;  %v19_v16 = vld [vmem:[%s7228_s0 + $0x28] sm:$0xff]  ;;  %v528_v19 = vld [vmem:[%s7227_s1 + $0x10] sm:$0xff]  ;;  %v21_v21 = vld [vmem:[%s7228_s0 + $0x38] sm:$0xff] }
   0x8   :  { %3410 = vmatmul.msk.f32.vlgmr.msra.gmra.mxu1 %vm549_vm1, %v15_v6  ;;  %1325 = vmatpush.msra.mxu0 %v538_v7  ;;  %v527_v20 = vld [vmem:[%s7227_s1 + $0x8] sm:$0xff]  ;;  %v526_v22 = vld [vmem:[%s7227_s1] sm:$0xff]  ;;  %v268_v24 = vld [vmem:[%s7228_s0 + $0x7f0] sm:$0xff] }
   0x9   :  { %3672 = vmatpush.msra.mxu2 %v538_v7  ;;  %3673 = vmatpush.msra.mxu3 %v538_v7  ;;  %v14_v23 = vld [vmem:[%s7228_s0] sm:$0xff]  ;;  %v524_v25 = vld [vmem:[%s7228_s0 + $0xff0] sm:$0xff]  ;;  %v23_v26 = vld [vmem:[%s7228_s0 + $0x48] sm:$0xff] }
   0xa   :  { %1326 = vmatpush.msra.mxu0 %v537_v8  ;;  %v16_v27 = vld [vmem:[%s7228_s0 + $0x10] sm:$0xff]  ;;  %v270_v28 = vld [vmem:[%s7228_s0 + $0x800] sm:$0xff]  ;;  %v275_v29 = vld [vmem:[%s7228_s0 + $0x828] sm:$0xff] }
   0xb   :  { %3674 = vmatpush.msra.mxu2 %v537_v8  ;;  %3675 = vmatpush.msra.mxu3 %v537_v8  ;;  %v25_v30 = vld [vmem:[%s7228_s0 + $0x58] sm:$0xff]  ;;  %v18_v31 = vld [vmem:[%s7228_s0 + $0x20] sm:$0xff]  ;;  %v272_v32 = vld [vmem:[%s7228_s0 + $0x810] sm:$0xff] }
   0xc   :  { %1327 = vmatpush.msra.mxu0 %v536_v9  ;;  %v277_v33 = vld [vmem:[%s7228_s0 + $0x838] sm:$0xff]  ;;  %v27_v34 = vld [vmem:[%s7228_s0 + $0x68] sm:$0xff]  ;;  %v20_v35 = vld [vmem:[%s7228_s0 + $0x30] sm:$0xff] }
   0xd   :  { %3676 = vmatpush.msra.mxu2 %v536_v9  ;;  %3677 = vmatpush.msra.mxu3 %v536_v9  ;;  %v274_v36 = vld [vmem:[%s7228_s0 + $0x820] sm:$0xff]  ;;  %v279_v37 = vld [vmem:[%s7228_s0 + $0x848] sm:$0xff]  ;;  %v29_v38 = vld [vmem:[%s7228_s0 + $0x78] sm:$0xff] }
   0xe   :  { %1328 = vmatpush.msra.mxu0 %v535_v10  ;;  %v22_v39 = vld [vmem:[%s7228_s0 + $0x40] sm:$0xff]  ;;  %v276_v40 = vld [vmem:[%s7228_s0 + $0x830] sm:$0xff]  ;;  %v281_v41 = vld [vmem:[%s7228_s0 + $0x858] sm:$0xff] }
   0xf   :  { %3678 = vmatpush.msra.mxu2 %v535_v10  ;;  %3679 = vmatpush.msra.mxu3 %v535_v10  ;;  %v31_v42 = vld [vmem:[%s7228_s0 + $0x88] sm:$0xff]  ;;  %v24_v43 = vld [vmem:[%s7228_s0 + $0x50] sm:$0xff]  ;;  %v278_v44 = vld [vmem:[%s7228_s0 + $0x840] sm:$0xff] }
  0x10   :  { %3411 = vmatmul.msk.f32.gmra.mxu1 %vm549_vm1, %v17_v11  ;;  %1329 = vmatpush.msra.mxu0 %v534_v12  ;;  %v283_v45 = vld [vmem:[%s7228_s0 + $0x868] sm:$0xff]  ;;  %v33_v46 = vld [vmem:[%s7228_s0 + $0x98] sm:$0xff]  ;;  %v26_v47 = vld [vmem:[%s7228_s0 + $0x60] sm:$0xff] }
  0x11   :  { %3680 = vmatpush.msra.mxu2 %v534_v12  ;;  %3681 = vmatpush.msra.mxu3 %v534_v12  ;;  %v280_v48 = vld [vmem:[%s7228_s0 + $0x850] sm:$0xff]  ;;  %v285_v49 = vld [vmem:[%s7228_s0 + $0x878] sm:$0xff]  ;;  %v35_v50 = vld [vmem:[%s7228_s0 + $0xa8] sm:$0xff] }
  0x12   :  { %1330 = vmatpush.msra.mxu0 %v533_v13  ;;  %v28_v51 = vld [vmem:[%s7228_s0 + $0x70] sm:$0xff]  ;;  %v282_v52 = vld [vmem:[%s7228_s0 + $0x860] sm:$0xff]  ;;  %v287_v53 = vld [vmem:[%s7228_s0 + $0x888] sm:$0xff] }
  0x13   :  { %3682 = vmatpush.msra.mxu2 %v533_v13  ;;  %3683 = vmatpush.msra.mxu3 %v533_v13  ;;  %v37_v54 = vld [vmem:[%s7228_s0 + $0xb8] sm:$0xff]  ;;  %v30_v55 = vld [vmem:[%s7228_s0 + $0x80] sm:$0xff]  ;;  %v284_v56 = vld [vmem:[%s7228_s0 + $0x870] sm:$0xff] }
  0x14   :  { %1331 = vmatpush.msra.mxu0 %v532_v14  ;;  %v289_v57 = vld [vmem:[%s7228_s0 + $0x898] sm:$0xff]  ;;  %v39_v58 = vld [vmem:[%s7228_s0 + $0xc8] sm:$0xff]  ;;  %v32_v59 = vld [vmem:[%s7228_s0 + $0x90] sm:$0xff] }
  0x15   :  { %3684 = vmatpush.msra.mxu2 %v532_v14  ;;  %3685 = vmatpush.msra.mxu3 %v532_v14  ;;  %v286_v60 = vld [vmem:[%s7228_s0 + $0x880] sm:$0xff]  ;;  %v291_v61 = vld [vmem:[%s7228_s0 + $0x8a8] sm:$0xff]  ;;  %v41_v62 = vld [vmem:[%s7228_s0 + $0xd8] sm:$0xff] }
  0x16   :  { %1332 = vmatpush.msra.mxu0 %v531_v15  ;;  %v34_v63 = vld [vmem:[%s7228_s0 + $0xa0] sm:$0xff]  ;;  %v288_v0 = vld [vmem:[%s7228_s0 + $0x890] sm:$0xff]  ;;  %v43_v2 = vld [vmem:[%s7228_s0 + $0xe8] sm:$0xff] }
  0x17   :  { %3686 = vmatpush.msra.mxu2 %v531_v15  ;;  %3687 = vmatpush.msra.mxu3 %v531_v15  ;;  %v290_v4 = vld [vmem:[%s7228_s0 + $0x8a0] sm:$0xff]  ;;  %v45_v6 = vld [vmem:[%s7228_s0 + $0xf8] sm:$0xff]  ;;  %v292_v8 = vld [vmem:[%s7228_s0 + $0x8b0] sm:$0xff] }
  0x18   :  { %3412 = vmatmul.msk.f32.gmra.mxu1 %vm549_vm1, %v19_v16  ;;  %1333 = vmatpush.msra.mxu0 %v530_v17  ;;  %v38_v7 = vld [vmem:[%s7228_s0 + $0xc0] sm:$0xff]  ;;  %v297_v9 = vld [vmem:[%s7228_s0 + $0x8d8] sm:$0xff]  ;;  %v47_v11 = vld [vmem:[%s7228_s0 + $0x108] sm:$0xff] }
  0x19   :  { %3688 = vmatpush.msra.mxu2 %v530_v17  ;;  %3689 = vmatpush.msra.mxu3 %v530_v17  ;;  %v40_v12 = vld [vmem:[%s7228_s0 + $0xd0] sm:$0xff]  ;;  %v294_v13 = vld [vmem:[%s7228_s0 + $0x8c0] sm:$0xff]  ;;  %v299_v14 = vld [vmem:[%s7228_s0 + $0x8e8] sm:$0xff] }
  0x1a   :  { %1334 = vmatpush.msra.mxu0 %v529_v18  ;;  %v49_v16 = vld [vmem:[%s7228_s0 + $0x118] sm:$0xff]  ;;  %v42_v17 = vld [vmem:[%s7228_s0 + $0xe0] sm:$0xff] }
  0x1b   :  { %3690 = vmatpush.msra.mxu2 %v529_v18  ;;  %3691 = vmatpush.msra.mxu3 %v529_v18  ;;  %v296_v18 = vld [vmem:[%s7228_s0 + $0x8d0] sm:$0xff] }
  0x1c   :  { %1335 = vmatpush.msra.mxu0 %v528_v19 }
  0x1d   :  { %3692 = vmatpush.msra.mxu2 %v528_v19  ;;  %3693 = vmatpush.msra.mxu3 %v528_v19  ;;  %v301_v19 = vld [vmem:[%s7228_s0 + $0x8f8] sm:$0xff] }
  0x1e   :  { %1336 = vmatpush.msra.mxu0 %v527_v20 }
  0x1f   :  { %3694 = vmatpush.msra.mxu2 %v527_v20  ;;  %3695 = vmatpush.msra.mxu3 %v527_v20 }
  0x20   :  { %3413 = vmatmul.msk.f32.gmra.mxu1 %vm549_vm1, %v21_v21  ;;  %1337 = vmatpush.msra.mxu0 %v526_v22  ;;  %v51_v21 = vld [vmem:[%s7228_s0 + $0x128] sm:$0xff] }
  0x21   :  { %3696 = vmatpush.msra.mxu2 %v526_v22  ;;  %3697 = vmatpush.msra.mxu3 %v526_v22  ;;  %v44_v22 = vld [vmem:[%s7228_s0 + $0xf0] sm:$0xff] }
  0x22   :  { %1338 = vmatmul.f32.vlgmr.msra.gmra.mxu0 %v14_v23  ;;  %1719 = vmatmul.f32.vlgmr.msra.gmra.mxu2 %v268_v24  ;;  %v298_v23 = vld [vmem:[%s7228_s0 + $0x8e0] sm:$0xff]  ;;  %v303_v24 = vld [vmem:[%s7228_s0 + $0x908] sm:$0xff] }
  0x23   :  { %2103 = vmatmul.f32.vlgmr.msra.gmra.mxu3 %v524_v25  ;;  %v4035_v25 = vld [vmem:[%s7229_s2] ss:$0 sm:$0xff] }
  0x24   :  { %3698 = vmatpush.msk.msrb.mxu3 %vm1318_vm0, %v3732_v1  ;;  %v293_v1 = vld [vmem:[%s7228_s0 + $0x8b8] sm:$0xff] }
  0x26   :  { %3699 = vmatpush.msrb.mxu3 %v3740_v3  ;;  %v36_v3 = vld [vmem:[%s7228_s0 + $0xb0] sm:$0xff] }
  0x28   :  { %3414 = vmatmul.msk.f32.gmra.mxu1 %vm549_vm1, %v23_v26  ;;  %3700 = vmatpush.msrb.mxu3 %v3750_v5  ;;  %v295_v5 = vld [vmem:[%s7228_s0 + $0x8c8] sm:$0xff] }
  0x2a   :  { %1341 = vmatmul.f32.gmra.mxu0 %v16_v27  ;;  %1722 = vmatmul.f32.gmra.mxu2 %v270_v28  ;;  %v53_v27 = vld [vmem:[%s7228_s0 + $0x138] sm:$0xff] }
  0x2b   :  { %3540 = vmatmul.msk.f32.vlgmr.msrb.gmra.mxu3 %vm549_vm1, %v275_v29  ;;  %v46_v29 = vld [vmem:[%s7228_s0 + $0x100] sm:$0xff] }
  0x30   :  { %3415 = vmatmul.msk.f32.gmra.mxu1 %vm549_vm1, %v25_v30  ;;  %v300_v30 = vld [vmem:[%s7228_s0 + $0x8f0] sm:$0xff] }
  0x32   :  { %1344 = vmatmul.f32.gmra.mxu0 %v18_v31  ;;  %1725 = vmatmul.f32.gmra.mxu2 %v272_v32  ;;  %v305_v32 = vld [vmem:[%s7228_s0 + $0x918] sm:$0xff] }
  0x33   :  { %3541 = vmatmul.msk.f32.gmra.mxu3 %vm549_vm1, %v277_v33 }
  0x38   :  { %3416 = vmatmul.msk.f32.gmra.mxu1 %vm549_vm1, %v27_v34 }
  0x3a   :  { %1347 = vmatmul.f32.gmra.mxu0 %v20_v35  ;;  %1728 = vmatmul.f32.gmra.mxu2 %v274_v36 }
  0x3b   :  { %3542 = vmatmul.msk.f32.gmra.mxu3 %vm549_vm1, %v279_v37  ;;  %v55_v37 = vld [vmem:[%s7228_s0 + $0x148] sm:$0xff] }
  0x40   :  { %3417 = vmatmul.msk.f32.gmra.mxu1 %vm549_vm1, %v29_v38 }
  0x42   :  { %1350 = vmatmul.f32.gmra.mxu0 %v22_v39  ;;  %1731 = vmatmul.f32.gmra.mxu2 %v276_v40  ;;  %v48_v40 = vld [vmem:[%s7228_s0 + $0x110] sm:$0xff] }
  0x43   :  { %3543 = vmatmul.msk.f32.gmra.mxu3 %vm549_vm1, %v281_v41  ;;  %v302_v41 = vld [vmem:[%s7228_s0 + $0x900] sm:$0xff] }
  0x48   :  { %3418 = vmatmul.msk.f32.gmra.mxu1 %vm549_vm1, %v31_v42 }
  0x4a   :  { %1353 = vmatmul.f32.gmra.mxu0 %v24_v43  ;;  %1734 = vmatmul.f32.gmra.mxu2 %v278_v44  ;;  %v307_v43 = vld [vmem:[%s7228_s0 + $0x928] sm:$0xff] }
  0x4b   :  { %3544 = vmatmul.msk.f32.gmra.mxu3 %vm549_vm1, %v283_v45 }
  0x50   :  { %3419 = vmatmul.msk.f32.gmra.mxu1 %vm549_vm1, %v33_v46 }
  0x52   :  { %1356 = vmatmul.f32.gmra.mxu0 %v26_v47  ;;  %1737 = vmatmul.f32.gmra.mxu2 %v280_v48  ;;  %v57_v48 = vld [vmem:[%s7228_s0 + $0x158] sm:$0xff] }
  0x53   :  { %3545 = vmatmul.msk.f32.gmra.mxu3 %vm549_vm1, %v285_v49 }
  0x58   :  { %3420 = vmatmul.msk.f32.gmra.mxu1 %vm549_vm1, %v35_v50 }
  0x5a   :  { %1359 = vmatmul.f32.gmra.mxu0 %v28_v51  ;;  %1740 = vmatmul.f32.gmra.mxu2 %v282_v52  ;;  %v50_v51 = vld [vmem:[%s7228_s0 + $0x120] sm:$0xff]  ;;  %v304_v52 = vld [vmem:[%s7228_s0 + $0x910] sm:$0xff] }
  0x5b   :  { %3546 = vmatmul.msk.f32.gmra.mxu3 %vm549_vm1, %v287_v53 }
  0x60   :  { %3421 = vmatmul.msk.f32.gmra.mxu1 %vm549_vm1, %v37_v54  ;;  %v309_v54 = vld [vmem:[%s7228_s0 + $0x938] sm:$0xff] }
  0x62   :  { %1362 = vmatmul.f32.gmra.mxu0 %v30_v55  ;;  %1743 = vmatmul.f32.gmra.mxu2 %v284_v56 }
  0x63   :  { %3547 = vmatmul.msk.f32.gmra.mxu3 %vm549_vm1, %v289_v57 }
  0x68   :  { %3422 = vmatmul.msk.f32.gmra.mxu1 %vm549_vm1, %v39_v58 }
  0x6a   :  { %1365 = vmatmul.f32.gmra.mxu0 %v32_v59  ;;  %1746 = vmatmul.f32.gmra.mxu2 %v286_v60  ;;  %v59_v59 = vld [vmem:[%s7228_s0 + $0x168] sm:$0xff] }
  0x6b   :  { %3548 = vmatmul.msk.f32.gmra.mxu3 %vm549_vm1, %v291_v61 }
  0x70   :  { %3423 = vmatmul.msk.f32.gmra.mxu1 %vm549_vm1, %v41_v62  ;;  %v52_v62 = vld [vmem:[%s7228_s0 + $0x130] sm:$0xff] }
  0x72   :  { %1368 = vmatmul.f32.gmra.mxu0 %v34_v63  ;;  %1749 = vmatmul.f32.gmra.mxu2 %v288_v0  ;;  %v306_v63 = vld [vmem:[%s7228_s0 + $0x920] sm:$0xff] }
  0x73   :  { %3549 = vmatmul.msk.f32.gmra.mxu3 %vm549_vm1, %v293_v1  ;;  %v311_v1 = vld [vmem:[%s7228_s0 + $0x948] sm:$0xff] }
  0x78   :  { %3424 = vmatmul.msk.f32.gmra.mxu1 %vm549_vm1, %v43_v2 }
  0x7a   :  { %1371 = vmatmul.f32.gmra.mxu0 %v36_v3  ;;  %1752 = vmatmul.f32.gmra.mxu2 %v290_v4 }
  0x7b   :  { %3550 = vmatmul.msk.f32.gmra.mxu3 %vm549_vm1, %v295_v5 }
  0x80   :  { %3425 = vmatmul.msk.f32.gmra.mxu1 %vm549_vm1, %v45_v6  ;;  %v61_v6 = vld [vmem:[%s7228_s0 + $0x178] sm:$0xff] }
  0x82   :  { %1374 = vmatmul.f32.gmra.mxu0 %v38_v7  ;;  %1755 = vmatmul.f32.gmra.mxu2 %v292_v8 }
  0x83   :  { %3551 = vmatmul.msk.f32.gmra.mxu3 %vm549_vm1, %v297_v9 }
  0x85   :  { %v2124_v10 = vpop.f32.mrf.mxu1 }
  0x88   :  { %3426 = vmatmul.msk.f32.gmra.mxu1 %vm549_vm1, %v47_v11  ;;  %v308_v11 = vld [vmem:[%s7228_s0 + $0x930] sm:$0xff] }
  0x8a   :  { %1377 = vmatmul.f32.gmra.mxu0 %v40_v12  ;;  %1758 = vmatmul.f32.gmra.mxu2 %v294_v13 }
  0x8b   :  { %3552 = vmatmul.msk.f32.gmra.mxu3 %vm549_vm1, %v299_v14  ;;  %v313_v14 = vld [vmem:[%s7228_s0 + $0x958] sm:$0xff] }
  0x8d   :  { %v2127_v15 = vpop.f32.mrf.mxu1 }
  0x90   :  { %3427 = vmatmul.msk.f32.gmra.mxu1 %vm549_vm1, %v49_v16 }
  0x92   :  { %1380 = vmatmul.f32.gmra.mxu0 %v42_v17  ;;  %1761 = vmatmul.f32.gmra.mxu2 %v296_v18 }
  0x93   :  { %3553 = vmatmul.msk.f32.gmra.mxu3 %vm549_vm1, %v301_v19 }
  0x95   :  { %v2130_v20 = vpop.f32.mrf.mxu1 }
  0x98   :  { %3428 = vmatmul.msk.f32.gmra.mxu1 %vm549_vm1, %v51_v21 }
  0x9a   :  { %1383 = vmatmul.f32.gmra.mxu0 %v44_v22  ;;  %1764 = vmatmul.f32.gmra.mxu2 %v298_v23 }
  0x9b   :  { %3554 = vmatmul.msk.f32.gmra.mxu3 %vm549_vm1, %v303_v24  ;;  %v56_v24 = vld [vmem:[%s7228_s0 + $0x150] sm:$0xff] }
  0x9d   :  { %v2133_v26 = vpop.f32.mrf.mxu1 }
  0x9f   :  { %v1339_v28 = vpop.f32.mrf.mxu0 }
  0xa0   :  { %v1340_v31 = vadd.f32 %v4035_v25, %v1339_v28  ;;  %3429 = vmatmul.msk.f32.gmra.mxu1 %vm549_vm1, %v53_v27 }
  0xa2   :  { %v2125_v33 = vadd.f32 %v2124_v10, %v1340_v31  ;;  %1386 = vmatmul.f32.gmra.mxu0 %v46_v29  ;;  %1767 = vmatmul.f32.gmra.mxu2 %v300_v30  ;;  %v54_v10 = vld [vmem:[%s7228_s0 + $0x140] sm:$0xff]  ;;  %v315_v29 = vld [vmem:[%s7228_s0 + $0x968] sm:$0xff] }
  0xa3   :  { %3555 = vmatmul.msk.f32.gmra.mxu3 %vm549_vm1, %v305_v32 }
  0xa4   :  { %v2892_v34 = vmax.f32 %v2125_v33, 0.0 }
  0xa5   :  { %v4052_v35 = vpop.f32.mrf.mxu2  ;;  %v2136_v36 = vpop.f32.mrf.mxu1 }
  0xa6   :  { %3149 = vst.msk [vmem:[%s7230_s3] sm:$0xff] %vm3148_vm2, %v2892_v34  ;;  %v4061_v38 = vpop.f32.mrf.mxu3 }
  0xa7   :  { %v1342_v39 = vpop.f32.mrf.mxu0 }
  0xa8   :  { %v1343_v42 = vadd.f32 %v4035_v25, %v1342_v39  ;;  %3430 = vmatmul.msk.f32.gmra.mxu1 %vm549_vm1, %v55_v37 }
  0xaa   :  { %v2128_v44 = vadd.f32 %v2127_v15, %v1343_v42  ;;  %1389 = vmatmul.f32.gmra.mxu0 %v48_v40  ;;  %1770 = vmatmul.f32.gmra.mxu2 %v302_v41  ;;  %v58_v41 = vld [vmem:[%s7228_s0 + $0x160] sm:$0xff]  ;;  %v312_v42 = vld [vmem:[%s7228_s0 + $0x950] sm:$0xff] }
  0xab   :  { %3556 = vmatmul.msk.f32.gmra.mxu3 %vm549_vm1, %v307_v43 }
  0xac   :  { %v2893_v45 = vmax.f32 %v2128_v44, 0.0 }
  0xad   :  { %v4075_v46 = vpop.f32.mrf.mxu2  ;;  %v4077_v47 = vpop.f32.mrf.mxu1 }
  0xae   :  { %3150 = vst.msk [vmem:[%s7230_s3 + $0x8] sm:$0xff] %vm3148_vm2, %v2893_v45  ;;  %v2514_v49 = vpop.f32.mrf.mxu3  ;;  %v317_v45 = vld [vmem:[%s7228_s0 + $0x978] sm:$0xff] }
  0xaf   :  { %v1345_v50 = vpop.f32.mrf.mxu0 }
  0xb0   :  { %v1346_v53 = vadd.f32 %v4035_v25, %v1345_v50  ;;  %3431 = vmatmul.msk.f32.gmra.mxu1 %vm549_vm1, %v57_v48 }
  0xb2   :  { %v2131_v55 = vadd.f32 %v2130_v20, %v1346_v53  ;;  %1392 = vmatmul.f32.gmra.mxu0 %v50_v51  ;;  %1773 = vmatmul.f32.gmra.mxu2 %v304_v52  ;;  %v63_v20 = vld [vmem:[%s7228_s0 + $0x188] sm:$0xff] }
  0xb3   :  { %3557 = vmatmul.msk.f32.gmra.mxu3 %vm549_vm1, %v309_v54  ;;  %v67_v52 = vld [vmem:[%s7228_s0 + $0x1a8] sm:$0xff] }
  0xb4   :  { %v2894_v56 = vmax.f32 %v2131_v55, 0.0 }
  0xb5   :  { %v4098_v57 = vpop.f32.mrf.mxu2  ;;  %v4100_v58 = vpop.f32.mrf.mxu1 }
  0xb6   :  { %3151 = vst.msk [vmem:[%s7230_s3 + $0x10] sm:$0xff] %vm3148_vm2, %v2894_v56  ;;  %v2517_v60 = vpop.f32.mrf.mxu3  ;;  %v60_v56 = vld [vmem:[%s7228_s0 + $0x170] sm:$0xff] }
  0xb7   :  { %v1348_v61 = vpop.f32.mrf.mxu0 }
  0xb8   :  { %v1349_v0 = vadd.f32 %v4035_v25, %v1348_v61  ;;  %3432 = vmatmul.msk.f32.gmra.mxu1 %vm549_vm1, %v59_v59  ;;  %v319_v61 = vld [vmem:[%s7228_s0 + $0x988] sm:$0xff] }
  0xba   :  { %v2134_v2 = vadd.f32 %v2133_v26, %v1349_v0  ;;  %1395 = vmatmul.f32.gmra.mxu0 %v52_v62  ;;  %1776 = vmatmul.f32.gmra.mxu2 %v306_v63  ;;  %v310_v26 = vld [vmem:[%s7228_s0 + $0x940] sm:$0xff] }
  0xbb   :  { %3558 = vmatmul.msk.f32.gmra.mxu3 %vm549_vm1, %v311_v1 }
  0xbc   :  { %v2895_v3 = vmax.f32 %v2134_v2, 0.0 }
  0xbd   :  { %v1729_v4 = vpop.f32.mrf.mxu2  ;;  %v4121_v5 = vpop.f32.mrf.mxu1 }
  0xbe   :  { %3152 = vst.msk [vmem:[%s7230_s3 + $0x18] sm:$0xff] %vm3148_vm2, %v2895_v3  ;;  %v1730_v7 = vadd.f32 %v4035_v25, %v1729_v4  ;;  %v2520_v8 = vpop.f32.mrf.mxu3  ;;  %v69_v3 = vld [vmem:[%s7228_s0 + $0x1b8] sm:$0xff] }
  0xbf   :  { %v1351_v9 = vpop.f32.mrf.mxu0 }
  0xc0   :  { %v2515_v12 = vadd.f32 %v2514_v49, %v1730_v7  ;;  %v1352_v13 = vadd.f32 %v4035_v25, %v1351_v9  ;;  %3433 = vmatmul.msk.f32.gmra.mxu1 %vm549_vm1, %v61_v6  ;;  %v62_v7 = vld [vmem:[%s7228_s0 + $0x180] sm:$0xff] }
  0xc2   :  { %v3022_v15 = vmax.f32 %v2515_v12, 0.0  ;;  %v2137_v16 = vadd.f32 %v2136_v36, %v1352_v13  ;;  %1398 = vmatmul.f32.gmra.mxu0 %v54_v10  ;;  %1779 = vmatmul.f32.gmra.mxu2 %v308_v11  ;;  %v65_v36 = vld [vmem:[%s7228_s0 + $0x198] sm:$0xff] }
  0xc3   :  { %3559 = vmatmul.msk.f32.gmra.mxu3 %vm549_vm1, %v313_v14  ;;  %v321_v11 = vld [vmem:[%s7228_s0 + $0x998] sm:$0xff] }
  0xc4   :  { %3279 = vst.msk [vmem:[%s7230_s3 + $0x410] sm:$0xff] %vm3148_vm2, %v3022_v15  ;;  %v2896_v17 = vmax.f32 %v2137_v16, 0.0 }
  0xc5   :  { %v1732_v18 = vpop.f32.mrf.mxu2  ;;  %v4147_v19 = vpop.f32.mrf.mxu1 }
  0xc6   :  { %3153 = vst.msk [vmem:[%s7230_s3 + $0x20] sm:$0xff] %vm3148_vm2, %v2896_v17  ;;  %v1733_v21 = vadd.f32 %v4035_v25, %v1732_v18  ;;  %v2523_v22 = vpop.f32.mrf.mxu3  ;;  %v71_v17 = vld [vmem:[%s7228_s0 + $0x1c8] sm:$0xff] }
  0xc7   :  { %v1354_v23 = vpop.f32.mrf.mxu0 }
  0xc8   :  { %v2518_v27 = vadd.f32 %v2517_v60, %v1733_v21  ;;  %v1355_v28 = vadd.f32 %v4035_v25, %v1354_v23  ;;  %3434 = vmatmul.msk.f32.gmra.mxu1 %vm549_vm1, %v63_v20  ;;  %v64_v21 = vld [vmem:[%s7228_s0 + $0x190] sm:$0xff] }
  0xca   :  { %v3023_v30 = vmax.f32 %v2518_v27, 0.0  ;;  %v2140_v31 = vadd.f32 %v4077_v47, %v1355_v28  ;;  %1401 = vmatmul.f32.gmra.mxu0 %v56_v24  ;;  %1782 = vmatmul.f32.gmra.mxu2 %v310_v26  ;;  %v323_v26 = vld [vmem:[%s7228_s0 + $0x9a8] sm:$0xff] }
  0xcb   :  { %3560 = vmatmul.msk.f32.gmra.mxu3 %vm549_vm1, %v315_v29 }
  0xcc   :  { %3280 = vst.msk [vmem:[%s7230_s3 + $0x418] sm:$0xff] %vm3148_vm2, %v3023_v30  ;;  %v2897_v32 = vmax.f32 %v2140_v31, 0.0 }
  0xcd   :  { %v1735_v33 = vpop.f32.mrf.mxu2  ;;  %v4174_v34 = vpop.f32.mrf.mxu1 }
  0xce   :  { %3154 = vst.msk [vmem:[%s7230_s3 + $0x28] sm:$0xff] %vm3148_vm2, %v2897_v32  ;;  %v1736_v37 = vadd.f32 %v4035_v25, %v1735_v33  ;;  %v2526_v39 = vpop.f32.mrf.mxu3  ;;  %v73_v32 = vld [vmem:[%s7228_s0 + $0x1d8] sm:$0xff] }
  0xcf   :  { %v1357_v40 = vpop.f32.mrf.mxu0 }
  0xd0   :  { %v2521_v43 = vadd.f32 %v2520_v8, %v1736_v37  ;;  %v1358_v44 = vadd.f32 %v4035_v25, %v1357_v40  ;;  %3435 = vmatmul.msk.f32.gmra.mxu1 %vm549_vm1, %v65_v36  ;;  %v316_v8 = vld [vmem:[%s7228_s0 + $0x970] sm:$0xff]  ;;  %v66_v37 = vld [vmem:[%s7228_s0 + $0x1a0] sm:$0xff] }
  0xd2   :  { %v3024_v47 = vmax.f32 %v2521_v43, 0.0  ;;  %v2143_v48 = vadd.f32 %v4100_v58, %v1358_v44  ;;  %1404 = vmatmul.f32.gmra.mxu0 %v58_v41  ;;  %1785 = vmatmul.f32.gmra.mxu2 %v312_v42  ;;  %v314_v58 = vld [vmem:[%s7228_s0 + $0x960] sm:$0xff]  ;;  %v325_v42 = vld [vmem:[%s7228_s0 + $0x9b8] sm:$0xff] }
  0xd3   :  { %3561 = vmatmul.msk.f32.gmra.mxu3 %vm549_vm1, %v317_v45 }
  0xd4   :  { %3281 = vst.msk [vmem:[%s7230_s3 + $0x420] sm:$0xff] %vm3148_vm2, %v3024_v47  ;;  %v2898_v49 = vmax.f32 %v2143_v48, 0.0 }
  0xd5   :  { %v1738_v50 = vpop.f32.mrf.mxu2  ;;  %v4201_v51 = vpop.f32.mrf.mxu1 }
  0xd6   :  { %3155 = vst.msk [vmem:[%s7230_s3 + $0x30] sm:$0xff] %vm3148_vm2, %v2898_v49  ;;  %v1739_v53 = vadd.f32 %v4035_v25, %v1738_v50  ;;  %v2529_v54 = vpop.f32.mrf.mxu3  ;;  %v75_v49 = vld [vmem:[%s7228_s0 + $0x1e8] sm:$0xff] }
  0xd7   :  { %v1360_v55 = vpop.f32.mrf.mxu0 }
  0xd8   :  { %v2524_v59 = vadd.f32 %v2523_v22, %v1739_v53  ;;  %v1361_v60 = vadd.f32 %v4035_v25, %v1360_v55  ;;  %3436 = vmatmul.msk.f32.gmra.mxu1 %vm549_vm1, %v67_v52  ;;  %v318_v22 = vld [vmem:[%s7228_s0 + $0x980] sm:$0xff]  ;;  %v68_v53 = vld [vmem:[%s7228_s0 + $0x1b0] sm:$0xff] }
  0xda   :  { %v3025_v62 = vmax.f32 %v2524_v59, 0.0  ;;  %v2146_v63 = vadd.f32 %v4121_v5, %v1361_v60  ;;  %1407 = vmatmul.f32.gmra.mxu0 %v60_v56  ;;  %1788 = vmatmul.f32.gmra.mxu2 %v314_v58  ;;  %v327_v58 = vld [vmem:[%s7228_s0 + $0x9c8] sm:$0xff] }
  0xdb   :  { %3562 = vmatmul.msk.f32.gmra.mxu3 %vm549_vm1, %v319_v61 }
  0xdc   :  { %3282 = vst.msk [vmem:[%s7230_s3 + $0x428] sm:$0xff] %vm3148_vm2, %v3025_v62  ;;  %v2899_v0 = vmax.f32 %v2146_v63, 0.0 }
  0xdd   :  { %v1741_v1 = vpop.f32.mrf.mxu2  ;;  %v4228_v2 = vpop.f32.mrf.mxu1 }
  0xde   :  { %3156 = vst.msk [vmem:[%s7230_s3 + $0x38] sm:$0xff] %vm3148_vm2, %v2899_v0  ;;  %v1742_v4 = vadd.f32 %v4035_v25, %v1741_v1  ;;  %v2532_v5 = vpop.f32.mrf.mxu3  ;;  %v77_v0 = vld [vmem:[%s7228_s0 + $0x1f8] sm:$0xff] }
  0xdf   :  { %v1363_v6 = vpop.f32.mrf.mxu0 }
  0xe0   :  { %v2527_v9 = vadd.f32 %v2526_v39, %v1742_v4  ;;  %v1364_v10 = vadd.f32 %v4035_v25, %v1363_v6  ;;  %3437 = vmatmul.msk.f32.gmra.mxu1 %vm549_vm1, %v69_v3  ;;  %v320_v39 = vld [vmem:[%s7228_s0 + $0x990] sm:$0xff]  ;;  %v70_v4 = vld [vmem:[%s7228_s0 + $0x1c0] sm:$0xff] }
  0xe2   :  { %v3026_v12 = vmax.f32 %v2527_v9, 0.0  ;;  %v2149_v13 = vadd.f32 %v4147_v19, %v1364_v10  ;;  %1410 = vmatmul.f32.gmra.mxu0 %v62_v7  ;;  %1791 = vmatmul.f32.gmra.mxu2 %v316_v8  ;;  %v329_v8 = vld [vmem:[%s7228_s0 + $0x9d8] sm:$0xff] }
  0xe3   :  { %3563 = vmatmul.msk.f32.gmra.mxu3 %vm549_vm1, %v321_v11 }
  0xe4   :  { %3283 = vst.msk [vmem:[%s7230_s3 + $0x430] sm:$0xff] %vm3148_vm2, %v3026_v12  ;;  %v2900_v14 = vmax.f32 %v2149_v13, 0.0 }
  0xe5   :  { %v1744_v15 = vpop.f32.mrf.mxu2  ;;  %v4255_v16 = vpop.f32.mrf.mxu1 }
  0xe6   :  { %3157 = vst.msk [vmem:[%s7230_s3 + $0x40] sm:$0xff] %vm3148_vm2, %v2900_v14  ;;  %v1745_v18 = vadd.f32 %v4035_v25, %v1744_v15  ;;  %v2535_v19 = vpop.f32.mrf.mxu3  ;;  %v79_v14 = vld [vmem:[%s7228_s0 + $0x208] sm:$0xff] }
  0xe7   :  { %v1366_v20 = vpop.f32.mrf.mxu0 }
  0xe8   :  { %v2530_v23 = vadd.f32 %v2529_v54, %v1745_v18  ;;  %v1367_v24 = vadd.f32 %v4035_v25, %v1366_v20  ;;  %3438 = vmatmul.msk.f32.gmra.mxu1 %vm549_vm1, %v71_v17  ;;  %v322_v54 = vld [vmem:[%s7228_s0 + $0x9a0] sm:$0xff]  ;;  %v72_v18 = vld [vmem:[%s7228_s0 + $0x1d0] sm:$0xff] }
  0xea   :  { %v3027_v27 = vmax.f32 %v2530_v23, 0.0  ;;  %v2152_v28 = vadd.f32 %v4174_v34, %v1367_v24  ;;  %1413 = vmatmul.f32.gmra.mxu0 %v64_v21  ;;  %1794 = vmatmul.f32.gmra.mxu2 %v318_v22  ;;  %v331_v22 = vld [vmem:[%s7228_s0 + $0x9e8] sm:$0xff] }
  0xeb   :  { %3564 = vmatmul.msk.f32.gmra.mxu3 %vm549_vm1, %v323_v26 }
  0xec   :  { %3284 = vst.msk [vmem:[%s7230_s3 + $0x438] sm:$0xff] %vm3148_vm2, %v3027_v27  ;;  %v2901_v29 = vmax.f32 %v2152_v28, 0.0 }
  0xed   :  { %v1747_v30 = vpop.f32.mrf.mxu2  ;;  %v4282_v31 = vpop.f32.mrf.mxu1 }
  0xee   :  { %3158 = vst.msk [vmem:[%s7230_s3 + $0x48] sm:$0xff] %vm3148_vm2, %v2901_v29  ;;  %v1748_v33 = vadd.f32 %v4035_v25, %v1747_v30  ;;  %v2538_v34 = vpop.f32.mrf.mxu3  ;;  %v81_v29 = vld [vmem:[%s7228_s0 + $0x218] sm:$0xff] }
  0xef   :  { %v1369_v36 = vpop.f32.mrf.mxu0 }
  0xf0   :  { %v2533_v40 = vadd.f32 %v2532_v5, %v1748_v33  ;;  %v1370_v41 = vadd.f32 %v4035_v25, %v1369_v36  ;;  %3439 = vmatmul.msk.f32.gmra.mxu1 %vm549_vm1, %v73_v32  ;;  %v324_v5 = vld [vmem:[%s7228_s0 + $0x9b0] sm:$0xff]  ;;  %v74_v33 = vld [vmem:[%s7228_s0 + $0x1e0] sm:$0xff] }
  0xf2   :  { %v3028_v43 = vmax.f32 %v2533_v40, 0.0  ;;  %v2155_v44 = vadd.f32 %v4201_v51, %v1370_v41  ;;  %1416 = vmatmul.f32.gmra.mxu0 %v66_v37  ;;  %1797 = vmatmul.f32.gmra.mxu2 %v320_v39  ;;  %v333_v39 = vld [vmem:[%s7228_s0 + $0x9f8] sm:$0xff] }
  0xf3   :  { %3565 = vmatmul.msk.f32.gmra.mxu3 %vm549_vm1, %v325_v42 }
  0xf4   :  { %3285 = vst.msk [vmem:[%s7230_s3 + $0x440] sm:$0xff] %vm3148_vm2, %v3028_v43  ;;  %v2902_v45 = vmax.f32 %v2155_v44, 0.0 }
  0xf5   :  { %v1750_v47 = vpop.f32.mrf.mxu2  ;;  %v4309_v48 = vpop.f32.mrf.mxu1 }
  0xf6   :  { %3159 = vst.msk [vmem:[%s7230_s3 + $0x50] sm:$0xff] %vm3148_vm2, %v2902_v45  ;;  %v1751_v50 = vadd.f32 %v4035_v25, %v1750_v47  ;;  %v2541_v51 = vpop.f32.mrf.mxu3  ;;  %v83_v45 = vld [vmem:[%s7228_s0 + $0x228] sm:$0xff] }
  0xf7   :  { %v1372_v52 = vpop.f32.mrf.mxu0 }
  0xf8   :  { %v2536_v55 = vadd.f32 %v2535_v19, %v1751_v50  ;;  %v1373_v56 = vadd.f32 %v4035_v25, %v1372_v52  ;;  %3440 = vmatmul.msk.f32.gmra.mxu1 %vm549_vm1, %v75_v49  ;;  %v326_v19 = vld [vmem:[%s7228_s0 + $0x9c0] sm:$0xff]  ;;  %v76_v50 = vld [vmem:[%s7228_s0 + $0x1f0] sm:$0xff] }
  0xfa   :  { %v3029_v59 = vmax.f32 %v2536_v55, 0.0  ;;  %v2158_v60 = vadd.f32 %v4228_v2, %v1373_v56  ;;  %1419 = vmatmul.f32.gmra.mxu0 %v68_v53  ;;  %1800 = vmatmul.f32.gmra.mxu2 %v322_v54  ;;  %v335_v54 = vld [vmem:[%s7228_s0 + $0xa08] sm:$0xff] }
  0xfb   :  { %3566 = vmatmul.msk.f32.gmra.mxu3 %vm549_vm1, %v327_v58 }
  0xfc   :  { %3286 = vst.msk [vmem:[%s7230_s3 + $0x448] sm:$0xff] %vm3148_vm2, %v3029_v59  ;;  %v2903_v61 = vmax.f32 %v2158_v60, 0.0 }
  0xfd   :  { %v1753_v62 = vpop.f32.mrf.mxu2  ;;  %v4336_v63 = vpop.f32.mrf.mxu1 }
  0xfe   :  { %3160 = vst.msk [vmem:[%s7230_s3 + $0x58] sm:$0xff] %vm3148_vm2, %v2903_v61  ;;  %v1754_v1 = vadd.f32 %v4035_v25, %v1753_v62  ;;  %v2544_v2 = vpop.f32.mrf.mxu3  ;;  %v85_v61 = vld [vmem:[%s7228_s0 + $0x238] sm:$0xff] }
  0xff   :  { %v1375_v3 = vpop.f32.mrf.mxu0 }
 0x100   :  { %v2539_v6 = vadd.f32 %v2538_v34, %v1754_v1  ;;  %v1376_v7 = vadd.f32 %v4035_v25, %v1375_v3  ;;  %3441 = vmatmul.msk.f32.gmra.mxu1 %vm549_vm1, %v77_v0  ;;  %v328_v34 = vld [vmem:[%s7228_s0 + $0x9d0] sm:$0xff]  ;;  %v78_v1 = vld [vmem:[%s7228_s0 + $0x200] sm:$0xff] }
 0x102   :  { %v3030_v9 = vmax.f32 %v2539_v6, 0.0  ;;  %v2161_v10 = vadd.f32 %v4255_v16, %v1376_v7  ;;  %1422 = vmatmul.f32.gmra.mxu0 %v70_v4  ;;  %1803 = vmatmul.f32.gmra.mxu2 %v324_v5  ;;  %v337_v5 = vld [vmem:[%s7228_s0 + $0xa18] sm:$0xff] }
 0x103   :  { %3567 = vmatmul.msk.f32.gmra.mxu3 %vm549_vm1, %v329_v8 }
 0x104   :  { %3287 = vst.msk [vmem:[%s7230_s3 + $0x450] sm:$0xff] %vm3148_vm2, %v3030_v9  ;;  %v2904_v11 = vmax.f32 %v2161_v10, 0.0 }
 0x105   :  { %v1756_v12 = vpop.f32.mrf.mxu2  ;;  %v4363_v13 = vpop.f32.mrf.mxu1 }
 0x106   :  { %3161 = vst.msk [vmem:[%s7230_s3 + $0x60] sm:$0xff] %vm3148_vm2, %v2904_v11  ;;  %v1757_v15 = vadd.f32 %v4035_v25, %v1756_v12  ;;  %v2547_v16 = vpop.f32.mrf.mxu3  ;;  %v87_v11 = vld [vmem:[%s7228_s0 + $0x248] sm:$0xff] }
 0x107   :  { %v1378_v17 = vpop.f32.mrf.mxu0 }
 0x108   :  { %v2542_v20 = vadd.f32 %v2541_v51, %v1757_v15  ;;  %v1379_v21 = vadd.f32 %v4035_v25, %v1378_v17  ;;  %3442 = vmatmul.msk.f32.gmra.mxu1 %vm549_vm1, %v79_v14  ;;  %v330_v51 = vld [vmem:[%s7228_s0 + $0x9e0] sm:$0xff]  ;;  %v80_v15 = vld [vmem:[%s7228_s0 + $0x210] sm:$0xff] }
 0x10a   :  { %v3031_v23 = vmax.f32 %v2542_v20, 0.0  ;;  %v2164_v24 = vadd.f32 %v4282_v31, %v1379_v21  ;;  %1425 = vmatmul.f32.gmra.mxu0 %v72_v18  ;;  %1806 = vmatmul.f32.gmra.mxu2 %v326_v19  ;;  %v339_v19 = vld [vmem:[%s7228_s0 + $0xa28] sm:$0xff] }
 0x10b   :  { %3568 = vmatmul.msk.f32.gmra.mxu3 %vm549_vm1, %v331_v22 }
 0x10c   :  { %3288 = vst.msk [vmem:[%s7230_s3 + $0x458] sm:$0xff] %vm3148_vm2, %v3031_v23  ;;  %v2905_v26 = vmax.f32 %v2164_v24, 0.0 }
 0x10d   :  { %v1759_v27 = vpop.f32.mrf.mxu2  ;;  %v4390_v28 = vpop.f32.mrf.mxu1 }
 0x10e   :  { %3162 = vst.msk [vmem:[%s7230_s3 + $0x68] sm:$0xff] %vm3148_vm2, %v2905_v26  ;;  %v1760_v30 = vadd.f32 %v4035_v25, %v1759_v27  ;;  %v2550_v31 = vpop.f32.mrf.mxu3  ;;  %v89_v26 = vld [vmem:[%s7228_s0 + $0x258] sm:$0xff] }
 0x10f   :  { %v1381_v32 = vpop.f32.mrf.mxu0 }
 0x110   :  { %v2545_v36 = vadd.f32 %v2544_v2, %v1760_v30  ;;  %v1382_v37 = vadd.f32 %v4035_v25, %v1381_v32  ;;  %3443 = vmatmul.msk.f32.gmra.mxu1 %vm549_vm1, %v81_v29  ;;  %v332_v2 = vld [vmem:[%s7228_s0 + $0x9f0] sm:$0xff]  ;;  %v82_v30 = vld [vmem:[%s7228_s0 + $0x220] sm:$0xff] }
 0x112   :  { %v3032_v40 = vmax.f32 %v2545_v36, 0.0  ;;  %v2167_v41 = vadd.f32 %v4309_v48, %v1382_v37  ;;  %1428 = vmatmul.f32.gmra.mxu0 %v74_v33  ;;  %1809 = vmatmul.f32.gmra.mxu2 %v328_v34  ;;  %v341_v34 = vld [vmem:[%s7228_s0 + $0xa38] sm:$0xff] }
 0x113   :  { %3569 = vmatmul.msk.f32.gmra.mxu3 %vm549_vm1, %v333_v39 }
 0x114   :  { %3289 = vst.msk [vmem:[%s7230_s3 + $0x460] sm:$0xff] %vm3148_vm2, %v3032_v40  ;;  %v2906_v42 = vmax.f32 %v2167_v41, 0.0 }
 0x115   :  { %v1762_v43 = vpop.f32.mrf.mxu2  ;;  %v4417_v44 = vpop.f32.mrf.mxu1 }
 0x116   :  { %3163 = vst.msk [vmem:[%s7230_s3 + $0x70] sm:$0xff] %vm3148_vm2, %v2906_v42  ;;  %v1763_v47 = vadd.f32 %v4035_v25, %v1762_v43  ;;  %v2553_v48 = vpop.f32.mrf.mxu3  ;;  %v91_v42 = vld [vmem:[%s7228_s0 + $0x268] sm:$0xff] }
 0x117   :  { %v1384_v49 = vpop.f32.mrf.mxu0 }
 0x118   :  { %v2548_v52 = vadd.f32 %v2547_v16, %v1763_v47  ;;  %v1385_v53 = vadd.f32 %v4035_v25, %v1384_v49  ;;  %3444 = vmatmul.msk.f32.gmra.mxu1 %vm549_vm1, %v83_v45  ;;  %v334_v16 = vld [vmem:[%s7228_s0 + $0xa00] sm:$0xff]  ;;  %v84_v47 = vld [vmem:[%s7228_s0 + $0x230] sm:$0xff] }
 0x11a   :  { %v3033_v55 = vmax.f32 %v2548_v52, 0.0  ;;  %v2170_v56 = vadd.f32 %v4336_v63, %v1385_v53  ;;  %1431 = vmatmul.f32.gmra.mxu0 %v76_v50  ;;  %1812 = vmatmul.f32.gmra.mxu2 %v330_v51  ;;  %v343_v51 = vld [vmem:[%s7228_s0 + $0xa48] sm:$0xff] }
 0x11b   :  { %3570 = vmatmul.msk.f32.gmra.mxu3 %vm549_vm1, %v335_v54 }
 0x11c   :  { %3290 = vst.msk [vmem:[%s7230_s3 + $0x468] sm:$0xff] %vm3148_vm2, %v3033_v55  ;;  %v2907_v58 = vmax.f32 %v2170_v56, 0.0 }
 0x11d   :  { %v1765_v59 = vpop.f32.mrf.mxu2  ;;  %v4444_v60 = vpop.f32.mrf.mxu1 }
 0x11e   :  { %3164 = vst.msk [vmem:[%s7230_s3 + $0x78] sm:$0xff] %vm3148_vm2, %v2907_v58  ;;  %v1766_v62 = vadd.f32 %v4035_v25, %v1765_v59  ;;  %v2556_v63 = vpop.f32.mrf.mxu3  ;;  %v93_v58 = vld [vmem:[%s7228_s0 + $0x278] sm:$0xff] }
 0x11f   :  { %v1387_v0 = vpop.f32.mrf.mxu0 }
 0x120   :  { %v2551_v3 = vadd.f32 %v2550_v31, %v1766_v62  ;;  %v1388_v4 = vadd.f32 %v4035_v25, %v1387_v0  ;;  %3445 = vmatmul.msk.f32.gmra.mxu1 %vm549_vm1, %v85_v61  ;;  %v336_v31 = vld [vmem:[%s7228_s0 + $0xa10] sm:$0xff]  ;;  %v86_v62 = vld [vmem:[%s7228_s0 + $0x240] sm:$0xff] }
 0x122   :  { %v3034_v6 = vmax.f32 %v2551_v3, 0.0  ;;  %v2173_v7 = vadd.f32 %v4363_v13, %v1388_v4  ;;  %1434 = vmatmul.f32.gmra.mxu0 %v78_v1  ;;  %1815 = vmatmul.f32.gmra.mxu2 %v332_v2  ;;  %v345_v2 = vld [vmem:[%s7228_s0 + $0xa58] sm:$0xff] }
 0x123   :  { %3571 = vmatmul.msk.f32.gmra.mxu3 %vm549_vm1, %v337_v5 }
 0x124   :  { %3291 = vst.msk [vmem:[%s7230_s3 + $0x470] sm:$0xff] %vm3148_vm2, %v3034_v6  ;;  %v2908_v8 = vmax.f32 %v2173_v7, 0.0 }
 0x125   :  { %v1768_v9 = vpop.f32.mrf.mxu2  ;;  %v4471_v10 = vpop.f32.mrf.mxu1 }
 0x126   :  { %3165 = vst.msk [vmem:[%s7230_s3 + $0x80] sm:$0xff] %vm3148_vm2, %v2908_v8  ;;  %v1769_v12 = vadd.f32 %v4035_v25, %v1768_v9  ;;  %v2559_v13 = vpop.f32.mrf.mxu3  ;;  %v95_v8 = vld [vmem:[%s7228_s0 + $0x288] sm:$0xff] }
 0x127   :  { %v1390_v14 = vpop.f32.mrf.mxu0 }
 0x128   :  { %v2554_v17 = vadd.f32 %v2553_v48, %v1769_v12  ;;  %v1391_v18 = vadd.f32 %v4035_v25, %v1390_v14  ;;  %3446 = vmatmul.msk.f32.gmra.mxu1 %vm549_vm1, %v87_v11  ;;  %v338_v48 = vld [vmem:[%s7228_s0 + $0xa20] sm:$0xff]  ;;  %v88_v12 = vld [vmem:[%s7228_s0 + $0x250] sm:$0xff] }
 0x12a   :  { %v3035_v20 = vmax.f32 %v2554_v17, 0.0  ;;  %v2176_v21 = vadd.f32 %v4390_v28, %v1391_v18  ;;  %1437 = vmatmul.f32.gmra.mxu0 %v80_v15  ;;  %1818 = vmatmul.f32.gmra.mxu2 %v334_v16  ;;  %v347_v16 = vld [vmem:[%s7228_s0 + $0xa68] sm:$0xff] }
 0x12b   :  { %3572 = vmatmul.msk.f32.gmra.mxu3 %vm549_vm1, %v339_v19 }
 0x12c   :  { %3292 = vst.msk [vmem:[%s7230_s3 + $0x478] sm:$0xff] %vm3148_vm2, %v3035_v20  ;;  %v2909_v22 = vmax.f32 %v2176_v21, 0.0 }
 0x12d   :  { %v1771_v23 = vpop.f32.mrf.mxu2  ;;  %v4498_v24 = vpop.f32.mrf.mxu1 }
 0x12e   :  { %3166 = vst.msk [vmem:[%s7230_s3 + $0x88] sm:$0xff] %vm3148_vm2, %v2909_v22  ;;  %v1772_v27 = vadd.f32 %v4035_v25, %v1771_v23  ;;  %v2562_v28 = vpop.f32.mrf.mxu3  ;;  %v97_v22 = vld [vmem:[%s7228_s0 + $0x298] sm:$0xff] }
 0x12f   :  { %v1393_v29 = vpop.f32.mrf.mxu0 }
 0x130   :  { %v2557_v32 = vadd.f32 %v2556_v63, %v1772_v27  ;;  %v1394_v33 = vadd.f32 %v4035_v25, %v1393_v29  ;;  %3447 = vmatmul.msk.f32.gmra.mxu1 %vm549_vm1, %v89_v26  ;;  %v340_v63 = vld [vmem:[%s7228_s0 + $0xa30] sm:$0xff]  ;;  %v90_v27 = vld [vmem:[%s7228_s0 + $0x260] sm:$0xff] }
 0x132   :  { %v3036_v36 = vmax.f32 %v2557_v32, 0.0  ;;  %v2179_v37 = vadd.f32 %v4417_v44, %v1394_v33  ;;  %1440 = vmatmul.f32.gmra.mxu0 %v82_v30  ;;  %1821 = vmatmul.f32.gmra.mxu2 %v336_v31  ;;  %v349_v31 = vld [vmem:[%s7228_s0 + $0xa78] sm:$0xff] }
 0x133   :  { %3573 = vmatmul.msk.f32.gmra.mxu3 %vm549_vm1, %v341_v34 }
 0x134   :  { %3293 = vst.msk [vmem:[%s7230_s3 + $0x480] sm:$0xff] %vm3148_vm2, %v3036_v36  ;;  %v2910_v39 = vmax.f32 %v2179_v37, 0.0 }
 0x135   :  { %v1774_v40 = vpop.f32.mrf.mxu2  ;;  %v4525_v41 = vpop.f32.mrf.mxu1 }
 0x136   :  { %3167 = vst.msk [vmem:[%s7230_s3 + $0x90] sm:$0xff] %vm3148_vm2, %v2910_v39  ;;  %v1775_v43 = vadd.f32 %v4035_v25, %v1774_v40  ;;  %v2565_v44 = vpop.f32.mrf.mxu3  ;;  %v99_v39 = vld [vmem:[%s7228_s0 + $0x2a8] sm:$0xff] }
 0x137   :  { %v1396_v45 = vpop.f32.mrf.mxu0 }
 0x138   :  { %v2560_v49 = vadd.f32 %v2559_v13, %v1775_v43  ;;  %v1397_v50 = vadd.f32 %v4035_v25, %v1396_v45  ;;  %3448 = vmatmul.msk.f32.gmra.mxu1 %vm549_vm1, %v91_v42  ;;  %v342_v13 = vld [vmem:[%s7228_s0 + $0xa40] sm:$0xff]  ;;  %v92_v43 = vld [vmem:[%s7228_s0 + $0x270] sm:$0xff] }
 0x13a   :  { %v3037_v52 = vmax.f32 %v2560_v49, 0.0  ;;  %v2182_v53 = vadd.f32 %v4444_v60, %v1397_v50  ;;  %1443 = vmatmul.f32.gmra.mxu0 %v84_v47  ;;  %1824 = vmatmul.f32.gmra.mxu2 %v338_v48  ;;  %v351_v48 = vld [vmem:[%s7228_s0 + $0xa88] sm:$0xff] }
 0x13b   :  { %3574 = vmatmul.msk.f32.gmra.mxu3 %vm549_vm1, %v343_v51 }
 0x13c   :  { %3294 = vst.msk [vmem:[%s7230_s3 + $0x488] sm:$0xff] %vm3148_vm2, %v3037_v52  ;;  %v2911_v54 = vmax.f32 %v2182_v53, 0.0 }
 0x13d   :  { %v1777_v55 = vpop.f32.mrf.mxu2  ;;  %v4552_v56 = vpop.f32.mrf.mxu1 }
 0x13e   :  { %3168 = vst.msk [vmem:[%s7230_s3 + $0x98] sm:$0xff] %vm3148_vm2, %v2911_v54  ;;  %v1778_v59 = vadd.f32 %v4035_v25, %v1777_v55  ;;  %v2568_v60 = vpop.f32.mrf.mxu3  ;;  %v101_v54 = vld [vmem:[%s7228_s0 + $0x2b8] sm:$0xff] }
 0x13f   :  { %v1399_v61 = vpop.f32.mrf.mxu0 }
 0x140   :  { %v2563_v0 = vadd.f32 %v2562_v28, %v1778_v59  ;;  %v1400_v1 = vadd.f32 %v4035_v25, %v1399_v61  ;;  %3449 = vmatmul.msk.f32.gmra.mxu1 %vm549_vm1, %v93_v58  ;;  %v344_v28 = vld [vmem:[%s7228_s0 + $0xa50] sm:$0xff]  ;;  %v94_v59 = vld [vmem:[%s7228_s0 + $0x280] sm:$0xff] }
 0x142   :  { %v3038_v3 = vmax.f32 %v2563_v0, 0.0  ;;  %v2185_v4 = vadd.f32 %v4471_v10, %v1400_v1  ;;  %1446 = vmatmul.f32.gmra.mxu0 %v86_v62  ;;  %1827 = vmatmul.f32.gmra.mxu2 %v340_v63  ;;  %v353_v63 = vld [vmem:[%s7228_s0 + $0xa98] sm:$0xff] }
 0x143   :  { %3575 = vmatmul.msk.f32.gmra.mxu3 %vm549_vm1, %v345_v2 }
 0x144   :  { %3295 = vst.msk [vmem:[%s7230_s3 + $0x490] sm:$0xff] %vm3148_vm2, %v3038_v3  ;;  %v2912_v5 = vmax.f32 %v2185_v4, 0.0 }
 0x145   :  { %v1780_v6 = vpop.f32.mrf.mxu2  ;;  %v4579_v7 = vpop.f32.mrf.mxu1 }
 0x146   :  { %3169 = vst.msk [vmem:[%s7230_s3 + $0xa0] sm:$0xff] %vm3148_vm2, %v2912_v5  ;;  %v1781_v9 = vadd.f32 %v4035_v25, %v1780_v6  ;;  %v2571_v10 = vpop.f32.mrf.mxu3  ;;  %v103_v5 = vld [vmem:[%s7228_s0 + $0x2c8] sm:$0xff] }
 0x147   :  { %v1402_v11 = vpop.f32.mrf.mxu0 }
 0x148   :  { %v2566_v14 = vadd.f32 %v2565_v44, %v1781_v9  ;;  %v1403_v15 = vadd.f32 %v4035_v25, %v1402_v11  ;;  %3450 = vmatmul.msk.f32.gmra.mxu1 %vm549_vm1, %v95_v8  ;;  %v346_v44 = vld [vmem:[%s7228_s0 + $0xa60] sm:$0xff]  ;;  %v96_v9 = vld [vmem:[%s7228_s0 + $0x290] sm:$0xff] }
 0x14a   :  { %v3039_v17 = vmax.f32 %v2566_v14, 0.0  ;;  %v2188_v18 = vadd.f32 %v4498_v24, %v1403_v15  ;;  %1449 = vmatmul.f32.gmra.mxu0 %v88_v12  ;;  %1830 = vmatmul.f32.gmra.mxu2 %v342_v13  ;;  %v355_v13 = vld [vmem:[%s7228_s0 + $0xaa8] sm:$0xff] }
 0x14b   :  { %3576 = vmatmul.msk.f32.gmra.mxu3 %vm549_vm1, %v347_v16 }
 0x14c   :  { %3296 = vst.msk [vmem:[%s7230_s3 + $0x498] sm:$0xff] %vm3148_vm2, %v3039_v17  ;;  %v2913_v19 = vmax.f32 %v2188_v18, 0.0 }
 0x14d   :  { %v1783_v20 = vpop.f32.mrf.mxu2  ;;  %v4606_v21 = vpop.f32.mrf.mxu1 }
 0x14e   :  { %3170 = vst.msk [vmem:[%s7230_s3 + $0xa8] sm:$0xff] %vm3148_vm2, %v2913_v19  ;;  %v1784_v23 = vadd.f32 %v4035_v25, %v1783_v20  ;;  %v2574_v24 = vpop.f32.mrf.mxu3  ;;  %v105_v19 = vld [vmem:[%s7228_s0 + $0x2d8] sm:$0xff] }
 0x14f   :  { %v1405_v26 = vpop.f32.mrf.mxu0 }
 0x150   :  { %v2569_v29 = vadd.f32 %v2568_v60, %v1784_v23  ;;  %v1406_v30 = vadd.f32 %v4035_v25, %v1405_v26  ;;  %3451 = vmatmul.msk.f32.gmra.mxu1 %vm549_vm1, %v97_v22  ;;  %v348_v60 = vld [vmem:[%s7228_s0 + $0xa70] sm:$0xff]  ;;  %v98_v23 = vld [vmem:[%s7228_s0 + $0x2a0] sm:$0xff] }
 0x152   :  { %v3040_v32 = vmax.f32 %v2569_v29, 0.0  ;;  %v2191_v33 = vadd.f32 %v4525_v41, %v1406_v30  ;;  %1452 = vmatmul.f32.gmra.mxu0 %v90_v27  ;;  %1833 = vmatmul.f32.gmra.mxu2 %v344_v28  ;;  %v4733_v27 = vld [vmem:[%s7229_s2] ss:$0 sm:$0xff] }
 0x153   :  { %3577 = vmatmul.msk.f32.gmra.mxu3 %vm549_vm1, %v349_v31 }
 0x154   :  { %3297 = vst.msk [vmem:[%s7230_s3 + $0x4a0] sm:$0xff] %vm3148_vm2, %v3040_v32  ;;  %v2914_v34 = vmax.f32 %v2191_v33, 0.0 }
 0x155   :  { %v1786_v36 = vpop.f32.mrf.mxu2  ;;  %v4633_v37 = vpop.f32.mrf.mxu1 }
 0x156   :  { %3171 = vst.msk [vmem:[%s7230_s3 + $0xb0] sm:$0xff] %vm3148_vm2, %v2914_v34  ;;  %v1787_v40 = vadd.f32 %v4035_v25, %v1786_v36  ;;  %v2577_v41 = vpop.f32.mrf.mxu3  ;;  %v107_v34 = vld [vmem:[%s7228_s0 + $0x2e8] sm:$0xff] }
 0x157   :  { %v1408_v42 = vpop.f32.mrf.mxu0 }
 0x158   :  { %v2572_v45 = vadd.f32 %v2571_v10, %v1787_v40  ;;  %v1409_v47 = vadd.f32 %v4035_v25, %v1408_v42  ;;  %3452 = vmatmul.msk.f32.gmra.mxu1 %vm549_vm1, %v99_v39  ;;  %v350_v10 = vld [vmem:[%s7228_s0 + $0xa80] sm:$0xff]  ;;  %v100_v40 = vld [vmem:[%s7228_s0 + $0x2b0] sm:$0xff] }
 0x15a   :  { %v3041_v49 = vmax.f32 %v2572_v45, 0.0  ;;  %v2194_v50 = vadd.f32 %v4552_v56, %v1409_v47  ;;  %1455 = vmatmul.f32.gmra.mxu0 %v92_v43  ;;  %1836 = vmatmul.f32.gmra.mxu2 %v346_v44  ;;  %v359_v44 = vld [vmem:[%s7228_s0 + $0xac8] sm:$0xff] }
 0x15b   :  { %3578 = vmatmul.msk.f32.gmra.mxu3 %vm549_vm1, %v351_v48 }
 0x15c   :  { %3298 = vst.msk [vmem:[%s7230_s3 + $0x4a8] sm:$0xff] %vm3148_vm2, %v3041_v49  ;;  %v2915_v51 = vmax.f32 %v2194_v50, 0.0 }
 0x15d   :  { %v1789_v52 = vpop.f32.mrf.mxu2  ;;  %v4660_v53 = vpop.f32.mrf.mxu1 }
 0x15e   :  { %3172 = vst.msk [vmem:[%s7230_s3 + $0xb8] sm:$0xff] %vm3148_vm2, %v2915_v51  ;;  %v1790_v55 = vadd.f32 %v4035_v25, %v1789_v52  ;;  %v2580_v56 = vpop.f32.mrf.mxu3  ;;  %v109_v51 = vld [vmem:[%s7228_s0 + $0x2f8] sm:$0xff] }
 0x15f   :  { %v1411_v58 = vpop.f32.mrf.mxu0 }
 0x160   :  { %v2575_v61 = vadd.f32 %v2574_v24, %v1790_v55  ;;  %v1412_v62 = vadd.f32 %v4035_v25, %v1411_v58  ;;  %3453 = vmatmul.msk.f32.gmra.mxu1 %vm549_vm1, %v101_v54  ;;  %v352_v24 = vld [vmem:[%s7228_s0 + $0xa90] sm:$0xff]  ;;  %v102_v55 = vld [vmem:[%s7228_s0 + $0x2c0] sm:$0xff] }
 0x162   :  { %v3042_v0 = vmax.f32 %v2575_v61, 0.0  ;;  %v2197_v1 = vadd.f32 %v4579_v7, %v1412_v62  ;;  %1458 = vmatmul.f32.gmra.mxu0 %v94_v59  ;;  %1839 = vmatmul.f32.gmra.mxu2 %v348_v60  ;;  %v361_v60 = vld [vmem:[%s7228_s0 + $0xad8] sm:$0xff] }
 0x163   :  { %3579 = vmatmul.msk.f32.gmra.mxu3 %vm549_vm1, %v353_v63 }
 0x164   :  { %3299 = vst.msk [vmem:[%s7230_s3 + $0x4b0] sm:$0xff] %vm3148_vm2, %v3042_v0  ;;  %v2916_v2 = vmax.f32 %v2197_v1, 0.0 }
 0x165   :  { %v1792_v3 = vpop.f32.mrf.mxu2  ;;  %v4687_v4 = vpop.f32.mrf.mxu1 }
 0x166   :  { %3173 = vst.msk [vmem:[%s7230_s3 + $0xc0] sm:$0xff] %vm3148_vm2, %v2916_v2  ;;  %v1793_v6 = vadd.f32 %v4035_v25, %v1792_v3  ;;  %v2583_v7 = vpop.f32.mrf.mxu3  ;;  %v111_v2 = vld [vmem:[%s7228_s0 + $0x308] sm:$0xff] }
 0x167   :  { %v1414_v8 = vpop.f32.mrf.mxu0 }
 0x168   :  { %v2578_v11 = vadd.f32 %v2577_v41, %v1793_v6  ;;  %v1415_v12 = vadd.f32 %v4035_v25, %v1414_v8  ;;  %3454 = vmatmul.msk.f32.gmra.mxu1 %vm549_vm1, %v103_v5  ;;  %v354_v41 = vld [vmem:[%s7228_s0 + $0xaa0] sm:$0xff]  ;;  %v104_v6 = vld [vmem:[%s7228_s0 + $0x2d0] sm:$0xff] }
 0x16a   :  { %v3043_v14 = vmax.f32 %v2578_v11, 0.0  ;;  %v2200_v15 = vadd.f32 %v4606_v21, %v1415_v12  ;;  %1461 = vmatmul.f32.gmra.mxu0 %v96_v9  ;;  %1842 = vmatmul.f32.gmra.mxu2 %v350_v10  ;;  %v363_v10 = vld [vmem:[%s7228_s0 + $0xae8] sm:$0xff] }
 0x16b   :  { %3580 = vmatmul.msk.f32.gmra.mxu3 %vm549_vm1, %v355_v13 }
 0x16c   :  { %3300 = vst.msk [vmem:[%s7230_s3 + $0x4b8] sm:$0xff] %vm3148_vm2, %v3043_v14  ;;  %v2917_v16 = vmax.f32 %v2200_v15, 0.0 }
 0x16d   :  { %v1795_v17 = vpop.f32.mrf.mxu2  ;;  %v4714_v18 = vpop.f32.mrf.mxu1 }
 0x16e   :  { %3174 = vst.msk [vmem:[%s7230_s3 + $0xc8] sm:$0xff] %vm3148_vm2, %v2917_v16  ;;  %v1796_v20 = vadd.f32 %v4035_v25, %v1795_v17  ;;  %v2586_v21 = vpop.f32.mrf.mxu3  ;;  %v357_v25 = vld [vmem:[%s7228_s0 + $0xab8] sm:$0xff] }
 0x16f   :  { %v1417_v22 = vpop.f32.mrf.mxu0  ;;  %v113_v16 = vld [vmem:[%s7228_s0 + $0x318] sm:$0xff] }
 0x170   :  { %v2581_v26 = vadd.f32 %v2580_v56, %v1796_v20  ;;  %v1418_v28 = vadd.f32 %v4733_v27, %v1417_v22  ;;  %3455 = vmatmul.msk.f32.gmra.mxu1 %vm549_vm1, %v105_v19  ;;  %v356_v56 = vld [vmem:[%s7228_s0 + $0xab0] sm:$0xff]  ;;  %v106_v20 = vld [vmem:[%s7228_s0 + $0x2e0] sm:$0xff] }
 0x172   :  { %v3044_v29 = vmax.f32 %v2581_v26, 0.0  ;;  %v2203_v30 = vadd.f32 %v4633_v37, %v1418_v28  ;;  %1464 = vmatmul.f32.gmra.mxu0 %v98_v23  ;;  %1845 = vmatmul.f32.gmra.mxu2 %v352_v24  ;;  %v365_v24 = vld [vmem:[%s7228_s0 + $0xaf8] sm:$0xff] }
 0x173   :  { %3581 = vmatmul.msk.f32.gmra.mxu3 %vm549_vm1, %v357_v25 }
 0x174   :  { %3301 = vst.msk [vmem:[%s7230_s3 + $0x4c0] sm:$0xff] %vm3148_vm2, %v3044_v29  ;;  %v2918_v31 = vmax.f32 %v2203_v30, 0.0 }
 0x175   :  { %v1798_v32 = vpop.f32.mrf.mxu2  ;;  %v4746_v33 = vpop.f32.mrf.mxu1 }
 0x176   :  { %3175 = vst.msk [vmem:[%s7230_s3 + $0xd0] sm:$0xff] %vm3148_vm2, %v2918_v31  ;;  %v1799_v36 = vadd.f32 %v4733_v27, %v1798_v32  ;;  %v2589_v37 = vpop.f32.mrf.mxu3  ;;  %v115_v31 = vld [vmem:[%s7228_s0 + $0x328] sm:$0xff] }
 0x177   :  { %v1420_v39 = vpop.f32.mrf.mxu0 }
 0x178   :  { %v2584_v42 = vadd.f32 %v2583_v7, %v1799_v36  ;;  %v1421_v43 = vadd.f32 %v4733_v27, %v1420_v39  ;;  %3456 = vmatmul.msk.f32.gmra.mxu1 %vm549_vm1, %v107_v34  ;;  %v358_v7 = vld [vmem:[%s7228_s0 + $0xac0] sm:$0xff]  ;;  %v108_v36 = vld [vmem:[%s7228_s0 + $0x2f0] sm:$0xff] }
 0x17a   :  { %v3045_v45 = vmax.f32 %v2584_v42, 0.0  ;;  %v2206_v47 = vadd.f32 %v4660_v53, %v1421_v43  ;;  %1467 = vmatmul.f32.gmra.mxu0 %v100_v40  ;;  %1848 = vmatmul.f32.gmra.mxu2 %v354_v41  ;;  %v367_v41 = vld [vmem:[%s7228_s0 + $0xb08] sm:$0xff] }
 0x17b   :  { %3582 = vmatmul.msk.f32.gmra.mxu3 %vm549_vm1, %v359_v44 }
 0x17c   :  { %3302 = vst.msk [vmem:[%s7230_s3 + $0x4c8] sm:$0xff] %vm3148_vm2, %v3045_v45  ;;  %v2919_v48 = vmax.f32 %v2206_v47, 0.0 }
 0x17d   :  { %v1801_v49 = vpop.f32.mrf.mxu2  ;;  %v4773_v50 = vpop.f32.mrf.mxu1 }
 0x17e   :  { %3176 = vst.msk [vmem:[%s7230_s3 + $0xd8] sm:$0xff] %vm3148_vm2, %v2919_v48  ;;  %v1802_v52 = vadd.f32 %v4733_v27, %v1801_v49  ;;  %v2592_v53 = vpop.f32.mrf.mxu3  ;;  %v117_v48 = vld [vmem:[%s7228_s0 + $0x338] sm:$0xff] }
 0x17f   :  { %v1423_v54 = vpop.f32.mrf.mxu0 }
 0x180   :  { %v2587_v58 = vadd.f32 %v2586_v21, %v1802_v52  ;;  %v1424_v59 = vadd.f32 %v4733_v27, %v1423_v54  ;;  %3457 = vmatmul.msk.f32.gmra.mxu1 %vm549_vm1, %v109_v51  ;;  %v360_v21 = vld [vmem:[%s7228_s0 + $0xad0] sm:$0xff]  ;;  %v110_v52 = vld [vmem:[%s7228_s0 + $0x300] sm:$0xff] }
 0x182   :  { %v3046_v61 = vmax.f32 %v2587_v58, 0.0  ;;  %v2209_v62 = vadd.f32 %v4687_v4, %v1424_v59  ;;  %1470 = vmatmul.f32.gmra.mxu0 %v102_v55  ;;  %1851 = vmatmul.f32.gmra.mxu2 %v356_v56  ;;  %v369_v56 = vld [vmem:[%s7228_s0 + $0xb18] sm:$0xff] }
 0x183   :  { %3583 = vmatmul.msk.f32.gmra.mxu3 %vm549_vm1, %v361_v60 }
 0x184   :  { %3303 = vst.msk [vmem:[%s7230_s3 + $0x4d0] sm:$0xff] %vm3148_vm2, %v3046_v61  ;;  %v2920_v63 = vmax.f32 %v2209_v62, 0.0 }
 0x185   :  { %v1804_v0 = vpop.f32.mrf.mxu2  ;;  %v4800_v1 = vpop.f32.mrf.mxu1 }
 0x186   :  { %3177 = vst.msk [vmem:[%s7230_s3 + $0xe0] sm:$0xff] %vm3148_vm2, %v2920_v63  ;;  %v1805_v3 = vadd.f32 %v4733_v27, %v1804_v0  ;;  %v2595_v4 = vpop.f32.mrf.mxu3  ;;  %v119_v63 = vld [vmem:[%s7228_s0 + $0x348] sm:$0xff] }
 0x187   :  { %v1426_v5 = vpop.f32.mrf.mxu0 }
 0x188   :  { %v2590_v8 = vadd.f32 %v2589_v37, %v1805_v3  ;;  %v1427_v9 = vadd.f32 %v4733_v27, %v1426_v5  ;;  %3458 = vmatmul.msk.f32.gmra.mxu1 %vm549_vm1, %v111_v2  ;;  %v362_v37 = vld [vmem:[%s7228_s0 + $0xae0] sm:$0xff]  ;;  %v112_v3 = vld [vmem:[%s7228_s0 + $0x310] sm:$0xff] }
 0x18a   :  { %v3047_v11 = vmax.f32 %v2590_v8, 0.0  ;;  %v2212_v12 = vadd.f32 %v4714_v18, %v1427_v9  ;;  %1473 = vmatmul.f32.gmra.mxu0 %v104_v6  ;;  %1854 = vmatmul.f32.gmra.mxu2 %v358_v7  ;;  %v371_v7 = vld [vmem:[%s7228_s0 + $0xb28] sm:$0xff] }
 0x18b   :  { %3584 = vmatmul.msk.f32.gmra.mxu3 %vm549_vm1, %v363_v10 }
 0x18c   :  { %3304 = vst.msk [vmem:[%s7230_s3 + $0x4d8] sm:$0xff] %vm3148_vm2, %v3047_v11  ;;  %v2921_v13 = vmax.f32 %v2212_v12, 0.0 }
 0x18d   :  { %v1807_v14 = vpop.f32.mrf.mxu2  ;;  %v4827_v15 = vpop.f32.mrf.mxu1 }
 0x18e   :  { %3178 = vst.msk [vmem:[%s7230_s3 + $0xe8] sm:$0xff] %vm3148_vm2, %v2921_v13  ;;  %v1808_v17 = vadd.f32 %v4733_v27, %v1807_v14  ;;  %v2598_v18 = vpop.f32.mrf.mxu3  ;;  %v121_v13 = vld [vmem:[%s7228_s0 + $0x358] sm:$0xff] }
 0x18f   :  { %v1429_v19 = vpop.f32.mrf.mxu0 }
 0x190   :  { %v2593_v22 = vadd.f32 %v2592_v53, %v1808_v17  ;;  %v1430_v23 = vadd.f32 %v4733_v27, %v1429_v19  ;;  %3459 = vmatmul.msk.f32.gmra.mxu1 %vm549_vm1, %v113_v16  ;;  %v364_v53 = vld [vmem:[%s7228_s0 + $0xaf0] sm:$0xff]  ;;  %v114_v17 = vld [vmem:[%s7228_s0 + $0x320] sm:$0xff] }
 0x192   :  { %v3048_v26 = vmax.f32 %v2593_v22, 0.0  ;;  %v2215_v28 = vadd.f32 %v4746_v33, %v1430_v23  ;;  %1476 = vmatmul.f32.gmra.mxu0 %v106_v20  ;;  %1857 = vmatmul.f32.gmra.mxu2 %v360_v21  ;;  %v373_v21 = vld [vmem:[%s7228_s0 + $0xb38] sm:$0xff] }
 0x193   :  { %3585 = vmatmul.msk.f32.gmra.mxu3 %vm549_vm1, %v365_v24 }
 0x194   :  { %3305 = vst.msk [vmem:[%s7230_s3 + $0x4e0] sm:$0xff] %vm3148_vm2, %v3048_v26  ;;  %v2922_v25 = vmax.f32 %v2215_v28, 0.0 }
 0x195   :  { %v1810_v29 = vpop.f32.mrf.mxu2  ;;  %v4854_v30 = vpop.f32.mrf.mxu1 }
 0x196   :  { %3179 = vst.msk [vmem:[%s7230_s3 + $0xf0] sm:$0xff] %vm3148_vm2, %v2922_v25  ;;  %v1811_v32 = vadd.f32 %v4733_v27, %v1810_v29  ;;  %v2601_v33 = vpop.f32.mrf.mxu3  ;;  %v123_v25 = vld [vmem:[%s7228_s0 + $0x368] sm:$0xff] }
 0x197   :  { %v1432_v34 = vpop.f32.mrf.mxu0 }
 0x198   :  { %v2596_v39 = vadd.f32 %v2595_v4, %v1811_v32  ;;  %v1433_v40 = vadd.f32 %v4733_v27, %v1432_v34  ;;  %3460 = vmatmul.msk.f32.gmra.mxu1 %vm549_vm1, %v115_v31  ;;  %v366_v4 = vld [vmem:[%s7228_s0 + $0xb00] sm:$0xff]  ;;  %v116_v32 = vld [vmem:[%s7228_s0 + $0x330] sm:$0xff] }
 0x19a   :  { %v3049_v42 = vmax.f32 %v2596_v39, 0.0  ;;  %v2218_v43 = vadd.f32 %v4773_v50, %v1433_v40  ;;  %1479 = vmatmul.f32.gmra.mxu0 %v108_v36  ;;  %1860 = vmatmul.f32.gmra.mxu2 %v362_v37  ;;  %v375_v37 = vld [vmem:[%s7228_s0 + $0xb48] sm:$0xff] }
 0x19b   :  { %3586 = vmatmul.msk.f32.gmra.mxu3 %vm549_vm1, %v367_v41 }
 0x19c   :  { %3306 = vst.msk [vmem:[%s7230_s3 + $0x4e8] sm:$0xff] %vm3148_vm2, %v3049_v42  ;;  %v2923_v44 = vmax.f32 %v2218_v43, 0.0 }
 0x19d   :  { %v1813_v45 = vpop.f32.mrf.mxu2  ;;  %v4881_v47 = vpop.f32.mrf.mxu1 }
 0x19e   :  { %3180 = vst.msk [vmem:[%s7230_s3 + $0xf8] sm:$0xff] %vm3148_vm2, %v2923_v44  ;;  %v1814_v49 = vadd.f32 %v4733_v27, %v1813_v45  ;;  %v2604_v50 = vpop.f32.mrf.mxu3  ;;  %v125_v44 = vld [vmem:[%s7228_s0 + $0x378] sm:$0xff] }
 0x19f   :  { %v1435_v51 = vpop.f32.mrf.mxu0 }
 0x1a0   :  { %v2599_v54 = vadd.f32 %v2598_v18, %v1814_v49  ;;  %v1436_v55 = vadd.f32 %v4733_v27, %v1435_v51  ;;  %3461 = vmatmul.msk.f32.gmra.mxu1 %vm549_vm1, %v117_v48  ;;  %v368_v18 = vld [vmem:[%s7228_s0 + $0xb10] sm:$0xff]  ;;  %v118_v49 = vld [vmem:[%s7228_s0 + $0x340] sm:$0xff] }
 0x1a2   :  { %v3050_v58 = vmax.f32 %v2599_v54, 0.0  ;;  %v2221_v59 = vadd.f32 %v4800_v1, %v1436_v55  ;;  %1482 = vmatmul.f32.gmra.mxu0 %v110_v52  ;;  %1863 = vmatmul.f32.gmra.mxu2 %v364_v53  ;;  %v377_v53 = vld [vmem:[%s7228_s0 + $0xb58] sm:$0xff] }
 0x1a3   :  { %3587 = vmatmul.msk.f32.gmra.mxu3 %vm549_vm1, %v369_v56 }
 0x1a4   :  { %3307 = vst.msk [vmem:[%s7230_s3 + $0x4f0] sm:$0xff] %vm3148_vm2, %v3050_v58  ;;  %v2924_v60 = vmax.f32 %v2221_v59, 0.0 }
 0x1a5   :  { %v1816_v61 = vpop.f32.mrf.mxu2  ;;  %v4908_v62 = vpop.f32.mrf.mxu1 }
 0x1a6   :  { %3181 = vst.msk [vmem:[%s7230_s3 + $0x100] sm:$0xff] %vm3148_vm2, %v2924_v60  ;;  %v1817_v0 = vadd.f32 %v4733_v27, %v1816_v61  ;;  %v2607_v1 = vpop.f32.mrf.mxu3  ;;  %v127_v60 = vld [vmem:[%s7228_s0 + $0x388] sm:$0xff] }
 0x1a7   :  { %v1438_v2 = vpop.f32.mrf.mxu0 }
 0x1a8   :  { %v2602_v5 = vadd.f32 %v2601_v33, %v1817_v0  ;;  %v1439_v6 = vadd.f32 %v4733_v27, %v1438_v2  ;;  %3462 = vmatmul.msk.f32.gmra.mxu1 %vm549_vm1, %v119_v63  ;;  %v370_v33 = vld [vmem:[%s7228_s0 + $0xb20] sm:$0xff]  ;;  %v120_v0 = vld [vmem:[%s7228_s0 + $0x350] sm:$0xff] }
 0x1aa   :  { %v3051_v8 = vmax.f32 %v2602_v5, 0.0  ;;  %v2224_v9 = vadd.f32 %v4827_v15, %v1439_v6  ;;  %1485 = vmatmul.f32.gmra.mxu0 %v112_v3  ;;  %1866 = vmatmul.f32.gmra.mxu2 %v366_v4  ;;  %v379_v4 = vld [vmem:[%s7228_s0 + $0xb68] sm:$0xff] }
 0x1ab   :  { %3588 = vmatmul.msk.f32.gmra.mxu3 %vm549_vm1, %v371_v7 }
 0x1ac   :  { %3308 = vst.msk [vmem:[%s7230_s3 + $0x4f8] sm:$0xff] %vm3148_vm2, %v3051_v8  ;;  %v2925_v10 = vmax.f32 %v2224_v9, 0.0 }
 0x1ad   :  { %v1819_v11 = vpop.f32.mrf.mxu2  ;;  %v4935_v12 = vpop.f32.mrf.mxu1 }
 0x1ae   :  { %3182 = vst.msk [vmem:[%s7230_s3 + $0x108] sm:$0xff] %vm3148_vm2, %v2925_v10  ;;  %v1820_v14 = vadd.f32 %v4733_v27, %v1819_v11  ;;  %v2610_v15 = vpop.f32.mrf.mxu3  ;;  %v129_v10 = vld [vmem:[%s7228_s0 + $0x398] sm:$0xff] }
 0x1af   :  { %v1441_v16 = vpop.f32.mrf.mxu0 }
 0x1b0   :  { %v2605_v19 = vadd.f32 %v2604_v50, %v1820_v14  ;;  %v1442_v20 = vadd.f32 %v4733_v27, %v1441_v16  ;;  %3463 = vmatmul.msk.f32.gmra.mxu1 %vm549_vm1, %v121_v13  ;;  %v372_v50 = vld [vmem:[%s7228_s0 + $0xb30] sm:$0xff]  ;;  %v122_v14 = vld [vmem:[%s7228_s0 + $0x360] sm:$0xff] }
 0x1b2   :  { %v3052_v22 = vmax.f32 %v2605_v19, 0.0  ;;  %v2227_v23 = vadd.f32 %v4854_v30, %v1442_v20  ;;  %1488 = vmatmul.f32.gmra.mxu0 %v114_v17  ;;  %1869 = vmatmul.f32.gmra.mxu2 %v368_v18  ;;  %v381_v18 = vld [vmem:[%s7228_s0 + $0xb78] sm:$0xff] }
 0x1b3   :  { %3589 = vmatmul.msk.f32.gmra.mxu3 %vm549_vm1, %v373_v21 }
 0x1b4   :  { %3309 = vst.msk [vmem:[%s7230_s3 + $0x500] sm:$0xff] %vm3148_vm2, %v3052_v22  ;;  %v2926_v24 = vmax.f32 %v2227_v23, 0.0 }
 0x1b5   :  { %v1822_v26 = vpop.f32.mrf.mxu2  ;;  %v4962_v28 = vpop.f32.mrf.mxu1 }
 0x1b6   :  { %3183 = vst.msk [vmem:[%s7230_s3 + $0x110] sm:$0xff] %vm3148_vm2, %v2926_v24  ;;  %v1823_v29 = vadd.f32 %v4733_v27, %v1822_v26  ;;  %v2613_v30 = vpop.f32.mrf.mxu3  ;;  %v131_v24 = vld [vmem:[%s7228_s0 + $0x3a8] sm:$0xff] }
 0x1b7   :  { %v1444_v31 = vpop.f32.mrf.mxu0 }
 0x1b8   :  { %v2608_v34 = vadd.f32 %v2607_v1, %v1823_v29  ;;  %v1445_v36 = vadd.f32 %v4733_v27, %v1444_v31  ;;  %3464 = vmatmul.msk.f32.gmra.mxu1 %vm549_vm1, %v123_v25  ;;  %v374_v1 = vld [vmem:[%s7228_s0 + $0xb40] sm:$0xff]  ;;  %v124_v29 = vld [vmem:[%s7228_s0 + $0x370] sm:$0xff] }
 0x1ba   :  { %v3053_v39 = vmax.f32 %v2608_v34, 0.0  ;;  %v2230_v40 = vadd.f32 %v4881_v47, %v1445_v36  ;;  %1491 = vmatmul.f32.gmra.mxu0 %v116_v32  ;;  %1872 = vmatmul.f32.gmra.mxu2 %v370_v33  ;;  %v383_v33 = vld [vmem:[%s7228_s0 + $0xb88] sm:$0xff] }
 0x1bb   :  { %3590 = vmatmul.msk.f32.gmra.mxu3 %vm549_vm1, %v375_v37 }
 0x1bc   :  { %3310 = vst.msk [vmem:[%s7230_s3 + $0x508] sm:$0xff] %vm3148_vm2, %v3053_v39  ;;  %v2927_v41 = vmax.f32 %v2230_v40, 0.0 }
 0x1bd   :  { %v1825_v42 = vpop.f32.mrf.mxu2  ;;  %v4989_v43 = vpop.f32.mrf.mxu1 }
 0x1be   :  { %3184 = vst.msk [vmem:[%s7230_s3 + $0x118] sm:$0xff] %vm3148_vm2, %v2927_v41  ;;  %v1826_v45 = vadd.f32 %v4733_v27, %v1825_v42  ;;  %v2616_v47 = vpop.f32.mrf.mxu3  ;;  %v133_v41 = vld [vmem:[%s7228_s0 + $0x3b8] sm:$0xff] }
 0x1bf   :  { %v1447_v48 = vpop.f32.mrf.mxu0 }
 0x1c0   :  { %v2611_v51 = vadd.f32 %v2610_v15, %v1826_v45  ;;  %v1448_v52 = vadd.f32 %v4733_v27, %v1447_v48  ;;  %3465 = vmatmul.msk.f32.gmra.mxu1 %vm549_vm1, %v125_v44  ;;  %v376_v15 = vld [vmem:[%s7228_s0 + $0xb50] sm:$0xff]  ;;  %v126_v45 = vld [vmem:[%s7228_s0 + $0x380] sm:$0xff] }
 0x1c2   :  { %v3054_v54 = vmax.f32 %v2611_v51, 0.0  ;;  %v2233_v55 = vadd.f32 %v4908_v62, %v1448_v52  ;;  %1494 = vmatmul.f32.gmra.mxu0 %v118_v49  ;;  %1875 = vmatmul.f32.gmra.mxu2 %v372_v50  ;;  %v385_v50 = vld [vmem:[%s7228_s0 + $0xb98] sm:$0xff] }
 0x1c3   :  { %3591 = vmatmul.msk.f32.gmra.mxu3 %vm549_vm1, %v377_v53 }
 0x1c4   :  { %3311 = vst.msk [vmem:[%s7230_s3 + $0x510] sm:$0xff] %vm3148_vm2, %v3054_v54  ;;  %v2928_v56 = vmax.f32 %v2233_v55, 0.0 }
 0x1c5   :  { %v1828_v58 = vpop.f32.mrf.mxu2  ;;  %v5016_v59 = vpop.f32.mrf.mxu1 }
 0x1c6   :  { %3185 = vst.msk [vmem:[%s7230_s3 + $0x120] sm:$0xff] %vm3148_vm2, %v2928_v56  ;;  %v1829_v61 = vadd.f32 %v4733_v27, %v1828_v58  ;;  %v2619_v62 = vpop.f32.mrf.mxu3  ;;  %v135_v56 = vld [vmem:[%s7228_s0 + $0x3c8] sm:$0xff] }
 0x1c7   :  { %v1450_v63 = vpop.f32.mrf.mxu0 }
 0x1c8   :  { %v2614_v2 = vadd.f32 %v2613_v30, %v1829_v61  ;;  %v1451_v3 = vadd.f32 %v4733_v27, %v1450_v63  ;;  %3466 = vmatmul.msk.f32.gmra.mxu1 %vm549_vm1, %v127_v60  ;;  %v378_v30 = vld [vmem:[%s7228_s0 + $0xb60] sm:$0xff]  ;;  %v128_v61 = vld [vmem:[%s7228_s0 + $0x390] sm:$0xff] }
 0x1ca   :  { %v3055_v5 = vmax.f32 %v2614_v2, 0.0  ;;  %v2236_v6 = vadd.f32 %v4935_v12, %v1451_v3  ;;  %1497 = vmatmul.f32.gmra.mxu0 %v120_v0  ;;  %1878 = vmatmul.f32.gmra.mxu2 %v374_v1  ;;  %v387_v1 = vld [vmem:[%s7228_s0 + $0xba8] sm:$0xff] }
 0x1cb   :  { %3592 = vmatmul.msk.f32.gmra.mxu3 %vm549_vm1, %v379_v4 }
 0x1cc   :  { %3312 = vst.msk [vmem:[%s7230_s3 + $0x518] sm:$0xff] %vm3148_vm2, %v3055_v5  ;;  %v2929_v7 = vmax.f32 %v2236_v6, 0.0 }
 0x1cd   :  { %v1831_v8 = vpop.f32.mrf.mxu2  ;;  %v5043_v9 = vpop.f32.mrf.mxu1 }
 0x1ce   :  { %3186 = vst.msk [vmem:[%s7230_s3 + $0x128] sm:$0xff] %vm3148_vm2, %v2929_v7  ;;  %v1832_v11 = vadd.f32 %v4733_v27, %v1831_v8  ;;  %v2622_v12 = vpop.f32.mrf.mxu3  ;;  %v137_v7 = vld [vmem:[%s7228_s0 + $0x3d8] sm:$0xff] }
 0x1cf   :  { %v1453_v13 = vpop.f32.mrf.mxu0 }
 0x1d0   :  { %v2617_v16 = vadd.f32 %v2616_v47, %v1832_v11  ;;  %v1454_v17 = vadd.f32 %v4733_v27, %v1453_v13  ;;  %3467 = vmatmul.msk.f32.gmra.mxu1 %vm549_vm1, %v129_v10  ;;  %v380_v47 = vld [vmem:[%s7228_s0 + $0xb70] sm:$0xff]  ;;  %v130_v11 = vld [vmem:[%s7228_s0 + $0x3a0] sm:$0xff] }
 0x1d2   :  { %v3056_v19 = vmax.f32 %v2617_v16, 0.0  ;;  %v2239_v20 = vadd.f32 %v4962_v28, %v1454_v17  ;;  %1500 = vmatmul.f32.gmra.mxu0 %v122_v14  ;;  %1881 = vmatmul.f32.gmra.mxu2 %v376_v15  ;;  %v389_v15 = vld [vmem:[%s7228_s0 + $0xbb8] sm:$0xff] }
 0x1d3   :  { %3593 = vmatmul.msk.f32.gmra.mxu3 %vm549_vm1, %v381_v18 }
 0x1d4   :  { %3313 = vst.msk [vmem:[%s7230_s3 + $0x520] sm:$0xff] %vm3148_vm2, %v3056_v19  ;;  %v2930_v21 = vmax.f32 %v2239_v20, 0.0 }
 0x1d5   :  { %v1834_v22 = vpop.f32.mrf.mxu2  ;;  %v5070_v23 = vpop.f32.mrf.mxu1 }
 0x1d6   :  { %3187 = vst.msk [vmem:[%s7230_s3 + $0x130] sm:$0xff] %vm3148_vm2, %v2930_v21  ;;  %v1835_v26 = vadd.f32 %v4733_v27, %v1834_v22  ;;  %v2625_v28 = vpop.f32.mrf.mxu3  ;;  %v139_v21 = vld [vmem:[%s7228_s0 + $0x3e8] sm:$0xff] }
 0x1d7   :  { %v1456_v25 = vpop.f32.mrf.mxu0 }
 0x1d8   :  { %v2620_v31 = vadd.f32 %v2619_v62, %v1835_v26  ;;  %v1457_v32 = vadd.f32 %v4733_v27, %v1456_v25  ;;  %3468 = vmatmul.msk.f32.gmra.mxu1 %vm549_vm1, %v131_v24  ;;  %v382_v62 = vld [vmem:[%s7228_s0 + $0xb80] sm:$0xff]  ;;  %v132_v26 = vld [vmem:[%s7228_s0 + $0x3b0] sm:$0xff] }
 0x1da   :  { %v3057_v34 = vmax.f32 %v2620_v31, 0.0  ;;  %v2242_v36 = vadd.f32 %v4989_v43, %v1457_v32  ;;  %1503 = vmatmul.f32.gmra.mxu0 %v124_v29  ;;  %1884 = vmatmul.f32.gmra.mxu2 %v378_v30  ;;  %v391_v30 = vld [vmem:[%s7228_s0 + $0xbc8] sm:$0xff] }
 0x1db   :  { %3594 = vmatmul.msk.f32.gmra.mxu3 %vm549_vm1, %v383_v33 }
 0x1dc   :  { %3314 = vst.msk [vmem:[%s7230_s3 + $0x528] sm:$0xff] %vm3148_vm2, %v3057_v34  ;;  %v2931_v37 = vmax.f32 %v2242_v36, 0.0 }
 0x1dd   :  { %v1837_v39 = vpop.f32.mrf.mxu2  ;;  %v5097_v40 = vpop.f32.mrf.mxu1 }
 0x1de   :  { %3188 = vst.msk [vmem:[%s7230_s3 + $0x138] sm:$0xff] %vm3148_vm2, %v2931_v37  ;;  %v1838_v42 = vadd.f32 %v4733_v27, %v1837_v39  ;;  %v2628_v43 = vpop.f32.mrf.mxu3  ;;  %v141_v37 = vld [vmem:[%s7228_s0 + $0x3f8] sm:$0xff] }
 0x1df   :  { %v1459_v44 = vpop.f32.mrf.mxu0 }
 0x1e0   :  { %v2623_v48 = vadd.f32 %v2622_v12, %v1838_v42  ;;  %v1460_v49 = vadd.f32 %v4733_v27, %v1459_v44  ;;  %3469 = vmatmul.msk.f32.gmra.mxu1 %vm549_vm1, %v133_v41  ;;  %v384_v12 = vld [vmem:[%s7228_s0 + $0xb90] sm:$0xff]  ;;  %v134_v42 = vld [vmem:[%s7228_s0 + $0x3c0] sm:$0xff] }
 0x1e2   :  { %v3058_v51 = vmax.f32 %v2623_v48, 0.0  ;;  %v2245_v52 = vadd.f32 %v5016_v59, %v1460_v49  ;;  %1506 = vmatmul.f32.gmra.mxu0 %v126_v45  ;;  %1887 = vmatmul.f32.gmra.mxu2 %v380_v47  ;;  %v393_v47 = vld [vmem:[%s7228_s0 + $0xbd8] sm:$0xff] }
 0x1e3   :  { %3595 = vmatmul.msk.f32.gmra.mxu3 %vm549_vm1, %v385_v50 }
 0x1e4   :  { %3315 = vst.msk [vmem:[%s7230_s3 + $0x530] sm:$0xff] %vm3148_vm2, %v3058_v51  ;;  %v2932_v53 = vmax.f32 %v2245_v52, 0.0 }
 0x1e5   :  { %v1840_v54 = vpop.f32.mrf.mxu2  ;;  %v5124_v55 = vpop.f32.mrf.mxu1 }
 0x1e6   :  { %3189 = vst.msk [vmem:[%s7230_s3 + $0x140] sm:$0xff] %vm3148_vm2, %v2932_v53  ;;  %v1841_v58 = vadd.f32 %v4733_v27, %v1840_v54  ;;  %v2631_v59 = vpop.f32.mrf.mxu3  ;;  %v143_v53 = vld [vmem:[%s7228_s0 + $0x408] sm:$0xff] }
 0x1e7   :  { %v1462_v60 = vpop.f32.mrf.mxu0 }
 0x1e8   :  { %v2626_v63 = vadd.f32 %v2625_v28, %v1841_v58  ;;  %v1463_v0 = vadd.f32 %v4733_v27, %v1462_v60  ;;  %3470 = vmatmul.msk.f32.gmra.mxu1 %vm549_vm1, %v135_v56  ;;  %v386_v28 = vld [vmem:[%s7228_s0 + $0xba0] sm:$0xff]  ;;  %v136_v58 = vld [vmem:[%s7228_s0 + $0x3d0] sm:$0xff] }
 0x1ea   :  { %v3059_v2 = vmax.f32 %v2626_v63, 0.0  ;;  %v2248_v3 = vadd.f32 %v5043_v9, %v1463_v0  ;;  %1509 = vmatmul.f32.gmra.mxu0 %v128_v61  ;;  %1890 = vmatmul.f32.gmra.mxu2 %v382_v62  ;;  %v395_v62 = vld [vmem:[%s7228_s0 + $0xbe8] sm:$0xff] }
 0x1eb   :  { %3596 = vmatmul.msk.f32.gmra.mxu3 %vm549_vm1, %v387_v1 }
 0x1ec   :  { %3316 = vst.msk [vmem:[%s7230_s3 + $0x538] sm:$0xff] %vm3148_vm2, %v3059_v2  ;;  %v2933_v4 = vmax.f32 %v2248_v3, 0.0 }
 0x1ed   :  { %v1843_v5 = vpop.f32.mrf.mxu2  ;;  %v5151_v6 = vpop.f32.mrf.mxu1 }
 0x1ee   :  { %3190 = vst.msk [vmem:[%s7230_s3 + $0x148] sm:$0xff] %vm3148_vm2, %v2933_v4  ;;  %v1844_v8 = vadd.f32 %v4733_v27, %v1843_v5  ;;  %v2634_v9 = vpop.f32.mrf.mxu3  ;;  %v145_v4 = vld [vmem:[%s7228_s0 + $0x418] sm:$0xff] }
 0x1ef   :  { %v1465_v10 = vpop.f32.mrf.mxu0 }
 0x1f0   :  { %v2629_v13 = vadd.f32 %v2628_v43, %v1844_v8  ;;  %v1466_v14 = vadd.f32 %v4733_v27, %v1465_v10  ;;  %3471 = vmatmul.msk.f32.gmra.mxu1 %vm549_vm1, %v137_v7  ;;  %v388_v43 = vld [vmem:[%s7228_s0 + $0xbb0] sm:$0xff]  ;;  %v138_v8 = vld [vmem:[%s7228_s0 + $0x3e0] sm:$0xff] }
 0x1f2   :  { %v3060_v16 = vmax.f32 %v2629_v13, 0.0  ;;  %v2251_v17 = vadd.f32 %v5070_v23, %v1466_v14  ;;  %1512 = vmatmul.f32.gmra.mxu0 %v130_v11  ;;  %1893 = vmatmul.f32.gmra.mxu2 %v384_v12  ;;  %v397_v12 = vld [vmem:[%s7228_s0 + $0xbf8] sm:$0xff] }
 0x1f3   :  { %3597 = vmatmul.msk.f32.gmra.mxu3 %vm549_vm1, %v389_v15 }
 0x1f4   :  { %3317 = vst.msk [vmem:[%s7230_s3 + $0x540] sm:$0xff] %vm3148_vm2, %v3060_v16  ;;  %v2934_v18 = vmax.f32 %v2251_v17, 0.0 }
 0x1f5   :  { %v1846_v19 = vpop.f32.mrf.mxu2  ;;  %v5178_v20 = vpop.f32.mrf.mxu1 }
 0x1f6   :  { %3191 = vst.msk [vmem:[%s7230_s3 + $0x150] sm:$0xff] %vm3148_vm2, %v2934_v18  ;;  %v1847_v22 = vadd.f32 %v4733_v27, %v1846_v19  ;;  %v2637_v23 = vpop.f32.mrf.mxu3  ;;  %v147_v18 = vld [vmem:[%s7228_s0 + $0x428] sm:$0xff] }
 0x1f7   :  { %v1468_v24 = vpop.f32.mrf.mxu0 }
 0x1f8   :  { %v2632_v25 = vadd.f32 %v2631_v59, %v1847_v22  ;;  %v1469_v29 = vadd.f32 %v4733_v27, %v1468_v24  ;;  %3472 = vmatmul.msk.f32.gmra.mxu1 %vm549_vm1, %v139_v21  ;;  %v390_v59 = vld [vmem:[%s7228_s0 + $0xbc0] sm:$0xff]  ;;  %v140_v22 = vld [vmem:[%s7228_s0 + $0x3f0] sm:$0xff] }
 0x1fa   :  { %v3061_v31 = vmax.f32 %v2632_v25, 0.0  ;;  %v2254_v32 = vadd.f32 %v5097_v40, %v1469_v29  ;;  %1515 = vmatmul.f32.gmra.mxu0 %v132_v26  ;;  %1896 = vmatmul.f32.gmra.mxu2 %v386_v28  ;;  %v399_v28 = vld [vmem:[%s7228_s0 + $0xc08] sm:$0xff] }
 0x1fb   :  { %3598 = vmatmul.msk.f32.gmra.mxu3 %vm549_vm1, %v391_v30 }
 0x1fc   :  { %3318 = vst.msk [vmem:[%s7230_s3 + $0x548] sm:$0xff] %vm3148_vm2, %v3061_v31  ;;  %v2935_v33 = vmax.f32 %v2254_v32, 0.0 }
 0x1fd   :  { %v1849_v34 = vpop.f32.mrf.mxu2  ;;  %v5205_v36 = vpop.f32.mrf.mxu1 }
 0x1fe   :  { %3192 = vst.msk [vmem:[%s7230_s3 + $0x158] sm:$0xff] %vm3148_vm2, %v2935_v33  ;;  %v1850_v39 = vadd.f32 %v4733_v27, %v1849_v34  ;;  %v2640_v40 = vpop.f32.mrf.mxu3  ;;  %v149_v33 = vld [vmem:[%s7228_s0 + $0x438] sm:$0xff] }
 0x1ff   :  { %v1471_v41 = vpop.f32.mrf.mxu0 }
 0x200   :  { %v2635_v44 = vadd.f32 %v2634_v9, %v1850_v39  ;;  %v1472_v45 = vadd.f32 %v4733_v27, %v1471_v41  ;;  %3473 = vmatmul.msk.f32.gmra.mxu1 %vm549_vm1, %v141_v37  ;;  %v392_v9 = vld [vmem:[%s7228_s0 + $0xbd0] sm:$0xff]  ;;  %v142_v39 = vld [vmem:[%s7228_s0 + $0x400] sm:$0xff] }
 0x202   :  { %v3062_v48 = vmax.f32 %v2635_v44, 0.0  ;;  %v2257_v49 = vadd.f32 %v5124_v55, %v1472_v45  ;;  %1518 = vmatmul.f32.gmra.mxu0 %v134_v42  ;;  %1899 = vmatmul.f32.gmra.mxu2 %v388_v43  ;;  %v401_v43 = vld [vmem:[%s7228_s0 + $0xc18] sm:$0xff] }
 0x203   :  { %3599 = vmatmul.msk.f32.gmra.mxu3 %vm549_vm1, %v393_v47 }
 0x204   :  { %3319 = vst.msk [vmem:[%s7230_s3 + $0x550] sm:$0xff] %vm3148_vm2, %v3062_v48  ;;  %v2936_v50 = vmax.f32 %v2257_v49, 0.0 }
 0x205   :  { %v1852_v51 = vpop.f32.mrf.mxu2  ;;  %v5232_v52 = vpop.f32.mrf.mxu1 }
 0x206   :  { %3193 = vst.msk [vmem:[%s7230_s3 + $0x160] sm:$0xff] %vm3148_vm2, %v2936_v50  ;;  %v1853_v54 = vadd.f32 %v4733_v27, %v1852_v51  ;;  %v2643_v55 = vpop.f32.mrf.mxu3  ;;  %v151_v50 = vld [vmem:[%s7228_s0 + $0x448] sm:$0xff] }
 0x207   :  { %v1474_v56 = vpop.f32.mrf.mxu0 }
 0x208   :  { %v2638_v60 = vadd.f32 %v2637_v23, %v1853_v54  ;;  %v1475_v61 = vadd.f32 %v4733_v27, %v1474_v56  ;;  %3474 = vmatmul.msk.f32.gmra.mxu1 %vm549_vm1, %v143_v53  ;;  %v394_v23 = vld [vmem:[%s7228_s0 + $0xbe0] sm:$0xff]  ;;  %v144_v54 = vld [vmem:[%s7228_s0 + $0x410] sm:$0xff] }
 0x20a   :  { %v3063_v63 = vmax.f32 %v2638_v60, 0.0  ;;  %v2260_v0 = vadd.f32 %v5151_v6, %v1475_v61  ;;  %1521 = vmatmul.f32.gmra.mxu0 %v136_v58  ;;  %1902 = vmatmul.f32.gmra.mxu2 %v390_v59  ;;  %v403_v59 = vld [vmem:[%s7228_s0 + $0xc28] sm:$0xff] }
 0x20b   :  { %3600 = vmatmul.msk.f32.gmra.mxu3 %vm549_vm1, %v395_v62 }
 0x20c   :  { %3320 = vst.msk [vmem:[%s7230_s3 + $0x558] sm:$0xff] %vm3148_vm2, %v3063_v63  ;;  %v2937_v1 = vmax.f32 %v2260_v0, 0.0 }
 0x20d   :  { %v1855_v2 = vpop.f32.mrf.mxu2  ;;  %v5259_v3 = vpop.f32.mrf.mxu1 }
 0x20e   :  { %3194 = vst.msk [vmem:[%s7230_s3 + $0x168] sm:$0xff] %vm3148_vm2, %v2937_v1  ;;  %v1856_v5 = vadd.f32 %v4733_v27, %v1855_v2  ;;  %v2646_v6 = vpop.f32.mrf.mxu3  ;;  %v153_v1 = vld [vmem:[%s7228_s0 + $0x458] sm:$0xff] }
 0x20f   :  { %v1477_v7 = vpop.f32.mrf.mxu0 }
 0x210   :  { %v2641_v10 = vadd.f32 %v2640_v40, %v1856_v5  ;;  %v1478_v11 = vadd.f32 %v4733_v27, %v1477_v7  ;;  %3475 = vmatmul.msk.f32.gmra.mxu1 %vm549_vm1, %v145_v4  ;;  %v396_v40 = vld [vmem:[%s7228_s0 + $0xbf0] sm:$0xff]  ;;  %v146_v5 = vld [vmem:[%s7228_s0 + $0x420] sm:$0xff] }
 0x212   :  { %v3064_v13 = vmax.f32 %v2641_v10, 0.0  ;;  %v2263_v14 = vadd.f32 %v5178_v20, %v1478_v11  ;;  %1524 = vmatmul.f32.gmra.mxu0 %v138_v8  ;;  %1905 = vmatmul.f32.gmra.mxu2 %v392_v9  ;;  %v405_v9 = vld [vmem:[%s7228_s0 + $0xc38] sm:$0xff] }
 0x213   :  { %3601 = vmatmul.msk.f32.gmra.mxu3 %vm549_vm1, %v397_v12 }
 0x214   :  { %3321 = vst.msk [vmem:[%s7230_s3 + $0x560] sm:$0xff] %vm3148_vm2, %v3064_v13  ;;  %v2938_v15 = vmax.f32 %v2263_v14, 0.0 }
 0x215   :  { %v1858_v16 = vpop.f32.mrf.mxu2  ;;  %v5286_v17 = vpop.f32.mrf.mxu1 }
 0x216   :  { %3195 = vst.msk [vmem:[%s7230_s3 + $0x170] sm:$0xff] %vm3148_vm2, %v2938_v15  ;;  %v1859_v19 = vadd.f32 %v4733_v27, %v1858_v16  ;;  %v2649_v20 = vpop.f32.mrf.mxu3  ;;  %v155_v15 = vld [vmem:[%s7228_s0 + $0x468] sm:$0xff] }
 0x217   :  { %v1480_v21 = vpop.f32.mrf.mxu0 }
 0x218   :  { %v2644_v24 = vadd.f32 %v2643_v55, %v1859_v19  ;;  %v1481_v26 = vadd.f32 %v4733_v27, %v1480_v21  ;;  %3476 = vmatmul.msk.f32.gmra.mxu1 %vm549_vm1, %v147_v18  ;;  %v398_v55 = vld [vmem:[%s7228_s0 + $0xc00] sm:$0xff]  ;;  %v148_v19 = vld [vmem:[%s7228_s0 + $0x430] sm:$0xff] }
 0x21a   :  { %v3065_v25 = vmax.f32 %v2644_v24, 0.0  ;;  %v2266_v29 = vadd.f32 %v5205_v36, %v1481_v26  ;;  %1527 = vmatmul.f32.gmra.mxu0 %v140_v22  ;;  %1908 = vmatmul.f32.gmra.mxu2 %v394_v23  ;;  %v407_v23 = vld [vmem:[%s7228_s0 + $0xc48] sm:$0xff] }
 0x21b   :  { %3602 = vmatmul.msk.f32.gmra.mxu3 %vm549_vm1, %v399_v28 }
 0x21c   :  { %3322 = vst.msk [vmem:[%s7230_s3 + $0x568] sm:$0xff] %vm3148_vm2, %v3065_v25  ;;  %v2939_v30 = vmax.f32 %v2266_v29, 0.0  ;;  %v157_v29 = vld [vmem:[%s7228_s0 + $0x478] sm:$0xff] }
 0x21d   :  { %v1861_v31 = vpop.f32.mrf.mxu2  ;;  %v5313_v32 = vpop.f32.mrf.mxu1 }
 0x21e   :  { %3196 = vst.msk [vmem:[%s7230_s3 + $0x178] sm:$0xff] %vm3148_vm2, %v2939_v30  ;;  %v1862_v34 = vadd.f32 %v4733_v27, %v1861_v31  ;;  %v2652_v36 = vpop.f32.mrf.mxu3  ;;  %v5433_v30 = vld [vmem:[%s7229_s2] ss:$0 sm:$0xff] }
 0x21f   :  { %v1483_v37 = vpop.f32.mrf.mxu0 }
 0x220   :  { %v2647_v41 = vadd.f32 %v2646_v6, %v1862_v34  ;;  %v1484_v42 = vadd.f32 %v4733_v27, %v1483_v37  ;;  %3477 = vmatmul.msk.f32.gmra.mxu1 %vm549_vm1, %v149_v33  ;;  %v400_v6 = vld [vmem:[%s7228_s0 + $0xc10] sm:$0xff]  ;;  %v150_v34 = vld [vmem:[%s7228_s0 + $0x440] sm:$0xff] }
 0x222   :  { %v3066_v44 = vmax.f32 %v2647_v41, 0.0  ;;  %v2269_v45 = vadd.f32 %v5232_v52, %v1484_v42  ;;  %1530 = vmatmul.f32.gmra.mxu0 %v142_v39  ;;  %1911 = vmatmul.f32.gmra.mxu2 %v396_v40  ;;  %v409_v40 = vld [vmem:[%s7228_s0 + $0xc58] sm:$0xff] }
 0x223   :  { %3603 = vmatmul.msk.f32.gmra.mxu3 %vm549_vm1, %v401_v43 }
 0x224   :  { %3323 = vst.msk [vmem:[%s7230_s3 + $0x570] sm:$0xff] %vm3148_vm2, %v3066_v44  ;;  %v2940_v47 = vmax.f32 %v2269_v45, 0.0 }
 0x225   :  { %v1864_v48 = vpop.f32.mrf.mxu2  ;;  %v5340_v49 = vpop.f32.mrf.mxu1 }
 0x226   :  { %3197 = vst.msk [vmem:[%s7230_s3 + $0x180] sm:$0xff] %vm3148_vm2, %v2940_v47  ;;  %v1865_v51 = vadd.f32 %v4733_v27, %v1864_v48  ;;  %v2655_v52 = vpop.f32.mrf.mxu3  ;;  %v159_v47 = vld [vmem:[%s7228_s0 + $0x488] sm:$0xff] }
 0x227   :  { %v1486_v53 = vpop.f32.mrf.mxu0 }
 0x228   :  { %v2650_v56 = vadd.f32 %v2649_v20, %v1865_v51  ;;  %v1487_v58 = vadd.f32 %v4733_v27, %v1486_v53  ;;  %3478 = vmatmul.msk.f32.gmra.mxu1 %vm549_vm1, %v151_v50  ;;  %v402_v20 = vld [vmem:[%s7228_s0 + $0xc20] sm:$0xff]  ;;  %v152_v51 = vld [vmem:[%s7228_s0 + $0x450] sm:$0xff] }
 0x22a   :  { %v3067_v60 = vmax.f32 %v2650_v56, 0.0  ;;  %v2272_v61 = vadd.f32 %v5259_v3, %v1487_v58  ;;  %1533 = vmatmul.f32.gmra.mxu0 %v144_v54  ;;  %1914 = vmatmul.f32.gmra.mxu2 %v398_v55  ;;  %v411_v55 = vld [vmem:[%s7228_s0 + $0xc68] sm:$0xff] }
 0x22b   :  { %3604 = vmatmul.msk.f32.gmra.mxu3 %vm549_vm1, %v403_v59 }
 0x22c   :  { %3324 = vst.msk [vmem:[%s7230_s3 + $0x578] sm:$0xff] %vm3148_vm2, %v3067_v60  ;;  %v2941_v62 = vmax.f32 %v2272_v61, 0.0 }
 0x22d   :  { %v1867_v63 = vpop.f32.mrf.mxu2  ;;  %v5367_v0 = vpop.f32.mrf.mxu1 }
 0x22e   :  { %3198 = vst.msk [vmem:[%s7230_s3 + $0x188] sm:$0xff] %vm3148_vm2, %v2941_v62  ;;  %v1868_v2 = vadd.f32 %v4733_v27, %v1867_v63  ;;  %v2658_v3 = vpop.f32.mrf.mxu3  ;;  %v161_v62 = vld [vmem:[%s7228_s0 + $0x498] sm:$0xff] }
 0x22f   :  { %v1489_v4 = vpop.f32.mrf.mxu0 }
 0x230   :  { %v2653_v7 = vadd.f32 %v2652_v36, %v1868_v2  ;;  %v1490_v8 = vadd.f32 %v4733_v27, %v1489_v4  ;;  %3479 = vmatmul.msk.f32.gmra.mxu1 %vm549_vm1, %v153_v1  ;;  %v404_v36 = vld [vmem:[%s7228_s0 + $0xc30] sm:$0xff]  ;;  %v154_v2 = vld [vmem:[%s7228_s0 + $0x460] sm:$0xff] }
 0x232   :  { %v3068_v10 = vmax.f32 %v2653_v7, 0.0  ;;  %v2275_v11 = vadd.f32 %v5286_v17, %v1490_v8  ;;  %1536 = vmatmul.f32.gmra.mxu0 %v146_v5  ;;  %1917 = vmatmul.f32.gmra.mxu2 %v400_v6  ;;  %v413_v6 = vld [vmem:[%s7228_s0 + $0xc78] sm:$0xff] }
 0x233   :  { %3605 = vmatmul.msk.f32.gmra.mxu3 %vm549_vm1, %v405_v9 }
 0x234   :  { %3325 = vst.msk [vmem:[%s7230_s3 + $0x580] sm:$0xff] %vm3148_vm2, %v3068_v10  ;;  %v2942_v12 = vmax.f32 %v2275_v11, 0.0 }
 0x235   :  { %v1870_v13 = vpop.f32.mrf.mxu2  ;;  %v5394_v14 = vpop.f32.mrf.mxu1 }
 0x236   :  { %3199 = vst.msk [vmem:[%s7230_s3 + $0x190] sm:$0xff] %vm3148_vm2, %v2942_v12  ;;  %v1871_v16 = vadd.f32 %v4733_v27, %v1870_v13  ;;  %v2661_v17 = vpop.f32.mrf.mxu3  ;;  %v163_v12 = vld [vmem:[%s7228_s0 + $0x4a8] sm:$0xff] }
 0x237   :  { %v1492_v18 = vpop.f32.mrf.mxu0 }
 0x238   :  { %v2656_v21 = vadd.f32 %v2655_v52, %v1871_v16  ;;  %v1493_v22 = vadd.f32 %v4733_v27, %v1492_v18  ;;  %3480 = vmatmul.msk.f32.gmra.mxu1 %vm549_vm1, %v155_v15  ;;  %v406_v52 = vld [vmem:[%s7228_s0 + $0xc40] sm:$0xff]  ;;  %v156_v16 = vld [vmem:[%s7228_s0 + $0x470] sm:$0xff] }
 0x23a   :  { %v3069_v24 = vmax.f32 %v2656_v21, 0.0  ;;  %v2278_v26 = vadd.f32 %v5313_v32, %v1493_v22  ;;  %1539 = vmatmul.f32.gmra.mxu0 %v148_v19  ;;  %1920 = vmatmul.f32.gmra.mxu2 %v402_v20  ;;  %v415_v20 = vld [vmem:[%s7228_s0 + $0xc88] sm:$0xff] }
 0x23b   :  { %3606 = vmatmul.msk.f32.gmra.mxu3 %vm549_vm1, %v407_v23 }
 0x23c   :  { %3326 = vst.msk [vmem:[%s7230_s3 + $0x588] sm:$0xff] %vm3148_vm2, %v3069_v24  ;;  %v2943_v28 = vmax.f32 %v2278_v26, 0.0 }
 0x23d   :  { %v1873_v27 = vpop.f32.mrf.mxu2  ;;  %v5421_v25 = vpop.f32.mrf.mxu1 }
 0x23e   :  { %3200 = vst.msk [vmem:[%s7230_s3 + $0x198] sm:$0xff] %vm3148_vm2, %v2943_v28  ;;  %v1874_v31 = vadd.f32 %v5433_v30, %v1873_v27  ;;  %v2664_v32 = vpop.f32.mrf.mxu3  ;;  %v165_v28 = vld [vmem:[%s7228_s0 + $0x4b8] sm:$0xff] }
 0x23f   :  { %v1495_v33 = vpop.f32.mrf.mxu0 }
 0x240   :  { %v2659_v37 = vadd.f32 %v2658_v3, %v1874_v31  ;;  %v1496_v39 = vadd.f32 %v5433_v30, %v1495_v33  ;;  %3481 = vmatmul.msk.f32.gmra.mxu1 %vm549_vm1, %v157_v29  ;;  %v408_v3 = vld [vmem:[%s7228_s0 + $0xc50] sm:$0xff]  ;;  %v158_v31 = vld [vmem:[%s7228_s0 + $0x480] sm:$0xff] }
 0x242   :  { %v3070_v41 = vmax.f32 %v2659_v37, 0.0  ;;  %v2281_v42 = vadd.f32 %v5340_v49, %v1496_v39  ;;  %1542 = vmatmul.f32.gmra.mxu0 %v150_v34  ;;  %1923 = vmatmul.f32.gmra.mxu2 %v404_v36  ;;  %v417_v36 = vld [vmem:[%s7228_s0 + $0xc98] sm:$0xff] }
 0x243   :  { %3607 = vmatmul.msk.f32.gmra.mxu3 %vm549_vm1, %v409_v40 }
 0x244   :  { %3327 = vst.msk [vmem:[%s7230_s3 + $0x590] sm:$0xff] %vm3148_vm2, %v3070_v41  ;;  %v2944_v43 = vmax.f32 %v2281_v42, 0.0 }
 0x245   :  { %v1876_v44 = vpop.f32.mrf.mxu2  ;;  %v5453_v45 = vpop.f32.mrf.mxu1 }
 0x246   :  { %3201 = vst.msk [vmem:[%s7230_s3 + $0x1a0] sm:$0xff] %vm3148_vm2, %v2944_v43  ;;  %v1877_v48 = vadd.f32 %v5433_v30, %v1876_v44  ;;  %v2667_v49 = vpop.f32.mrf.mxu3  ;;  %v167_v43 = vld [vmem:[%s7228_s0 + $0x4c8] sm:$0xff] }
 0x247   :  { %v1498_v50 = vpop.f32.mrf.mxu0 }
 0x248   :  { %v2662_v53 = vadd.f32 %v2661_v17, %v1877_v48  ;;  %v1499_v54 = vadd.f32 %v5433_v30, %v1498_v50  ;;  %3482 = vmatmul.msk.f32.gmra.mxu1 %vm549_vm1, %v159_v47  ;;  %v410_v17 = vld [vmem:[%s7228_s0 + $0xc60] sm:$0xff]  ;;  %v160_v48 = vld [vmem:[%s7228_s0 + $0x490] sm:$0xff] }
 0x24a   :  { %v3071_v56 = vmax.f32 %v2662_v53, 0.0  ;;  %v2284_v58 = vadd.f32 %v5367_v0, %v1499_v54  ;;  %1545 = vmatmul.f32.gmra.mxu0 %v152_v51  ;;  %1926 = vmatmul.f32.gmra.mxu2 %v406_v52  ;;  %v419_v52 = vld [vmem:[%s7228_s0 + $0xca8] sm:$0xff] }
 0x24b   :  { %3608 = vmatmul.msk.f32.gmra.mxu3 %vm549_vm1, %v411_v55 }
 0x24c   :  { %3328 = vst.msk [vmem:[%s7230_s3 + $0x598] sm:$0xff] %vm3148_vm2, %v3071_v56  ;;  %v2945_v59 = vmax.f32 %v2284_v58, 0.0 }
 0x24d   :  { %v1879_v60 = vpop.f32.mrf.mxu2  ;;  %v5480_v61 = vpop.f32.mrf.mxu1 }
 0x24e   :  { %3202 = vst.msk [vmem:[%s7230_s3 + $0x1a8] sm:$0xff] %vm3148_vm2, %v2945_v59  ;;  %v1880_v63 = vadd.f32 %v5433_v30, %v1879_v60  ;;  %v2670_v0 = vpop.f32.mrf.mxu3  ;;  %v169_v59 = vld [vmem:[%s7228_s0 + $0x4d8] sm:$0xff] }
 0x24f   :  { %v1501_v1 = vpop.f32.mrf.mxu0 }
 0x250   :  { %v2665_v4 = vadd.f32 %v2664_v32, %v1880_v63  ;;  %v1502_v5 = vadd.f32 %v5433_v30, %v1501_v1  ;;  %3483 = vmatmul.msk.f32.gmra.mxu1 %vm549_vm1, %v161_v62  ;;  %v412_v32 = vld [vmem:[%s7228_s0 + $0xc70] sm:$0xff]  ;;  %v162_v63 = vld [vmem:[%s7228_s0 + $0x4a0] sm:$0xff] }
 0x252   :  { %v3072_v7 = vmax.f32 %v2665_v4, 0.0  ;;  %v2287_v8 = vadd.f32 %v5394_v14, %v1502_v5  ;;  %1548 = vmatmul.f32.gmra.mxu0 %v154_v2  ;;  %1929 = vmatmul.f32.gmra.mxu2 %v408_v3  ;;  %v421_v3 = vld [vmem:[%s7228_s0 + $0xcb8] sm:$0xff] }
 0x253   :  { %3609 = vmatmul.msk.f32.gmra.mxu3 %vm549_vm1, %v413_v6 }
 0x254   :  { %3329 = vst.msk [vmem:[%s7230_s3 + $0x5a0] sm:$0xff] %vm3148_vm2, %v3072_v7  ;;  %v2946_v9 = vmax.f32 %v2287_v8, 0.0 }
 0x255   :  { %v1882_v10 = vpop.f32.mrf.mxu2  ;;  %v5507_v11 = vpop.f32.mrf.mxu1 }
 0x256   :  { %3203 = vst.msk [vmem:[%s7230_s3 + $0x1b0] sm:$0xff] %vm3148_vm2, %v2946_v9  ;;  %v1883_v13 = vadd.f32 %v5433_v30, %v1882_v10  ;;  %v2673_v14 = vpop.f32.mrf.mxu3  ;;  %v171_v9 = vld [vmem:[%s7228_s0 + $0x4e8] sm:$0xff] }
 0x257   :  { %v1504_v15 = vpop.f32.mrf.mxu0 }
 0x258   :  { %v2668_v18 = vadd.f32 %v2667_v49, %v1883_v13  ;;  %v1505_v19 = vadd.f32 %v5433_v30, %v1504_v15  ;;  %3484 = vmatmul.msk.f32.gmra.mxu1 %vm549_vm1, %v163_v12  ;;  %v414_v49 = vld [vmem:[%s7228_s0 + $0xc80] sm:$0xff]  ;;  %v164_v13 = vld [vmem:[%s7228_s0 + $0x4b0] sm:$0xff] }
 0x25a   :  { %v3073_v21 = vmax.f32 %v2668_v18, 0.0  ;;  %v2290_v22 = vadd.f32 %v5421_v25, %v1505_v19  ;;  %1551 = vmatmul.f32.gmra.mxu0 %v156_v16  ;;  %1932 = vmatmul.f32.gmra.mxu2 %v410_v17  ;;  %v423_v17 = vld [vmem:[%s7228_s0 + $0xcc8] sm:$0xff] }
 0x25b   :  { %3610 = vmatmul.msk.f32.gmra.mxu3 %vm549_vm1, %v415_v20 }
 0x25c   :  { %3330 = vst.msk [vmem:[%s7230_s3 + $0x5a8] sm:$0xff] %vm3148_vm2, %v3073_v21  ;;  %v2947_v23 = vmax.f32 %v2290_v22, 0.0 }
 0x25d   :  { %v1885_v24 = vpop.f32.mrf.mxu2  ;;  %v5534_v26 = vpop.f32.mrf.mxu1 }
 0x25e   :  { %3204 = vst.msk [vmem:[%s7230_s3 + $0x1b8] sm:$0xff] %vm3148_vm2, %v2947_v23  ;;  %v1886_v27 = vadd.f32 %v5433_v30, %v1885_v24  ;;  %v2676_v25 = vpop.f32.mrf.mxu3  ;;  %v173_v23 = vld [vmem:[%s7228_s0 + $0x4f8] sm:$0xff] }
 0x25f   :  { %v1507_v29 = vpop.f32.mrf.mxu0 }
 0x260   :  { %v2671_v33 = vadd.f32 %v2670_v0, %v1886_v27  ;;  %v1508_v34 = vadd.f32 %v5433_v30, %v1507_v29  ;;  %3485 = vmatmul.msk.f32.gmra.mxu1 %vm549_vm1, %v165_v28  ;;  %v416_v0 = vld [vmem:[%s7228_s0 + $0xc90] sm:$0xff]  ;;  %v166_v27 = vld [vmem:[%s7228_s0 + $0x4c0] sm:$0xff] }
 0x262   :  { %v3074_v37 = vmax.f32 %v2671_v33, 0.0  ;;  %v2293_v39 = vadd.f32 %v5453_v45, %v1508_v34  ;;  %1554 = vmatmul.f32.gmra.mxu0 %v158_v31  ;;  %1935 = vmatmul.f32.gmra.mxu2 %v412_v32  ;;  %v425_v32 = vld [vmem:[%s7228_s0 + $0xcd8] sm:$0xff] }
 0x263   :  { %3611 = vmatmul.msk.f32.gmra.mxu3 %vm549_vm1, %v417_v36 }
 0x264   :  { %3331 = vst.msk [vmem:[%s7230_s3 + $0x5b0] sm:$0xff] %vm3148_vm2, %v3074_v37  ;;  %v2948_v40 = vmax.f32 %v2293_v39, 0.0 }
 0x265   :  { %v1888_v41 = vpop.f32.mrf.mxu2  ;;  %v5561_v42 = vpop.f32.mrf.mxu1 }
 0x266   :  { %3205 = vst.msk [vmem:[%s7230_s3 + $0x1c0] sm:$0xff] %vm3148_vm2, %v2948_v40  ;;  %v1889_v44 = vadd.f32 %v5433_v30, %v1888_v41  ;;  %v2679_v45 = vpop.f32.mrf.mxu3  ;;  %v175_v40 = vld [vmem:[%s7228_s0 + $0x508] sm:$0xff] }
 0x267   :  { %v1510_v47 = vpop.f32.mrf.mxu0 }
 0x268   :  { %v2674_v50 = vadd.f32 %v2673_v14, %v1889_v44  ;;  %v1511_v51 = vadd.f32 %v5433_v30, %v1510_v47  ;;  %3486 = vmatmul.msk.f32.gmra.mxu1 %vm549_vm1, %v167_v43  ;;  %v418_v14 = vld [vmem:[%s7228_s0 + $0xca0] sm:$0xff]  ;;  %v168_v44 = vld [vmem:[%s7228_s0 + $0x4d0] sm:$0xff] }
 0x26a   :  { %v3075_v53 = vmax.f32 %v2674_v50, 0.0  ;;  %v2296_v54 = vadd.f32 %v5480_v61, %v1511_v51  ;;  %1557 = vmatmul.f32.gmra.mxu0 %v160_v48  ;;  %1938 = vmatmul.f32.gmra.mxu2 %v414_v49  ;;  %v427_v49 = vld [vmem:[%s7228_s0 + $0xce8] sm:$0xff] }
 0x26b   :  { %3612 = vmatmul.msk.f32.gmra.mxu3 %vm549_vm1, %v419_v52 }
 0x26c   :  { %3332 = vst.msk [vmem:[%s7230_s3 + $0x5b8] sm:$0xff] %vm3148_vm2, %v3075_v53  ;;  %v2949_v55 = vmax.f32 %v2296_v54, 0.0 }
 0x26d   :  { %v1891_v56 = vpop.f32.mrf.mxu2  ;;  %v5588_v58 = vpop.f32.mrf.mxu1 }
 0x26e   :  { %3206 = vst.msk [vmem:[%s7230_s3 + $0x1c8] sm:$0xff] %vm3148_vm2, %v2949_v55  ;;  %v1892_v60 = vadd.f32 %v5433_v30, %v1891_v56  ;;  %v2682_v61 = vpop.f32.mrf.mxu3  ;;  %v177_v55 = vld [vmem:[%s7228_s0 + $0x518] sm:$0xff] }
 0x26f   :  { %v1513_v62 = vpop.f32.mrf.mxu0 }
 0x270   :  { %v2677_v1 = vadd.f32 %v2676_v25, %v1892_v60  ;;  %v1514_v2 = vadd.f32 %v5433_v30, %v1513_v62  ;;  %3487 = vmatmul.msk.f32.gmra.mxu1 %vm549_vm1, %v169_v59  ;;  %v420_v25 = vld [vmem:[%s7228_s0 + $0xcb0] sm:$0xff]  ;;  %v170_v60 = vld [vmem:[%s7228_s0 + $0x4e0] sm:$0xff] }
 0x272   :  { %v3076_v4 = vmax.f32 %v2677_v1, 0.0  ;;  %v2299_v5 = vadd.f32 %v5507_v11, %v1514_v2  ;;  %1560 = vmatmul.f32.gmra.mxu0 %v162_v63  ;;  %1941 = vmatmul.f32.gmra.mxu2 %v416_v0  ;;  %v429_v0 = vld [vmem:[%s7228_s0 + $0xcf8] sm:$0xff] }
 0x273   :  { %3613 = vmatmul.msk.f32.gmra.mxu3 %vm549_vm1, %v421_v3 }
 0x274   :  { %3333 = vst.msk [vmem:[%s7230_s3 + $0x5c0] sm:$0xff] %vm3148_vm2, %v3076_v4  ;;  %v2950_v6 = vmax.f32 %v2299_v5, 0.0 }
 0x275   :  { %v1894_v7 = vpop.f32.mrf.mxu2  ;;  %v5615_v8 = vpop.f32.mrf.mxu1 }
 0x276   :  { %3207 = vst.msk [vmem:[%s7230_s3 + $0x1d0] sm:$0xff] %vm3148_vm2, %v2950_v6  ;;  %v1895_v10 = vadd.f32 %v5433_v30, %v1894_v7  ;;  %v2685_v11 = vpop.f32.mrf.mxu3  ;;  %v179_v6 = vld [vmem:[%s7228_s0 + $0x528] sm:$0xff] }
 0x277   :  { %v1516_v12 = vpop.f32.mrf.mxu0 }
 0x278   :  { %v2680_v15 = vadd.f32 %v2679_v45, %v1895_v10  ;;  %v1517_v16 = vadd.f32 %v5433_v30, %v1516_v12  ;;  %3488 = vmatmul.msk.f32.gmra.mxu1 %vm549_vm1, %v171_v9  ;;  %v422_v45 = vld [vmem:[%s7228_s0 + $0xcc0] sm:$0xff]  ;;  %v172_v10 = vld [vmem:[%s7228_s0 + $0x4f0] sm:$0xff] }
 0x27a   :  { %v3077_v18 = vmax.f32 %v2680_v15, 0.0  ;;  %v2302_v19 = vadd.f32 %v5534_v26, %v1517_v16  ;;  %1563 = vmatmul.f32.gmra.mxu0 %v164_v13  ;;  %1944 = vmatmul.f32.gmra.mxu2 %v418_v14  ;;  %v431_v14 = vld [vmem:[%s7228_s0 + $0xd08] sm:$0xff] }
 0x27b   :  { %3614 = vmatmul.msk.f32.gmra.mxu3 %vm549_vm1, %v423_v17 }
 0x27c   :  { %3334 = vst.msk [vmem:[%s7230_s3 + $0x5c8] sm:$0xff] %vm3148_vm2, %v3077_v18  ;;  %v2951_v20 = vmax.f32 %v2302_v19, 0.0 }
 0x27d   :  { %v1897_v21 = vpop.f32.mrf.mxu2  ;;  %v5642_v22 = vpop.f32.mrf.mxu1 }
 0x27e   :  { %3208 = vst.msk [vmem:[%s7230_s3 + $0x1d8] sm:$0xff] %vm3148_vm2, %v2951_v20  ;;  %v1898_v24 = vadd.f32 %v5433_v30, %v1897_v21  ;;  %v2688_v26 = vpop.f32.mrf.mxu3  ;;  %v181_v20 = vld [vmem:[%s7228_s0 + $0x538] sm:$0xff] }
 0x27f   :  { %v1519_v28 = vpop.f32.mrf.mxu0 }
 0x280   :  { %v2683_v29 = vadd.f32 %v2682_v61, %v1898_v24  ;;  %v1520_v31 = vadd.f32 %v5433_v30, %v1519_v28  ;;  %3489 = vmatmul.msk.f32.gmra.mxu1 %vm549_vm1, %v173_v23  ;;  %v424_v61 = vld [vmem:[%s7228_s0 + $0xcd0] sm:$0xff]  ;;  %v174_v24 = vld [vmem:[%s7228_s0 + $0x500] sm:$0xff] }
 0x282   :  { %v3078_v33 = vmax.f32 %v2683_v29, 0.0  ;;  %v2305_v34 = vadd.f32 %v5561_v42, %v1520_v31  ;;  %1566 = vmatmul.f32.gmra.mxu0 %v166_v27  ;;  %1947 = vmatmul.f32.gmra.mxu2 %v420_v25  ;;  %v433_v25 = vld [vmem:[%s7228_s0 + $0xd18] sm:$0xff] }
 0x283   :  { %3615 = vmatmul.msk.f32.gmra.mxu3 %vm549_vm1, %v425_v32 }
 0x284   :  { %3335 = vst.msk [vmem:[%s7230_s3 + $0x5d0] sm:$0xff] %vm3148_vm2, %v3078_v33  ;;  %v2952_v36 = vmax.f32 %v2305_v34, 0.0 }
 0x285   :  { %v1900_v37 = vpop.f32.mrf.mxu2  ;;  %v5669_v39 = vpop.f32.mrf.mxu1 }
 0x286   :  { %3209 = vst.msk [vmem:[%s7230_s3 + $0x1e0] sm:$0xff] %vm3148_vm2, %v2952_v36  ;;  %v1901_v41 = vadd.f32 %v5433_v30, %v1900_v37  ;;  %v2691_v42 = vpop.f32.mrf.mxu3  ;;  %v183_v36 = vld [vmem:[%s7228_s0 + $0x548] sm:$0xff] }
 0x287   :  { %v1522_v43 = vpop.f32.mrf.mxu0 }
 0x288   :  { %v2686_v47 = vadd.f32 %v2685_v11, %v1901_v41  ;;  %v1523_v48 = vadd.f32 %v5433_v30, %v1522_v43  ;;  %3490 = vmatmul.msk.f32.gmra.mxu1 %vm549_vm1, %v175_v40  ;;  %v426_v11 = vld [vmem:[%s7228_s0 + $0xce0] sm:$0xff]  ;;  %v176_v41 = vld [vmem:[%s7228_s0 + $0x510] sm:$0xff] }
 0x28a   :  { %v3079_v50 = vmax.f32 %v2686_v47, 0.0  ;;  %v2308_v51 = vadd.f32 %v5588_v58, %v1523_v48  ;;  %1569 = vmatmul.f32.gmra.mxu0 %v168_v44  ;;  %1950 = vmatmul.f32.gmra.mxu2 %v422_v45  ;;  %v435_v45 = vld [vmem:[%s7228_s0 + $0xd28] sm:$0xff] }
 0x28b   :  { %3616 = vmatmul.msk.f32.gmra.mxu3 %vm549_vm1, %v427_v49 }
 0x28c   :  { %3336 = vst.msk [vmem:[%s7230_s3 + $0x5d8] sm:$0xff] %vm3148_vm2, %v3079_v50  ;;  %v2953_v52 = vmax.f32 %v2308_v51, 0.0 }
 0x28d   :  { %v1903_v53 = vpop.f32.mrf.mxu2  ;;  %v5696_v54 = vpop.f32.mrf.mxu1 }
 0x28e   :  { %3210 = vst.msk [vmem:[%s7230_s3 + $0x1e8] sm:$0xff] %vm3148_vm2, %v2953_v52  ;;  %v1904_v56 = vadd.f32 %v5433_v30, %v1903_v53  ;;  %v2694_v58 = vpop.f32.mrf.mxu3  ;;  %v185_v52 = vld [vmem:[%s7228_s0 + $0x558] sm:$0xff] }
 0x28f   :  { %v1525_v59 = vpop.f32.mrf.mxu0 }
 0x290   :  { %v2689_v62 = vadd.f32 %v2688_v26, %v1904_v56  ;;  %v1526_v63 = vadd.f32 %v5433_v30, %v1525_v59  ;;  %3491 = vmatmul.msk.f32.gmra.mxu1 %vm549_vm1, %v177_v55  ;;  %v428_v26 = vld [vmem:[%s7228_s0 + $0xcf0] sm:$0xff]  ;;  %v178_v56 = vld [vmem:[%s7228_s0 + $0x520] sm:$0xff] }
 0x292   :  { %v3080_v1 = vmax.f32 %v2689_v62, 0.0  ;;  %v2311_v2 = vadd.f32 %v5615_v8, %v1526_v63  ;;  %1572 = vmatmul.f32.gmra.mxu0 %v170_v60  ;;  %1953 = vmatmul.f32.gmra.mxu2 %v424_v61  ;;  %v437_v61 = vld [vmem:[%s7228_s0 + $0xd38] sm:$0xff] }
 0x293   :  { %3617 = vmatmul.msk.f32.gmra.mxu3 %vm549_vm1, %v429_v0 }
 0x294   :  { %3337 = vst.msk [vmem:[%s7230_s3 + $0x5e0] sm:$0xff] %vm3148_vm2, %v3080_v1  ;;  %v2954_v3 = vmax.f32 %v2311_v2, 0.0 }
 0x295   :  { %v1906_v4 = vpop.f32.mrf.mxu2  ;;  %v5723_v5 = vpop.f32.mrf.mxu1 }
 0x296   :  { %3211 = vst.msk [vmem:[%s7230_s3 + $0x1f0] sm:$0xff] %vm3148_vm2, %v2954_v3  ;;  %v1907_v7 = vadd.f32 %v5433_v30, %v1906_v4  ;;  %v2697_v8 = vpop.f32.mrf.mxu3  ;;  %v187_v3 = vld [vmem:[%s7228_s0 + $0x568] sm:$0xff] }
 0x297   :  { %v1528_v9 = vpop.f32.mrf.mxu0 }
 0x298   :  { %v2692_v12 = vadd.f32 %v2691_v42, %v1907_v7  ;;  %v1529_v13 = vadd.f32 %v5433_v30, %v1528_v9  ;;  %3492 = vmatmul.msk.f32.gmra.mxu1 %vm549_vm1, %v179_v6  ;;  %v430_v42 = vld [vmem:[%s7228_s0 + $0xd00] sm:$0xff]  ;;  %v180_v7 = vld [vmem:[%s7228_s0 + $0x530] sm:$0xff] }
 0x29a   :  { %v3081_v15 = vmax.f32 %v2692_v12, 0.0  ;;  %v2314_v16 = vadd.f32 %v5642_v22, %v1529_v13  ;;  %1575 = vmatmul.f32.gmra.mxu0 %v172_v10  ;;  %1956 = vmatmul.f32.gmra.mxu2 %v426_v11  ;;  %v439_v11 = vld [vmem:[%s7228_s0 + $0xd48] sm:$0xff] }
 0x29b   :  { %3618 = vmatmul.msk.f32.gmra.mxu3 %vm549_vm1, %v431_v14 }
 0x29c   :  { %3338 = vst.msk [vmem:[%s7230_s3 + $0x5e8] sm:$0xff] %vm3148_vm2, %v3081_v15  ;;  %v2955_v17 = vmax.f32 %v2314_v16, 0.0 }
 0x29d   :  { %v1909_v18 = vpop.f32.mrf.mxu2  ;;  %v5750_v19 = vpop.f32.mrf.mxu1 }
 0x29e   :  { %3212 = vst.msk [vmem:[%s7230_s3 + $0x1f8] sm:$0xff] %vm3148_vm2, %v2955_v17  ;;  %v1910_v21 = vadd.f32 %v5433_v30, %v1909_v18  ;;  %v2700_v22 = vpop.f32.mrf.mxu3  ;;  %v189_v17 = vld [vmem:[%s7228_s0 + $0x578] sm:$0xff] }
 0x29f   :  { %v1531_v23 = vpop.f32.mrf.mxu0 }
 0x2a0   :  { %v2695_v28 = vadd.f32 %v2694_v58, %v1910_v21  ;;  %v1532_v27 = vadd.f32 %v5433_v30, %v1531_v23  ;;  %3493 = vmatmul.msk.f32.gmra.mxu1 %vm549_vm1, %v181_v20  ;;  %v432_v58 = vld [vmem:[%s7228_s0 + $0xd10] sm:$0xff]  ;;  %v182_v21 = vld [vmem:[%s7228_s0 + $0x540] sm:$0xff] }
 0x2a2   :  { %v3082_v29 = vmax.f32 %v2695_v28, 0.0  ;;  %v2317_v31 = vadd.f32 %v5669_v39, %v1532_v27  ;;  %1578 = vmatmul.f32.gmra.mxu0 %v174_v24  ;;  %1959 = vmatmul.f32.gmra.mxu2 %v428_v26  ;;  %v441_v26 = vld [vmem:[%s7228_s0 + $0xd58] sm:$0xff] }
 0x2a3   :  { %3619 = vmatmul.msk.f32.gmra.mxu3 %vm549_vm1, %v433_v25 }
 0x2a4   :  { %3339 = vst.msk [vmem:[%s7230_s3 + $0x5f0] sm:$0xff] %vm3148_vm2, %v3082_v29  ;;  %v2956_v32 = vmax.f32 %v2317_v31, 0.0 }
 0x2a5   :  { %v1912_v33 = vpop.f32.mrf.mxu2  ;;  %v5777_v34 = vpop.f32.mrf.mxu1 }
 0x2a6   :  { %3213 = vst.msk [vmem:[%s7230_s3 + $0x200] sm:$0xff] %vm3148_vm2, %v2956_v32  ;;  %v1913_v37 = vadd.f32 %v5433_v30, %v1912_v33  ;;  %v2703_v39 = vpop.f32.mrf.mxu3  ;;  %v191_v32 = vld [vmem:[%s7228_s0 + $0x588] sm:$0xff] }
 0x2a7   :  { %v1534_v40 = vpop.f32.mrf.mxu0 }
 0x2a8   :  { %v2698_v43 = vadd.f32 %v2697_v8, %v1913_v37  ;;  %v1535_v44 = vadd.f32 %v5433_v30, %v1534_v40  ;;  %3494 = vmatmul.msk.f32.gmra.mxu1 %vm549_vm1, %v183_v36  ;;  %v434_v8 = vld [vmem:[%s7228_s0 + $0xd20] sm:$0xff]  ;;  %v184_v37 = vld [vmem:[%s7228_s0 + $0x550] sm:$0xff] }
 0x2aa   :  { %v3083_v47 = vmax.f32 %v2698_v43, 0.0  ;;  %v2320_v48 = vadd.f32 %v5696_v54, %v1535_v44  ;;  %1581 = vmatmul.f32.gmra.mxu0 %v176_v41  ;;  %1962 = vmatmul.f32.gmra.mxu2 %v430_v42  ;;  %v443_v42 = vld [vmem:[%s7228_s0 + $0xd68] sm:$0xff] }
 0x2ab   :  { %3620 = vmatmul.msk.f32.gmra.mxu3 %vm549_vm1, %v435_v45 }
 0x2ac   :  { %3340 = vst.msk [vmem:[%s7230_s3 + $0x5f8] sm:$0xff] %vm3148_vm2, %v3083_v47  ;;  %v2957_v49 = vmax.f32 %v2320_v48, 0.0 }
 0x2ad   :  { %v1915_v50 = vpop.f32.mrf.mxu2  ;;  %v5804_v51 = vpop.f32.mrf.mxu1 }
 0x2ae   :  { %3214 = vst.msk [vmem:[%s7230_s3 + $0x208] sm:$0xff] %vm3148_vm2, %v2957_v49  ;;  %v1916_v53 = vadd.f32 %v5433_v30, %v1915_v50  ;;  %v2706_v54 = vpop.f32.mrf.mxu3  ;;  %v193_v49 = vld [vmem:[%s7228_s0 + $0x598] sm:$0xff] }
 0x2af   :  { %v1537_v55 = vpop.f32.mrf.mxu0 }
 0x2b0   :  { %v2701_v59 = vadd.f32 %v2700_v22, %v1916_v53  ;;  %v1538_v60 = vadd.f32 %v5433_v30, %v1537_v55  ;;  %3495 = vmatmul.msk.f32.gmra.mxu1 %vm549_vm1, %v185_v52  ;;  %v436_v22 = vld [vmem:[%s7228_s0 + $0xd30] sm:$0xff]  ;;  %v186_v53 = vld [vmem:[%s7228_s0 + $0x560] sm:$0xff] }
 0x2b2   :  { %v3084_v62 = vmax.f32 %v2701_v59, 0.0  ;;  %v2323_v63 = vadd.f32 %v5723_v5, %v1538_v60  ;;  %1584 = vmatmul.f32.gmra.mxu0 %v178_v56  ;;  %1965 = vmatmul.f32.gmra.mxu2 %v432_v58  ;;  %v445_v58 = vld [vmem:[%s7228_s0 + $0xd78] sm:$0xff] }
 0x2b3   :  { %3621 = vmatmul.msk.f32.gmra.mxu3 %vm549_vm1, %v437_v61 }
 0x2b4   :  { %3341 = vst.msk [vmem:[%s7230_s3 + $0x600] sm:$0xff] %vm3148_vm2, %v3084_v62  ;;  %v2958_v0 = vmax.f32 %v2323_v63, 0.0 }
 0x2b5   :  { %v1918_v1 = vpop.f32.mrf.mxu2  ;;  %v5831_v2 = vpop.f32.mrf.mxu1 }
 0x2b6   :  { %3215 = vst.msk [vmem:[%s7230_s3 + $0x210] sm:$0xff] %vm3148_vm2, %v2958_v0  ;;  %v1919_v4 = vadd.f32 %v5433_v30, %v1918_v1  ;;  %v2709_v5 = vpop.f32.mrf.mxu3  ;;  %v195_v0 = vld [vmem:[%s7228_s0 + $0x5a8] sm:$0xff] }
 0x2b7   :  { %v1540_v6 = vpop.f32.mrf.mxu0 }
 0x2b8   :  { %v2704_v9 = vadd.f32 %v2703_v39, %v1919_v4  ;;  %v1541_v10 = vadd.f32 %v5433_v30, %v1540_v6  ;;  %3496 = vmatmul.msk.f32.gmra.mxu1 %vm549_vm1, %v187_v3  ;;  %v438_v39 = vld [vmem:[%s7228_s0 + $0xd40] sm:$0xff]  ;;  %v188_v4 = vld [vmem:[%s7228_s0 + $0x570] sm:$0xff] }
 0x2ba   :  { %v3085_v12 = vmax.f32 %v2704_v9, 0.0  ;;  %v2326_v13 = vadd.f32 %v5750_v19, %v1541_v10  ;;  %1587 = vmatmul.f32.gmra.mxu0 %v180_v7  ;;  %1968 = vmatmul.f32.gmra.mxu2 %v434_v8  ;;  %v447_v8 = vld [vmem:[%s7228_s0 + $0xd88] sm:$0xff] }
 0x2bb   :  { %3622 = vmatmul.msk.f32.gmra.mxu3 %vm549_vm1, %v439_v11 }
 0x2bc   :  { %3342 = vst.msk [vmem:[%s7230_s3 + $0x608] sm:$0xff] %vm3148_vm2, %v3085_v12  ;;  %v2959_v14 = vmax.f32 %v2326_v13, 0.0 }
 0x2bd   :  { %v1921_v15 = vpop.f32.mrf.mxu2  ;;  %v5858_v16 = vpop.f32.mrf.mxu1 }
 0x2be   :  { %3216 = vst.msk [vmem:[%s7230_s3 + $0x218] sm:$0xff] %vm3148_vm2, %v2959_v14  ;;  %v1922_v18 = vadd.f32 %v5433_v30, %v1921_v15  ;;  %v2712_v19 = vpop.f32.mrf.mxu3  ;;  %v197_v14 = vld [vmem:[%s7228_s0 + $0x5b8] sm:$0xff] }
 0x2bf   :  { %v1543_v20 = vpop.f32.mrf.mxu0 }
 0x2c0   :  { %v2707_v23 = vadd.f32 %v2706_v54, %v1922_v18  ;;  %v1544_v24 = vadd.f32 %v5433_v30, %v1543_v20  ;;  %3497 = vmatmul.msk.f32.gmra.mxu1 %vm549_vm1, %v189_v17  ;;  %v440_v54 = vld [vmem:[%s7228_s0 + $0xd50] sm:$0xff]  ;;  %v190_v18 = vld [vmem:[%s7228_s0 + $0x580] sm:$0xff] }
 0x2c2   :  { %v3086_v28 = vmax.f32 %v2707_v23, 0.0  ;;  %v2329_v27 = vadd.f32 %v5777_v34, %v1544_v24  ;;  %1590 = vmatmul.f32.gmra.mxu0 %v182_v21  ;;  %1971 = vmatmul.f32.gmra.mxu2 %v436_v22  ;;  %v449_v22 = vld [vmem:[%s7228_s0 + $0xd98] sm:$0xff] }
 0x2c3   :  { %3623 = vmatmul.msk.f32.gmra.mxu3 %vm549_vm1, %v441_v26 }
 0x2c4   :  { %3343 = vst.msk [vmem:[%s7230_s3 + $0x610] sm:$0xff] %vm3148_vm2, %v3086_v28  ;;  %v2960_v25 = vmax.f32 %v2329_v27, 0.0 }
 0x2c5   :  { %v1924_v29 = vpop.f32.mrf.mxu2  ;;  %v5885_v31 = vpop.f32.mrf.mxu1 }
 0x2c6   :  { %3217 = vst.msk [vmem:[%s7230_s3 + $0x220] sm:$0xff] %vm3148_vm2, %v2960_v25  ;;  %v1925_v33 = vadd.f32 %v5433_v30, %v1924_v29  ;;  %v2715_v34 = vpop.f32.mrf.mxu3  ;;  %v199_v25 = vld [vmem:[%s7228_s0 + $0x5c8] sm:$0xff] }
 0x2c7   :  { %v1546_v36 = vpop.f32.mrf.mxu0 }
 0x2c8   :  { %v2710_v40 = vadd.f32 %v2709_v5, %v1925_v33  ;;  %v1547_v41 = vadd.f32 %v5433_v30, %v1546_v36  ;;  %3498 = vmatmul.msk.f32.gmra.mxu1 %vm549_vm1, %v191_v32  ;;  %v442_v5 = vld [vmem:[%s7228_s0 + $0xd60] sm:$0xff]  ;;  %v192_v33 = vld [vmem:[%s7228_s0 + $0x590] sm:$0xff] }
 0x2ca   :  { %v3087_v43 = vmax.f32 %v2710_v40, 0.0  ;;  %v2332_v44 = vadd.f32 %v5804_v51, %v1547_v41  ;;  %1593 = vmatmul.f32.gmra.mxu0 %v184_v37  ;;  %1974 = vmatmul.f32.gmra.mxu2 %v438_v39  ;;  %v451_v39 = vld [vmem:[%s7228_s0 + $0xda8] sm:$0xff] }
 0x2cb   :  { %3624 = vmatmul.msk.f32.gmra.mxu3 %vm549_vm1, %v443_v42 }
 0x2cc   :  { %3344 = vst.msk [vmem:[%s7230_s3 + $0x618] sm:$0xff] %vm3148_vm2, %v3087_v43  ;;  %v2961_v45 = vmax.f32 %v2332_v44, 0.0 }
 0x2cd   :  { %v1927_v47 = vpop.f32.mrf.mxu2  ;;  %v5912_v48 = vpop.f32.mrf.mxu1 }
 0x2ce   :  { %3218 = vst.msk [vmem:[%s7230_s3 + $0x228] sm:$0xff] %vm3148_vm2, %v2961_v45  ;;  %v1928_v50 = vadd.f32 %v5433_v30, %v1927_v47  ;;  %v2718_v51 = vpop.f32.mrf.mxu3  ;;  %v201_v45 = vld [vmem:[%s7228_s0 + $0x5d8] sm:$0xff] }
 0x2cf   :  { %v1549_v52 = vpop.f32.mrf.mxu0 }
 0x2d0   :  { %v2713_v55 = vadd.f32 %v2712_v19, %v1928_v50  ;;  %v1550_v56 = vadd.f32 %v5433_v30, %v1549_v52  ;;  %3499 = vmatmul.msk.f32.gmra.mxu1 %vm549_vm1, %v193_v49  ;;  %v444_v19 = vld [vmem:[%s7228_s0 + $0xd70] sm:$0xff]  ;;  %v194_v50 = vld [vmem:[%s7228_s0 + $0x5a0] sm:$0xff] }
 0x2d2   :  { %v3088_v59 = vmax.f32 %v2713_v55, 0.0  ;;  %v2335_v60 = vadd.f32 %v5831_v2, %v1550_v56  ;;  %1596 = vmatmul.f32.gmra.mxu0 %v186_v53  ;;  %1977 = vmatmul.f32.gmra.mxu2 %v440_v54  ;;  %v453_v54 = vld [vmem:[%s7228_s0 + $0xdb8] sm:$0xff] }
 0x2d3   :  { %3625 = vmatmul.msk.f32.gmra.mxu3 %vm549_vm1, %v445_v58 }
 0x2d4   :  { %3345 = vst.msk [vmem:[%s7230_s3 + $0x620] sm:$0xff] %vm3148_vm2, %v3088_v59  ;;  %v2962_v61 = vmax.f32 %v2335_v60, 0.0 }
 0x2d5   :  { %v1930_v62 = vpop.f32.mrf.mxu2  ;;  %v5939_v63 = vpop.f32.mrf.mxu1 }
 0x2d6   :  { %3219 = vst.msk [vmem:[%s7230_s3 + $0x230] sm:$0xff] %vm3148_vm2, %v2962_v61  ;;  %v1931_v1 = vadd.f32 %v5433_v30, %v1930_v62  ;;  %v2721_v2 = vpop.f32.mrf.mxu3  ;;  %v203_v61 = vld [vmem:[%s7228_s0 + $0x5e8] sm:$0xff] }
 0x2d7   :  { %v1552_v3 = vpop.f32.mrf.mxu0 }
 0x2d8   :  { %v2716_v6 = vadd.f32 %v2715_v34, %v1931_v1  ;;  %v1553_v7 = vadd.f32 %v5433_v30, %v1552_v3  ;;  %3500 = vmatmul.msk.f32.gmra.mxu1 %vm549_vm1, %v195_v0  ;;  %v446_v34 = vld [vmem:[%s7228_s0 + $0xd80] sm:$0xff]  ;;  %v196_v1 = vld [vmem:[%s7228_s0 + $0x5b0] sm:$0xff] }
 0x2da   :  { %v3089_v9 = vmax.f32 %v2716_v6, 0.0  ;;  %v2338_v10 = vadd.f32 %v5858_v16, %v1553_v7  ;;  %1599 = vmatmul.f32.gmra.mxu0 %v188_v4  ;;  %1980 = vmatmul.f32.gmra.mxu2 %v442_v5  ;;  %v455_v5 = vld [vmem:[%s7228_s0 + $0xdc8] sm:$0xff] }
 0x2db   :  { %3626 = vmatmul.msk.f32.gmra.mxu3 %vm549_vm1, %v447_v8 }
 0x2dc   :  { %3346 = vst.msk [vmem:[%s7230_s3 + $0x628] sm:$0xff] %vm3148_vm2, %v3089_v9  ;;  %v2963_v11 = vmax.f32 %v2338_v10, 0.0 }
 0x2dd   :  { %v1933_v12 = vpop.f32.mrf.mxu2  ;;  %v5966_v13 = vpop.f32.mrf.mxu1 }
 0x2de   :  { %3220 = vst.msk [vmem:[%s7230_s3 + $0x238] sm:$0xff] %vm3148_vm2, %v2963_v11  ;;  %v1934_v15 = vadd.f32 %v5433_v30, %v1933_v12  ;;  %v2724_v16 = vpop.f32.mrf.mxu3  ;;  %v205_v11 = vld [vmem:[%s7228_s0 + $0x5f8] sm:$0xff] }
 0x2df   :  { %v1555_v17 = vpop.f32.mrf.mxu0 }
 0x2e0   :  { %v2719_v20 = vadd.f32 %v2718_v51, %v1934_v15  ;;  %v1556_v21 = vadd.f32 %v5433_v30, %v1555_v17  ;;  %3501 = vmatmul.msk.f32.gmra.mxu1 %vm549_vm1, %v197_v14  ;;  %v448_v51 = vld [vmem:[%s7228_s0 + $0xd90] sm:$0xff]  ;;  %v198_v15 = vld [vmem:[%s7228_s0 + $0x5c0] sm:$0xff] }
 0x2e2   :  { %v3090_v23 = vmax.f32 %v2719_v20, 0.0  ;;  %v2341_v24 = vadd.f32 %v5885_v31, %v1556_v21  ;;  %1602 = vmatmul.f32.gmra.mxu0 %v190_v18  ;;  %1983 = vmatmul.f32.gmra.mxu2 %v444_v19  ;;  %v457_v19 = vld [vmem:[%s7228_s0 + $0xdd8] sm:$0xff] }
 0x2e3   :  { %3627 = vmatmul.msk.f32.gmra.mxu3 %vm549_vm1, %v449_v22 }
 0x2e4   :  { %3347 = vst.msk [vmem:[%s7230_s3 + $0x630] sm:$0xff] %vm3148_vm2, %v3090_v23  ;;  %v2964_v26 = vmax.f32 %v2341_v24, 0.0 }
 0x2e5   :  { %v1936_v28 = vpop.f32.mrf.mxu2  ;;  %v5993_v27 = vpop.f32.mrf.mxu1 }
 0x2e6   :  { %3221 = vst.msk [vmem:[%s7230_s3 + $0x240] sm:$0xff] %vm3148_vm2, %v2964_v26  ;;  %v1937_v29 = vadd.f32 %v5433_v30, %v1936_v28  ;;  %v2727_v31 = vpop.f32.mrf.mxu3  ;;  %v207_v26 = vld [vmem:[%s7228_s0 + $0x608] sm:$0xff] }
 0x2e7   :  { %v1558_v32 = vpop.f32.mrf.mxu0 }
 0x2e8   :  { %v2722_v36 = vadd.f32 %v2721_v2, %v1937_v29  ;;  %v1559_v37 = vadd.f32 %v5433_v30, %v1558_v32  ;;  %3502 = vmatmul.msk.f32.gmra.mxu1 %vm549_vm1, %v199_v25  ;;  %v450_v2 = vld [vmem:[%s7228_s0 + $0xda0] sm:$0xff]  ;;  %v200_v29 = vld [vmem:[%s7228_s0 + $0x5d0] sm:$0xff] }
 0x2ea   :  { %v3091_v40 = vmax.f32 %v2722_v36, 0.0  ;;  %v2344_v41 = vadd.f32 %v5912_v48, %v1559_v37  ;;  %1605 = vmatmul.f32.gmra.mxu0 %v192_v33  ;;  %1986 = vmatmul.f32.gmra.mxu2 %v446_v34  ;;  %v459_v34 = vld [vmem:[%s7228_s0 + $0xde8] sm:$0xff] }
 0x2eb   :  { %3628 = vmatmul.msk.f32.gmra.mxu3 %vm549_vm1, %v451_v39 }
 0x2ec   :  { %3348 = vst.msk [vmem:[%s7230_s3 + $0x638] sm:$0xff] %vm3148_vm2, %v3091_v40  ;;  %v2965_v42 = vmax.f32 %v2344_v41, 0.0  ;;  %v209_v41 = vld [vmem:[%s7228_s0 + $0x618] sm:$0xff] }
 0x2ed   :  { %v1939_v43 = vpop.f32.mrf.mxu2  ;;  %v6020_v44 = vpop.f32.mrf.mxu1 }
 0x2ee   :  { %3222 = vst.msk [vmem:[%s7230_s3 + $0x248] sm:$0xff] %vm3148_vm2, %v2965_v42  ;;  %v1940_v47 = vadd.f32 %v5433_v30, %v1939_v43  ;;  %v2730_v48 = vpop.f32.mrf.mxu3  ;;  %v6140_v42 = vld [vmem:[%s7229_s2] ss:$0 sm:$0xff] }
 0x2ef   :  { %v1561_v49 = vpop.f32.mrf.mxu0 }
 0x2f0   :  { %v2725_v52 = vadd.f32 %v2724_v16, %v1940_v47  ;;  %v1562_v53 = vadd.f32 %v5433_v30, %v1561_v49  ;;  %3503 = vmatmul.msk.f32.gmra.mxu1 %vm549_vm1, %v201_v45  ;;  %v452_v16 = vld [vmem:[%s7228_s0 + $0xdb0] sm:$0xff]  ;;  %v202_v47 = vld [vmem:[%s7228_s0 + $0x5e0] sm:$0xff] }
 0x2f2   :  { %v3092_v55 = vmax.f32 %v2725_v52, 0.0  ;;  %v2347_v56 = vadd.f32 %v5939_v63, %v1562_v53  ;;  %1608 = vmatmul.f32.gmra.mxu0 %v194_v50  ;;  %1989 = vmatmul.f32.gmra.mxu2 %v448_v51  ;;  %v461_v51 = vld [vmem:[%s7228_s0 + $0xdf8] sm:$0xff] }
 0x2f3   :  { %3629 = vmatmul.msk.f32.gmra.mxu3 %vm549_vm1, %v453_v54 }
 0x2f4   :  { %3349 = vst.msk [vmem:[%s7230_s3 + $0x640] sm:$0xff] %vm3148_vm2, %v3092_v55  ;;  %v2966_v58 = vmax.f32 %v2347_v56, 0.0 }
 0x2f5   :  { %v1942_v59 = vpop.f32.mrf.mxu2  ;;  %v6047_v60 = vpop.f32.mrf.mxu1 }
 0x2f6   :  { %3223 = vst.msk [vmem:[%s7230_s3 + $0x250] sm:$0xff] %vm3148_vm2, %v2966_v58  ;;  %v1943_v62 = vadd.f32 %v5433_v30, %v1942_v59  ;;  %v2733_v63 = vpop.f32.mrf.mxu3  ;;  %v211_v58 = vld [vmem:[%s7228_s0 + $0x628] sm:$0xff] }
 0x2f7   :  { %v1564_v0 = vpop.f32.mrf.mxu0 }
 0x2f8   :  { %v2728_v3 = vadd.f32 %v2727_v31, %v1943_v62  ;;  %v1565_v4 = vadd.f32 %v5433_v30, %v1564_v0  ;;  %3504 = vmatmul.msk.f32.gmra.mxu1 %vm549_vm1, %v203_v61  ;;  %v454_v31 = vld [vmem:[%s7228_s0 + $0xdc0] sm:$0xff]  ;;  %v204_v62 = vld [vmem:[%s7228_s0 + $0x5f0] sm:$0xff] }
 0x2fa   :  { %v3093_v6 = vmax.f32 %v2728_v3, 0.0  ;;  %v2350_v7 = vadd.f32 %v5966_v13, %v1565_v4  ;;  %1611 = vmatmul.f32.gmra.mxu0 %v196_v1  ;;  %1992 = vmatmul.f32.gmra.mxu2 %v450_v2  ;;  %v463_v2 = vld [vmem:[%s7228_s0 + $0xe08] sm:$0xff] }
 0x2fb   :  { %3630 = vmatmul.msk.f32.gmra.mxu3 %vm549_vm1, %v455_v5 }
 0x2fc   :  { %3350 = vst.msk [vmem:[%s7230_s3 + $0x648] sm:$0xff] %vm3148_vm2, %v3093_v6  ;;  %v2967_v8 = vmax.f32 %v2350_v7, 0.0 }
 0x2fd   :  { %v1945_v9 = vpop.f32.mrf.mxu2  ;;  %v6074_v10 = vpop.f32.mrf.mxu1 }
 0x2fe   :  { %3224 = vst.msk [vmem:[%s7230_s3 + $0x258] sm:$0xff] %vm3148_vm2, %v2967_v8  ;;  %v1946_v12 = vadd.f32 %v5433_v30, %v1945_v9  ;;  %v2736_v13 = vpop.f32.mrf.mxu3  ;;  %v213_v8 = vld [vmem:[%s7228_s0 + $0x638] sm:$0xff] }
 0x2ff   :  { %v1567_v14 = vpop.f32.mrf.mxu0 }
 0x300   :  { %v2731_v17 = vadd.f32 %v2730_v48, %v1946_v12  ;;  %v1568_v18 = vadd.f32 %v5433_v30, %v1567_v14  ;;  %3505 = vmatmul.msk.f32.gmra.mxu1 %vm549_vm1, %v205_v11  ;;  %v456_v48 = vld [vmem:[%s7228_s0 + $0xdd0] sm:$0xff]  ;;  %v206_v12 = vld [vmem:[%s7228_s0 + $0x600] sm:$0xff] }
 0x302   :  { %v3094_v20 = vmax.f32 %v2731_v17, 0.0  ;;  %v2353_v21 = vadd.f32 %v5993_v27, %v1568_v18  ;;  %1614 = vmatmul.f32.gmra.mxu0 %v198_v15  ;;  %1995 = vmatmul.f32.gmra.mxu2 %v452_v16  ;;  %v465_v16 = vld [vmem:[%s7228_s0 + $0xe18] sm:$0xff] }
 0x303   :  { %3631 = vmatmul.msk.f32.gmra.mxu3 %vm549_vm1, %v457_v19 }
 0x304   :  { %3351 = vst.msk [vmem:[%s7230_s3 + $0x650] sm:$0xff] %vm3148_vm2, %v3094_v20  ;;  %v2968_v22 = vmax.f32 %v2353_v21, 0.0 }
 0x305   :  { %v1948_v23 = vpop.f32.mrf.mxu2  ;;  %v6101_v24 = vpop.f32.mrf.mxu1 }
 0x306   :  { %3225 = vst.msk [vmem:[%s7230_s3 + $0x260] sm:$0xff] %vm3148_vm2, %v2968_v22  ;;  %v1949_v28 = vadd.f32 %v5433_v30, %v1948_v23  ;;  %v2739_v27 = vpop.f32.mrf.mxu3  ;;  %v215_v22 = vld [vmem:[%s7228_s0 + $0x648] sm:$0xff] }
 0x307   :  { %v1570_v25 = vpop.f32.mrf.mxu0 }
 0x308   :  { %v2734_v32 = vadd.f32 %v2733_v63, %v1949_v28  ;;  %v1571_v33 = vadd.f32 %v5433_v30, %v1570_v25  ;;  %3506 = vmatmul.msk.f32.gmra.mxu1 %vm549_vm1, %v207_v26  ;;  %v458_v63 = vld [vmem:[%s7228_s0 + $0xde0] sm:$0xff]  ;;  %v208_v28 = vld [vmem:[%s7228_s0 + $0x610] sm:$0xff] }
 0x30a   :  { %v3095_v36 = vmax.f32 %v2734_v32, 0.0  ;;  %v2356_v37 = vadd.f32 %v6020_v44, %v1571_v33  ;;  %1617 = vmatmul.f32.gmra.mxu0 %v200_v29  ;;  %1998 = vmatmul.f32.gmra.mxu2 %v454_v31  ;;  %v467_v31 = vld [vmem:[%s7228_s0 + $0xe28] sm:$0xff] }
 0x30b   :  { %3632 = vmatmul.msk.f32.gmra.mxu3 %vm549_vm1, %v459_v34 }
 0x30c   :  { %3352 = vst.msk [vmem:[%s7230_s3 + $0x658] sm:$0xff] %vm3148_vm2, %v3095_v36  ;;  %v2969_v39 = vmax.f32 %v2356_v37, 0.0 }
 0x30d   :  { %v1951_v30 = vpop.f32.mrf.mxu2  ;;  %v6128_v40 = vpop.f32.mrf.mxu1 }
 0x30e   :  { %3226 = vst.msk [vmem:[%s7230_s3 + $0x268] sm:$0xff] %vm3148_vm2, %v2969_v39  ;;  %v1952_v43 = vadd.f32 %v6140_v42, %v1951_v30  ;;  %v2742_v44 = vpop.f32.mrf.mxu3  ;;  %v217_v39 = vld [vmem:[%s7228_s0 + $0x658] sm:$0xff] }
 0x30f   :  { %v1573_v45 = vpop.f32.mrf.mxu0 }
 0x310   :  { %v2737_v49 = vadd.f32 %v2736_v13, %v1952_v43  ;;  %v1574_v50 = vadd.f32 %v6140_v42, %v1573_v45  ;;  %3507 = vmatmul.msk.f32.gmra.mxu1 %vm549_vm1, %v209_v41  ;;  %v460_v13 = vld [vmem:[%s7228_s0 + $0xdf0] sm:$0xff]  ;;  %v210_v43 = vld [vmem:[%s7228_s0 + $0x620] sm:$0xff] }
 0x312   :  { %v3096_v52 = vmax.f32 %v2737_v49, 0.0  ;;  %v2359_v53 = vadd.f32 %v6047_v60, %v1574_v50  ;;  %1620 = vmatmul.f32.gmra.mxu0 %v202_v47  ;;  %2001 = vmatmul.f32.gmra.mxu2 %v456_v48  ;;  %v469_v48 = vld [vmem:[%s7228_s0 + $0xe38] sm:$0xff] }
 0x313   :  { %3633 = vmatmul.msk.f32.gmra.mxu3 %vm549_vm1, %v461_v51 }
 0x314   :  { %3353 = vst.msk [vmem:[%s7230_s3 + $0x660] sm:$0xff] %vm3148_vm2, %v3096_v52  ;;  %v2970_v54 = vmax.f32 %v2359_v53, 0.0 }
 0x315   :  { %v1954_v55 = vpop.f32.mrf.mxu2  ;;  %v6160_v56 = vpop.f32.mrf.mxu1 }
 0x316   :  { %3227 = vst.msk [vmem:[%s7230_s3 + $0x270] sm:$0xff] %vm3148_vm2, %v2970_v54  ;;  %v1955_v59 = vadd.f32 %v6140_v42, %v1954_v55  ;;  %v2745_v60 = vpop.f32.mrf.mxu3  ;;  %v219_v54 = vld [vmem:[%s7228_s0 + $0x668] sm:$0xff] }
 0x317   :  { %v1576_v61 = vpop.f32.mrf.mxu0 }
 0x318   :  { %v2740_v0 = vadd.f32 %v2739_v27, %v1955_v59  ;;  %v1577_v1 = vadd.f32 %v6140_v42, %v1576_v61  ;;  %3508 = vmatmul.msk.f32.gmra.mxu1 %vm549_vm1, %v211_v58  ;;  %v462_v27 = vld [vmem:[%s7228_s0 + $0xe00] sm:$0xff]  ;;  %v212_v59 = vld [vmem:[%s7228_s0 + $0x630] sm:$0xff] }
 0x31a   :  { %v3097_v3 = vmax.f32 %v2740_v0, 0.0  ;;  %v2362_v4 = vadd.f32 %v6074_v10, %v1577_v1  ;;  %1623 = vmatmul.f32.gmra.mxu0 %v204_v62  ;;  %2004 = vmatmul.f32.gmra.mxu2 %v458_v63  ;;  %v471_v63 = vld [vmem:[%s7228_s0 + $0xe48] sm:$0xff] }
 0x31b   :  { %3634 = vmatmul.msk.f32.gmra.mxu3 %vm549_vm1, %v463_v2 }
 0x31c   :  { %3354 = vst.msk [vmem:[%s7230_s3 + $0x668] sm:$0xff] %vm3148_vm2, %v3097_v3  ;;  %v2971_v5 = vmax.f32 %v2362_v4, 0.0 }
 0x31d   :  { %v1957_v6 = vpop.f32.mrf.mxu2  ;;  %v6187_v7 = vpop.f32.mrf.mxu1 }
 0x31e   :  { %3228 = vst.msk [vmem:[%s7230_s3 + $0x278] sm:$0xff] %vm3148_vm2, %v2971_v5  ;;  %v1958_v9 = vadd.f32 %v6140_v42, %v1957_v6  ;;  %v2748_v10 = vpop.f32.mrf.mxu3  ;;  %v221_v5 = vld [vmem:[%s7228_s0 + $0x678] sm:$0xff] }
 0x31f   :  { %v1579_v11 = vpop.f32.mrf.mxu0 }
 0x320   :  { %v2743_v14 = vadd.f32 %v2742_v44, %v1958_v9  ;;  %v1580_v15 = vadd.f32 %v6140_v42, %v1579_v11  ;;  %3509 = vmatmul.msk.f32.gmra.mxu1 %vm549_vm1, %v213_v8  ;;  %v464_v44 = vld [vmem:[%s7228_s0 + $0xe10] sm:$0xff]  ;;  %v214_v9 = vld [vmem:[%s7228_s0 + $0x640] sm:$0xff] }
 0x322   :  { %v3098_v17 = vmax.f32 %v2743_v14, 0.0  ;;  %v2365_v18 = vadd.f32 %v6101_v24, %v1580_v15  ;;  %1626 = vmatmul.f32.gmra.mxu0 %v206_v12  ;;  %2007 = vmatmul.f32.gmra.mxu2 %v460_v13  ;;  %v473_v13 = vld [vmem:[%s7228_s0 + $0xe58] sm:$0xff] }
 0x323   :  { %3635 = vmatmul.msk.f32.gmra.mxu3 %vm549_vm1, %v465_v16 }
 0x324   :  { %3355 = vst.msk [vmem:[%s7230_s3 + $0x670] sm:$0xff] %vm3148_vm2, %v3098_v17  ;;  %v2972_v19 = vmax.f32 %v2365_v18, 0.0 }
 0x325   :  { %v1960_v20 = vpop.f32.mrf.mxu2  ;;  %v6214_v21 = vpop.f32.mrf.mxu1 }
 0x326   :  { %3229 = vst.msk [vmem:[%s7230_s3 + $0x280] sm:$0xff] %vm3148_vm2, %v2972_v19  ;;  %v1961_v23 = vadd.f32 %v6140_v42, %v1960_v20  ;;  %v2751_v24 = vpop.f32.mrf.mxu3  ;;  %v223_v19 = vld [vmem:[%s7228_s0 + $0x688] sm:$0xff] }
 0x327   :  { %v1582_v26 = vpop.f32.mrf.mxu0 }
 0x328   :  { %v2746_v25 = vadd.f32 %v2745_v60, %v1961_v23  ;;  %v1583_v29 = vadd.f32 %v6140_v42, %v1582_v26  ;;  %3510 = vmatmul.msk.f32.gmra.mxu1 %vm549_vm1, %v215_v22  ;;  %v466_v60 = vld [vmem:[%s7228_s0 + $0xe20] sm:$0xff]  ;;  %v216_v23 = vld [vmem:[%s7228_s0 + $0x650] sm:$0xff] }
 0x32a   :  { %v3099_v32 = vmax.f32 %v2746_v25, 0.0  ;;  %v2368_v33 = vadd.f32 %v6128_v40, %v1583_v29  ;;  %1629 = vmatmul.f32.gmra.mxu0 %v208_v28  ;;  %2010 = vmatmul.f32.gmra.mxu2 %v462_v27  ;;  %v475_v27 = vld [vmem:[%s7228_s0 + $0xe68] sm:$0xff] }
 0x32b   :  { %3636 = vmatmul.msk.f32.gmra.mxu3 %vm549_vm1, %v467_v31 }
 0x32c   :  { %3356 = vst.msk [vmem:[%s7230_s3 + $0x678] sm:$0xff] %vm3148_vm2, %v3099_v32  ;;  %v2973_v34 = vmax.f32 %v2368_v33, 0.0 }
 0x32d   :  { %v1963_v36 = vpop.f32.mrf.mxu2  ;;  %v6241_v37 = vpop.f32.mrf.mxu1 }
 0x32e   :  { %3230 = vst.msk [vmem:[%s7230_s3 + $0x288] sm:$0xff] %vm3148_vm2, %v2973_v34  ;;  %v1964_v30 = vadd.f32 %v6140_v42, %v1963_v36  ;;  %v2754_v40 = vpop.f32.mrf.mxu3  ;;  %v225_v34 = vld [vmem:[%s7228_s0 + $0x698] sm:$0xff] }
 0x32f   :  { %v1585_v41 = vpop.f32.mrf.mxu0 }
 0x330   :  { %v2749_v45 = vadd.f32 %v2748_v10, %v1964_v30  ;;  %v1586_v47 = vadd.f32 %v6140_v42, %v1585_v41  ;;  %3511 = vmatmul.msk.f32.gmra.mxu1 %vm549_vm1, %v217_v39  ;;  %v468_v10 = vld [vmem:[%s7228_s0 + $0xe30] sm:$0xff]  ;;  %v218_v30 = vld [vmem:[%s7228_s0 + $0x660] sm:$0xff] }
 0x332   :  { %v3100_v49 = vmax.f32 %v2749_v45, 0.0  ;;  %v2371_v50 = vadd.f32 %v6160_v56, %v1586_v47  ;;  %1632 = vmatmul.f32.gmra.mxu0 %v210_v43  ;;  %2013 = vmatmul.f32.gmra.mxu2 %v464_v44  ;;  %v477_v44 = vld [vmem:[%s7228_s0 + $0xe78] sm:$0xff] }
 0x333   :  { %3637 = vmatmul.msk.f32.gmra.mxu3 %vm549_vm1, %v469_v48 }
 0x334   :  { %3357 = vst.msk [vmem:[%s7230_s3 + $0x680] sm:$0xff] %vm3148_vm2, %v3100_v49  ;;  %v2974_v51 = vmax.f32 %v2371_v50, 0.0 }
 0x335   :  { %v1966_v52 = vpop.f32.mrf.mxu2  ;;  %v6268_v53 = vpop.f32.mrf.mxu1 }
 0x336   :  { %3231 = vst.msk [vmem:[%s7230_s3 + $0x290] sm:$0xff] %vm3148_vm2, %v2974_v51  ;;  %v1967_v55 = vadd.f32 %v6140_v42, %v1966_v52  ;;  %v2757_v56 = vpop.f32.mrf.mxu3  ;;  %v227_v51 = vld [vmem:[%s7228_s0 + $0x6a8] sm:$0xff] }
 0x337   :  { %v1588_v58 = vpop.f32.mrf.mxu0 }
 0x338   :  { %v2752_v61 = vadd.f32 %v2751_v24, %v1967_v55  ;;  %v1589_v62 = vadd.f32 %v6140_v42, %v1588_v58  ;;  %3512 = vmatmul.msk.f32.gmra.mxu1 %vm549_vm1, %v219_v54  ;;  %v470_v24 = vld [vmem:[%s7228_s0 + $0xe40] sm:$0xff]  ;;  %v220_v55 = vld [vmem:[%s7228_s0 + $0x670] sm:$0xff] }
 0x33a   :  { %v3101_v0 = vmax.f32 %v2752_v61, 0.0  ;;  %v2374_v1 = vadd.f32 %v6187_v7, %v1589_v62  ;;  %1635 = vmatmul.f32.gmra.mxu0 %v212_v59  ;;  %2016 = vmatmul.f32.gmra.mxu2 %v466_v60  ;;  %v479_v60 = vld [vmem:[%s7228_s0 + $0xe88] sm:$0xff] }
 0x33b   :  { %3638 = vmatmul.msk.f32.gmra.mxu3 %vm549_vm1, %v471_v63 }
 0x33c   :  { %3358 = vst.msk [vmem:[%s7230_s3 + $0x688] sm:$0xff] %vm3148_vm2, %v3101_v0  ;;  %v2975_v2 = vmax.f32 %v2374_v1, 0.0 }
 0x33d   :  { %v1969_v3 = vpop.f32.mrf.mxu2  ;;  %v6295_v4 = vpop.f32.mrf.mxu1 }
 0x33e   :  { %3232 = vst.msk [vmem:[%s7230_s3 + $0x298] sm:$0xff] %vm3148_vm2, %v2975_v2  ;;  %v1970_v6 = vadd.f32 %v6140_v42, %v1969_v3  ;;  %v2760_v7 = vpop.f32.mrf.mxu3  ;;  %v229_v2 = vld [vmem:[%s7228_s0 + $0x6b8] sm:$0xff] }
 0x33f   :  { %v1591_v8 = vpop.f32.mrf.mxu0 }
 0x340   :  { %v2755_v11 = vadd.f32 %v2754_v40, %v1970_v6  ;;  %v1592_v12 = vadd.f32 %v6140_v42, %v1591_v8  ;;  %3513 = vmatmul.msk.f32.gmra.mxu1 %vm549_vm1, %v221_v5  ;;  %v472_v40 = vld [vmem:[%s7228_s0 + $0xe50] sm:$0xff]  ;;  %v222_v6 = vld [vmem:[%s7228_s0 + $0x680] sm:$0xff] }
 0x342   :  { %v3102_v14 = vmax.f32 %v2755_v11, 0.0  ;;  %v2377_v15 = vadd.f32 %v6214_v21, %v1592_v12  ;;  %1638 = vmatmul.f32.gmra.mxu0 %v214_v9  ;;  %2019 = vmatmul.f32.gmra.mxu2 %v468_v10  ;;  %v481_v10 = vld [vmem:[%s7228_s0 + $0xe98] sm:$0xff] }
 0x343   :  { %3639 = vmatmul.msk.f32.gmra.mxu3 %vm549_vm1, %v473_v13 }
 0x344   :  { %3359 = vst.msk [vmem:[%s7230_s3 + $0x690] sm:$0xff] %vm3148_vm2, %v3102_v14  ;;  %v2976_v16 = vmax.f32 %v2377_v15, 0.0 }
 0x345   :  { %v1972_v17 = vpop.f32.mrf.mxu2  ;;  %v6322_v18 = vpop.f32.mrf.mxu1 }
 0x346   :  { %3233 = vst.msk [vmem:[%s7230_s3 + $0x2a0] sm:$0xff] %vm3148_vm2, %v2976_v16  ;;  %v1973_v20 = vadd.f32 %v6140_v42, %v1972_v17  ;;  %v2763_v21 = vpop.f32.mrf.mxu3  ;;  %v231_v16 = vld [vmem:[%s7228_s0 + $0x6c8] sm:$0xff] }
 0x347   :  { %v1594_v22 = vpop.f32.mrf.mxu0 }
 0x348   :  { %v2758_v26 = vadd.f32 %v2757_v56, %v1973_v20  ;;  %v1595_v28 = vadd.f32 %v6140_v42, %v1594_v22  ;;  %3514 = vmatmul.msk.f32.gmra.mxu1 %vm549_vm1, %v223_v19  ;;  %v474_v56 = vld [vmem:[%s7228_s0 + $0xe60] sm:$0xff]  ;;  %v224_v20 = vld [vmem:[%s7228_s0 + $0x690] sm:$0xff] }
 0x34a   :  { %v3103_v25 = vmax.f32 %v2758_v26, 0.0  ;;  %v2380_v29 = vadd.f32 %v6241_v37, %v1595_v28  ;;  %1641 = vmatmul.f32.gmra.mxu0 %v216_v23  ;;  %2022 = vmatmul.f32.gmra.mxu2 %v470_v24  ;;  %v483_v24 = vld [vmem:[%s7228_s0 + $0xea8] sm:$0xff] }
 0x34b   :  { %3640 = vmatmul.msk.f32.gmra.mxu3 %vm549_vm1, %v475_v27 }
 0x34c   :  { %3360 = vst.msk [vmem:[%s7230_s3 + $0x698] sm:$0xff] %vm3148_vm2, %v3103_v25  ;;  %v2977_v31 = vmax.f32 %v2380_v29, 0.0 }
 0x34d   :  { %v1975_v32 = vpop.f32.mrf.mxu2  ;;  %v6349_v33 = vpop.f32.mrf.mxu1 }
 0x34e   :  { %3234 = vst.msk [vmem:[%s7230_s3 + $0x2a8] sm:$0xff] %vm3148_vm2, %v2977_v31  ;;  %v1976_v36 = vadd.f32 %v6140_v42, %v1975_v32  ;;  %v2766_v37 = vpop.f32.mrf.mxu3  ;;  %v233_v31 = vld [vmem:[%s7228_s0 + $0x6d8] sm:$0xff] }
 0x34f   :  { %v1597_v39 = vpop.f32.mrf.mxu0 }
 0x350   :  { %v2761_v41 = vadd.f32 %v2760_v7, %v1976_v36  ;;  %v1598_v43 = vadd.f32 %v6140_v42, %v1597_v39  ;;  %3515 = vmatmul.msk.f32.gmra.mxu1 %vm549_vm1, %v225_v34  ;;  %v476_v7 = vld [vmem:[%s7228_s0 + $0xe70] sm:$0xff]  ;;  %v226_v36 = vld [vmem:[%s7228_s0 + $0x6a0] sm:$0xff] }
 0x352   :  { %v3104_v45 = vmax.f32 %v2761_v41, 0.0  ;;  %v2383_v47 = vadd.f32 %v6268_v53, %v1598_v43  ;;  %1644 = vmatmul.f32.gmra.mxu0 %v218_v30  ;;  %2025 = vmatmul.f32.gmra.mxu2 %v472_v40  ;;  %v485_v40 = vld [vmem:[%s7228_s0 + $0xeb8] sm:$0xff] }
 0x353   :  { %3641 = vmatmul.msk.f32.gmra.mxu3 %vm549_vm1, %v477_v44 }
 0x354   :  { %3361 = vst.msk [vmem:[%s7230_s3 + $0x6a0] sm:$0xff] %vm3148_vm2, %v3104_v45  ;;  %v2978_v48 = vmax.f32 %v2383_v47, 0.0 }
 0x355   :  { %v1978_v49 = vpop.f32.mrf.mxu2  ;;  %v6376_v50 = vpop.f32.mrf.mxu1 }
 0x356   :  { %3235 = vst.msk [vmem:[%s7230_s3 + $0x2b0] sm:$0xff] %vm3148_vm2, %v2978_v48  ;;  %v1979_v52 = vadd.f32 %v6140_v42, %v1978_v49  ;;  %v2769_v53 = vpop.f32.mrf.mxu3  ;;  %v235_v48 = vld [vmem:[%s7228_s0 + $0x6e8] sm:$0xff] }
 0x357   :  { %v1600_v54 = vpop.f32.mrf.mxu0 }
 0x358   :  { %v2764_v58 = vadd.f32 %v2763_v21, %v1979_v52  ;;  %v1601_v59 = vadd.f32 %v6140_v42, %v1600_v54  ;;  %3516 = vmatmul.msk.f32.gmra.mxu1 %vm549_vm1, %v227_v51  ;;  %v478_v21 = vld [vmem:[%s7228_s0 + $0xe80] sm:$0xff]  ;;  %v228_v52 = vld [vmem:[%s7228_s0 + $0x6b0] sm:$0xff] }
 0x35a   :  { %v3105_v61 = vmax.f32 %v2764_v58, 0.0  ;;  %v2386_v62 = vadd.f32 %v6295_v4, %v1601_v59  ;;  %1647 = vmatmul.f32.gmra.mxu0 %v220_v55  ;;  %2028 = vmatmul.f32.gmra.mxu2 %v474_v56  ;;  %v487_v56 = vld [vmem:[%s7228_s0 + $0xec8] sm:$0xff] }
 0x35b   :  { %3642 = vmatmul.msk.f32.gmra.mxu3 %vm549_vm1, %v479_v60 }
 0x35c   :  { %3362 = vst.msk [vmem:[%s7230_s3 + $0x6a8] sm:$0xff] %vm3148_vm2, %v3105_v61  ;;  %v2979_v63 = vmax.f32 %v2386_v62, 0.0 }
 0x35d   :  { %v1981_v0 = vpop.f32.mrf.mxu2  ;;  %v6403_v1 = vpop.f32.mrf.mxu1 }
 0x35e   :  { %3236 = vst.msk [vmem:[%s7230_s3 + $0x2b8] sm:$0xff] %vm3148_vm2, %v2979_v63  ;;  %v1982_v3 = vadd.f32 %v6140_v42, %v1981_v0  ;;  %v2772_v4 = vpop.f32.mrf.mxu3  ;;  %v237_v63 = vld [vmem:[%s7228_s0 + $0x6f8] sm:$0xff] }
 0x35f   :  { %v1603_v5 = vpop.f32.mrf.mxu0 }
 0x360   :  { %v2767_v8 = vadd.f32 %v2766_v37, %v1982_v3  ;;  %v1604_v9 = vadd.f32 %v6140_v42, %v1603_v5  ;;  %3517 = vmatmul.msk.f32.gmra.mxu1 %vm549_vm1, %v229_v2  ;;  %v480_v37 = vld [vmem:[%s7228_s0 + $0xe90] sm:$0xff]  ;;  %v230_v3 = vld [vmem:[%s7228_s0 + $0x6c0] sm:$0xff] }
 0x362   :  { %v3106_v11 = vmax.f32 %v2767_v8, 0.0  ;;  %v2389_v12 = vadd.f32 %v6322_v18, %v1604_v9  ;;  %1650 = vmatmul.f32.gmra.mxu0 %v222_v6  ;;  %2031 = vmatmul.f32.gmra.mxu2 %v476_v7  ;;  %v489_v7 = vld [vmem:[%s7228_s0 + $0xed8] sm:$0xff] }
 0x363   :  { %3643 = vmatmul.msk.f32.gmra.mxu3 %vm549_vm1, %v481_v10 }
 0x364   :  { %3363 = vst.msk [vmem:[%s7230_s3 + $0x6b0] sm:$0xff] %vm3148_vm2, %v3106_v11  ;;  %v2980_v13 = vmax.f32 %v2389_v12, 0.0 }
 0x365   :  { %v1984_v14 = vpop.f32.mrf.mxu2  ;;  %v6430_v15 = vpop.f32.mrf.mxu1 }
 0x366   :  { %3237 = vst.msk [vmem:[%s7230_s3 + $0x2c0] sm:$0xff] %vm3148_vm2, %v2980_v13  ;;  %v1985_v17 = vadd.f32 %v6140_v42, %v1984_v14  ;;  %v2775_v18 = vpop.f32.mrf.mxu3  ;;  %v239_v13 = vld [vmem:[%s7228_s0 + $0x708] sm:$0xff] }
 0x367   :  { %v1606_v19 = vpop.f32.mrf.mxu0 }
 0x368   :  { %v2770_v22 = vadd.f32 %v2769_v53, %v1985_v17  ;;  %v1607_v23 = vadd.f32 %v6140_v42, %v1606_v19  ;;  %3518 = vmatmul.msk.f32.gmra.mxu1 %vm549_vm1, %v231_v16  ;;  %v482_v53 = vld [vmem:[%s7228_s0 + $0xea0] sm:$0xff]  ;;  %v232_v17 = vld [vmem:[%s7228_s0 + $0x6d0] sm:$0xff] }
 0x36a   :  { %v3107_v26 = vmax.f32 %v2770_v22, 0.0  ;;  %v2392_v28 = vadd.f32 %v6349_v33, %v1607_v23  ;;  %1653 = vmatmul.f32.gmra.mxu0 %v224_v20  ;;  %2034 = vmatmul.f32.gmra.mxu2 %v478_v21  ;;  %v491_v21 = vld [vmem:[%s7228_s0 + $0xee8] sm:$0xff] }
 0x36b   :  { %3644 = vmatmul.msk.f32.gmra.mxu3 %vm549_vm1, %v483_v24 }
 0x36c   :  { %3364 = vst.msk [vmem:[%s7230_s3 + $0x6b8] sm:$0xff] %vm3148_vm2, %v3107_v26  ;;  %v2981_v27 = vmax.f32 %v2392_v28, 0.0 }
 0x36d   :  { %v1987_v25 = vpop.f32.mrf.mxu2  ;;  %v6457_v29 = vpop.f32.mrf.mxu1 }
 0x36e   :  { %3238 = vst.msk [vmem:[%s7230_s3 + $0x2c8] sm:$0xff] %vm3148_vm2, %v2981_v27  ;;  %v1988_v32 = vadd.f32 %v6140_v42, %v1987_v25  ;;  %v2778_v33 = vpop.f32.mrf.mxu3  ;;  %v241_v27 = vld [vmem:[%s7228_s0 + $0x718] sm:$0xff] }
 0x36f   :  { %v1609_v34 = vpop.f32.mrf.mxu0 }
 0x370   :  { %v2773_v39 = vadd.f32 %v2772_v4, %v1988_v32  ;;  %v1610_v30 = vadd.f32 %v6140_v42, %v1609_v34  ;;  %3519 = vmatmul.msk.f32.gmra.mxu1 %vm549_vm1, %v233_v31  ;;  %v484_v4 = vld [vmem:[%s7228_s0 + $0xeb0] sm:$0xff]  ;;  %v234_v32 = vld [vmem:[%s7228_s0 + $0x6e0] sm:$0xff] }
 0x372   :  { %v3108_v41 = vmax.f32 %v2773_v39, 0.0  ;;  %v2395_v43 = vadd.f32 %v6376_v50, %v1610_v30  ;;  %1656 = vmatmul.f32.gmra.mxu0 %v226_v36  ;;  %2037 = vmatmul.f32.gmra.mxu2 %v480_v37  ;;  %v493_v37 = vld [vmem:[%s7228_s0 + $0xef8] sm:$0xff] }
 0x373   :  { %3645 = vmatmul.msk.f32.gmra.mxu3 %vm549_vm1, %v485_v40 }
 0x374   :  { %3365 = vst.msk [vmem:[%s7230_s3 + $0x6c0] sm:$0xff] %vm3148_vm2, %v3108_v41  ;;  %v2982_v44 = vmax.f32 %v2395_v43, 0.0 }
 0x375   :  { %v1990_v45 = vpop.f32.mrf.mxu2  ;;  %v6484_v47 = vpop.f32.mrf.mxu1 }
 0x376   :  { %3239 = vst.msk [vmem:[%s7230_s3 + $0x2d0] sm:$0xff] %vm3148_vm2, %v2982_v44  ;;  %v1991_v49 = vadd.f32 %v6140_v42, %v1990_v45  ;;  %v2781_v50 = vpop.f32.mrf.mxu3  ;;  %v243_v44 = vld [vmem:[%s7228_s0 + $0x728] sm:$0xff] }
 0x377   :  { %v1612_v51 = vpop.f32.mrf.mxu0 }
 0x378   :  { %v2776_v54 = vadd.f32 %v2775_v18, %v1991_v49  ;;  %v1613_v55 = vadd.f32 %v6140_v42, %v1612_v51  ;;  %3520 = vmatmul.msk.f32.gmra.mxu1 %vm549_vm1, %v235_v48  ;;  %v486_v18 = vld [vmem:[%s7228_s0 + $0xec0] sm:$0xff]  ;;  %v236_v49 = vld [vmem:[%s7228_s0 + $0x6f0] sm:$0xff] }
 0x37a   :  { %v3109_v58 = vmax.f32 %v2776_v54, 0.0  ;;  %v2398_v59 = vadd.f32 %v6403_v1, %v1613_v55  ;;  %1659 = vmatmul.f32.gmra.mxu0 %v228_v52  ;;  %2040 = vmatmul.f32.gmra.mxu2 %v482_v53  ;;  %v495_v53 = vld [vmem:[%s7228_s0 + $0xf08] sm:$0xff] }
 0x37b   :  { %3646 = vmatmul.msk.f32.gmra.mxu3 %vm549_vm1, %v487_v56 }
 0x37c   :  { %3366 = vst.msk [vmem:[%s7230_s3 + $0x6c8] sm:$0xff] %vm3148_vm2, %v3109_v58  ;;  %v2983_v60 = vmax.f32 %v2398_v59, 0.0 }
 0x37d   :  { %v1993_v61 = vpop.f32.mrf.mxu2  ;;  %v6511_v62 = vpop.f32.mrf.mxu1 }
 0x37e   :  { %3240 = vst.msk [vmem:[%s7230_s3 + $0x2d8] sm:$0xff] %vm3148_vm2, %v2983_v60  ;;  %v1994_v0 = vadd.f32 %v6140_v42, %v1993_v61  ;;  %v2784_v1 = vpop.f32.mrf.mxu3  ;;  %v245_v60 = vld [vmem:[%s7228_s0 + $0x738] sm:$0xff] }
 0x37f   :  { %v1615_v2 = vpop.f32.mrf.mxu0 }
 0x380   :  { %v2779_v5 = vadd.f32 %v2778_v33, %v1994_v0  ;;  %v1616_v6 = vadd.f32 %v6140_v42, %v1615_v2  ;;  %3521 = vmatmul.msk.f32.gmra.mxu1 %vm549_vm1, %v237_v63  ;;  %v488_v33 = vld [vmem:[%s7228_s0 + $0xed0] sm:$0xff]  ;;  %v238_v0 = vld [vmem:[%s7228_s0 + $0x700] sm:$0xff] }
 0x382   :  { %v3110_v8 = vmax.f32 %v2779_v5, 0.0  ;;  %v2401_v9 = vadd.f32 %v6430_v15, %v1616_v6  ;;  %1662 = vmatmul.f32.gmra.mxu0 %v230_v3  ;;  %2043 = vmatmul.f32.gmra.mxu2 %v484_v4  ;;  %v497_v4 = vld [vmem:[%s7228_s0 + $0xf18] sm:$0xff] }
 0x383   :  { %3647 = vmatmul.msk.f32.gmra.mxu3 %vm549_vm1, %v489_v7 }
 0x384   :  { %3367 = vst.msk [vmem:[%s7230_s3 + $0x6d0] sm:$0xff] %vm3148_vm2, %v3110_v8  ;;  %v2984_v10 = vmax.f32 %v2401_v9, 0.0 }
 0x385   :  { %v1996_v11 = vpop.f32.mrf.mxu2  ;;  %v6538_v12 = vpop.f32.mrf.mxu1 }
 0x386   :  { %3241 = vst.msk [vmem:[%s7230_s3 + $0x2e0] sm:$0xff] %vm3148_vm2, %v2984_v10  ;;  %v1997_v14 = vadd.f32 %v6140_v42, %v1996_v11  ;;  %v2787_v15 = vpop.f32.mrf.mxu3  ;;  %v247_v10 = vld [vmem:[%s7228_s0 + $0x748] sm:$0xff] }
 0x387   :  { %v1618_v16 = vpop.f32.mrf.mxu0 }
 0x388   :  { %v2782_v19 = vadd.f32 %v2781_v50, %v1997_v14  ;;  %v1619_v20 = vadd.f32 %v6140_v42, %v1618_v16  ;;  %3522 = vmatmul.msk.f32.gmra.mxu1 %vm549_vm1, %v239_v13  ;;  %v490_v50 = vld [vmem:[%s7228_s0 + $0xee0] sm:$0xff]  ;;  %v240_v14 = vld [vmem:[%s7228_s0 + $0x710] sm:$0xff] }
 0x38a   :  { %v3111_v22 = vmax.f32 %v2782_v19, 0.0  ;;  %v2404_v23 = vadd.f32 %v6457_v29, %v1619_v20  ;;  %1665 = vmatmul.f32.gmra.mxu0 %v232_v17  ;;  %2046 = vmatmul.f32.gmra.mxu2 %v486_v18  ;;  %v499_v18 = vld [vmem:[%s7228_s0 + $0xf28] sm:$0xff] }
 0x38b   :  { %3648 = vmatmul.msk.f32.gmra.mxu3 %vm549_vm1, %v491_v21 }
 0x38c   :  { %3368 = vst.msk [vmem:[%s7230_s3 + $0x6d8] sm:$0xff] %vm3148_vm2, %v3111_v22  ;;  %v2985_v24 = vmax.f32 %v2404_v23, 0.0 }
 0x38d   :  { %v1999_v26 = vpop.f32.mrf.mxu2  ;;  %v6565_v28 = vpop.f32.mrf.mxu1 }
 0x38e   :  { %3242 = vst.msk [vmem:[%s7230_s3 + $0x2e8] sm:$0xff] %vm3148_vm2, %v2985_v24  ;;  %v2000_v25 = vadd.f32 %v6140_v42, %v1999_v26  ;;  %v2790_v29 = vpop.f32.mrf.mxu3  ;;  %v249_v24 = vld [vmem:[%s7228_s0 + $0x758] sm:$0xff] }
 0x38f   :  { %v1621_v31 = vpop.f32.mrf.mxu0 }
 0x390   :  { %v2785_v34 = vadd.f32 %v2784_v1, %v2000_v25  ;;  %v1622_v36 = vadd.f32 %v6140_v42, %v1621_v31  ;;  %3523 = vmatmul.msk.f32.gmra.mxu1 %vm549_vm1, %v241_v27  ;;  %v492_v1 = vld [vmem:[%s7228_s0 + $0xef0] sm:$0xff]  ;;  %v242_v25 = vld [vmem:[%s7228_s0 + $0x720] sm:$0xff] }
 0x392   :  { %v3112_v39 = vmax.f32 %v2785_v34, 0.0  ;;  %v2407_v30 = vadd.f32 %v6484_v47, %v1622_v36  ;;  %1668 = vmatmul.f32.gmra.mxu0 %v234_v32  ;;  %2049 = vmatmul.f32.gmra.mxu2 %v488_v33  ;;  %v501_v33 = vld [vmem:[%s7228_s0 + $0xf38] sm:$0xff] }
 0x393   :  { %3649 = vmatmul.msk.f32.gmra.mxu3 %vm549_vm1, %v493_v37 }
 0x394   :  { %3369 = vst.msk [vmem:[%s7230_s3 + $0x6e0] sm:$0xff] %vm3148_vm2, %v3112_v39  ;;  %v2986_v40 = vmax.f32 %v2407_v30, 0.0 }
 0x395   :  { %v2002_v41 = vpop.f32.mrf.mxu2  ;;  %v6592_v43 = vpop.f32.mrf.mxu1 }
 0x396   :  { %3243 = vst.msk [vmem:[%s7230_s3 + $0x2f0] sm:$0xff] %vm3148_vm2, %v2986_v40  ;;  %v2003_v45 = vadd.f32 %v6140_v42, %v2002_v41  ;;  %v2793_v47 = vpop.f32.mrf.mxu3  ;;  %v251_v40 = vld [vmem:[%s7228_s0 + $0x768] sm:$0xff] }
 0x397   :  { %v1624_v48 = vpop.f32.mrf.mxu0 }
 0x398   :  { %v2788_v51 = vadd.f32 %v2787_v15, %v2003_v45  ;;  %v1625_v52 = vadd.f32 %v6140_v42, %v1624_v48  ;;  %3524 = vmatmul.msk.f32.gmra.mxu1 %vm549_vm1, %v243_v44  ;;  %v494_v15 = vld [vmem:[%s7228_s0 + $0xf00] sm:$0xff]  ;;  %v244_v45 = vld [vmem:[%s7228_s0 + $0x730] sm:$0xff] }
 0x39a   :  { %v3113_v54 = vmax.f32 %v2788_v51, 0.0  ;;  %v2410_v55 = vadd.f32 %v6511_v62, %v1625_v52  ;;  %1671 = vmatmul.f32.gmra.mxu0 %v236_v49  ;;  %2052 = vmatmul.f32.gmra.mxu2 %v490_v50  ;;  %v503_v50 = vld [vmem:[%s7228_s0 + $0xf48] sm:$0xff] }
 0x39b   :  { %3650 = vmatmul.msk.f32.gmra.mxu3 %vm549_vm1, %v495_v53 }
 0x39c   :  { %3370 = vst.msk [vmem:[%s7230_s3 + $0x6e8] sm:$0xff] %vm3148_vm2, %v3113_v54  ;;  %v2987_v56 = vmax.f32 %v2410_v55, 0.0 }
 0x39d   :  { %v2005_v58 = vpop.f32.mrf.mxu2  ;;  %v6619_v59 = vpop.f32.mrf.mxu1 }
 0x39e   :  { %3244 = vst.msk [vmem:[%s7230_s3 + $0x2f8] sm:$0xff] %vm3148_vm2, %v2987_v56  ;;  %v2006_v61 = vadd.f32 %v6140_v42, %v2005_v58  ;;  %v2796_v62 = vpop.f32.mrf.mxu3  ;;  %v253_v56 = vld [vmem:[%s7228_s0 + $0x778] sm:$0xff] }
 0x39f   :  { %v1627_v63 = vpop.f32.mrf.mxu0 }
 0x3a0   :  { %v2791_v2 = vadd.f32 %v2790_v29, %v2006_v61  ;;  %v1628_v3 = vadd.f32 %v6140_v42, %v1627_v63  ;;  %3525 = vmatmul.msk.f32.gmra.mxu1 %vm549_vm1, %v245_v60  ;;  %v496_v29 = vld [vmem:[%s7228_s0 + $0xf10] sm:$0xff]  ;;  %v246_v61 = vld [vmem:[%s7228_s0 + $0x740] sm:$0xff] }
 0x3a2   :  { %v3114_v5 = vmax.f32 %v2791_v2, 0.0  ;;  %v2413_v6 = vadd.f32 %v6538_v12, %v1628_v3  ;;  %1674 = vmatmul.f32.gmra.mxu0 %v238_v0  ;;  %2055 = vmatmul.f32.gmra.mxu2 %v492_v1  ;;  %v505_v1 = vld [vmem:[%s7228_s0 + $0xf58] sm:$0xff] }
 0x3a3   :  { %3651 = vmatmul.msk.f32.gmra.mxu3 %vm549_vm1, %v497_v4 }
 0x3a4   :  { %3371 = vst.msk [vmem:[%s7230_s3 + $0x6f0] sm:$0xff] %vm3148_vm2, %v3114_v5  ;;  %v2988_v7 = vmax.f32 %v2413_v6, 0.0 }
 0x3a5   :  { %v2008_v8 = vpop.f32.mrf.mxu2  ;;  %v6646_v9 = vpop.f32.mrf.mxu1 }
 0x3a6   :  { %3245 = vst.msk [vmem:[%s7230_s3 + $0x300] sm:$0xff] %vm3148_vm2, %v2988_v7  ;;  %v2009_v11 = vadd.f32 %v6140_v42, %v2008_v8  ;;  %v2799_v12 = vpop.f32.mrf.mxu3  ;;  %v255_v7 = vld [vmem:[%s7228_s0 + $0x788] sm:$0xff] }
 0x3a7   :  { %v1630_v13 = vpop.f32.mrf.mxu0 }
 0x3a8   :  { %v2794_v16 = vadd.f32 %v2793_v47, %v2009_v11  ;;  %v1631_v17 = vadd.f32 %v6140_v42, %v1630_v13  ;;  %3526 = vmatmul.msk.f32.gmra.mxu1 %vm549_vm1, %v247_v10  ;;  %v498_v47 = vld [vmem:[%s7228_s0 + $0xf20] sm:$0xff]  ;;  %v248_v11 = vld [vmem:[%s7228_s0 + $0x750] sm:$0xff] }
 0x3aa   :  { %v3115_v19 = vmax.f32 %v2794_v16, 0.0  ;;  %v2416_v20 = vadd.f32 %v6565_v28, %v1631_v17  ;;  %1677 = vmatmul.f32.gmra.mxu0 %v240_v14  ;;  %2058 = vmatmul.f32.gmra.mxu2 %v494_v15  ;;  %v507_v15 = vld [vmem:[%s7228_s0 + $0xf68] sm:$0xff] }
 0x3ab   :  { %3652 = vmatmul.msk.f32.gmra.mxu3 %vm549_vm1, %v499_v18 }
 0x3ac   :  { %3372 = vst.msk [vmem:[%s7230_s3 + $0x6f8] sm:$0xff] %vm3148_vm2, %v3115_v19  ;;  %v2989_v21 = vmax.f32 %v2416_v20, 0.0 }
 0x3ad   :  { %v2011_v22 = vpop.f32.mrf.mxu2  ;;  %v6673_v23 = vpop.f32.mrf.mxu1 }
 0x3ae   :  { %3246 = vst.msk [vmem:[%s7230_s3 + $0x308] sm:$0xff] %vm3148_vm2, %v2989_v21  ;;  %v2012_v26 = vadd.f32 %v6140_v42, %v2011_v22  ;;  %v2802_v28 = vpop.f32.mrf.mxu3  ;;  %v257_v21 = vld [vmem:[%s7228_s0 + $0x798] sm:$0xff] }
 0x3af   :  { %v1633_v27 = vpop.f32.mrf.mxu0 }
 0x3b0   :  { %v2797_v31 = vadd.f32 %v2796_v62, %v2012_v26  ;;  %v1634_v32 = vadd.f32 %v6140_v42, %v1633_v27  ;;  %3527 = vmatmul.msk.f32.gmra.mxu1 %vm549_vm1, %v249_v24  ;;  %v500_v62 = vld [vmem:[%s7228_s0 + $0xf30] sm:$0xff]  ;;  %v250_v26 = vld [vmem:[%s7228_s0 + $0x760] sm:$0xff] }
 0x3b2   :  { %v3116_v34 = vmax.f32 %v2797_v31, 0.0  ;;  %v2419_v36 = vadd.f32 %v6592_v43, %v1634_v32  ;;  %1680 = vmatmul.f32.gmra.mxu0 %v242_v25  ;;  %2061 = vmatmul.f32.gmra.mxu2 %v496_v29  ;;  %v509_v29 = vld [vmem:[%s7228_s0 + $0xf78] sm:$0xff] }
 0x3b3   :  { %3653 = vmatmul.msk.f32.gmra.mxu3 %vm549_vm1, %v501_v33 }
 0x3b4   :  { %3373 = vst.msk [vmem:[%s7230_s3 + $0x700] sm:$0xff] %vm3148_vm2, %v3116_v34  ;;  %v2990_v37 = vmax.f32 %v2419_v36, 0.0 }
 0x3b5   :  { %v2014_v39 = vpop.f32.mrf.mxu2  ;;  %v6700_v30 = vpop.f32.mrf.mxu1 }
 0x3b6   :  { %3247 = vst.msk [vmem:[%s7230_s3 + $0x310] sm:$0xff] %vm3148_vm2, %v2990_v37  ;;  %v2015_v41 = vadd.f32 %v6140_v42, %v2014_v39  ;;  %v2805_v43 = vpop.f32.mrf.mxu3  ;;  %v259_v37 = vld [vmem:[%s7228_s0 + $0x7a8] sm:$0xff] }
 0x3b7   :  { %v1636_v44 = vpop.f32.mrf.mxu0 }
 0x3b8   :  { %v2800_v48 = vadd.f32 %v2799_v12, %v2015_v41  ;;  %v1637_v49 = vadd.f32 %v6140_v42, %v1636_v44  ;;  %3528 = vmatmul.msk.f32.gmra.mxu1 %vm549_vm1, %v251_v40  ;;  %v502_v12 = vld [vmem:[%s7228_s0 + $0xf40] sm:$0xff]  ;;  %v252_v41 = vld [vmem:[%s7228_s0 + $0x770] sm:$0xff] }
 0x3ba   :  { %v3117_v51 = vmax.f32 %v2800_v48, 0.0  ;;  %v2422_v52 = vadd.f32 %v6619_v59, %v1637_v49  ;;  %1683 = vmatmul.f32.gmra.mxu0 %v244_v45  ;;  %2064 = vmatmul.f32.gmra.mxu2 %v498_v47  ;;  %v511_v47 = vld [vmem:[%s7228_s0 + $0xf88] sm:$0xff] }
 0x3bb   :  { %3654 = vmatmul.msk.f32.gmra.mxu3 %vm549_vm1, %v503_v50 }
 0x3bc   :  { %3374 = vst.msk [vmem:[%s7230_s3 + $0x708] sm:$0xff] %vm3148_vm2, %v3117_v51  ;;  %v2991_v53 = vmax.f32 %v2422_v52, 0.0  ;;  %v261_v52 = vld [vmem:[%s7228_s0 + $0x7b8] sm:$0xff] }
 0x3bd   :  { %v2017_v54 = vpop.f32.mrf.mxu2  ;;  %v6727_v55 = vpop.f32.mrf.mxu1 }
 0x3be   :  { %3248 = vst.msk [vmem:[%s7230_s3 + $0x318] sm:$0xff] %vm3148_vm2, %v2991_v53  ;;  %v2018_v58 = vadd.f32 %v6140_v42, %v2017_v54  ;;  %v2808_v59 = vpop.f32.mrf.mxu3  ;;  %v6847_v53 = vld [vmem:[%s7229_s2] ss:$0 sm:$0xff] }
 0x3bf   :  { %v1639_v60 = vpop.f32.mrf.mxu0 }
 0x3c0   :  { %v2803_v63 = vadd.f32 %v2802_v28, %v2018_v58  ;;  %v1640_v0 = vadd.f32 %v6140_v42, %v1639_v60  ;;  %3529 = vmatmul.msk.f32.gmra.mxu1 %vm549_vm1, %v253_v56  ;;  %v504_v28 = vld [vmem:[%s7228_s0 + $0xf50] sm:$0xff]  ;;  %v254_v58 = vld [vmem:[%s7228_s0 + $0x780] sm:$0xff] }
 0x3c2   :  { %v3118_v2 = vmax.f32 %v2803_v63, 0.0  ;;  %v2425_v3 = vadd.f32 %v6646_v9, %v1640_v0  ;;  %1686 = vmatmul.f32.gmra.mxu0 %v246_v61  ;;  %2067 = vmatmul.f32.gmra.mxu2 %v500_v62  ;;  %v513_v62 = vld [vmem:[%s7228_s0 + $0xf98] sm:$0xff] }
 0x3c3   :  { %3655 = vmatmul.msk.f32.gmra.mxu3 %vm549_vm1, %v505_v1 }
 0x3c4   :  { %3375 = vst.msk [vmem:[%s7230_s3 + $0x710] sm:$0xff] %vm3148_vm2, %v3118_v2  ;;  %v2992_v4 = vmax.f32 %v2425_v3, 0.0 }
 0x3c5   :  { %v2020_v5 = vpop.f32.mrf.mxu2  ;;  %v6754_v6 = vpop.f32.mrf.mxu1 }
 0x3c6   :  { %3249 = vst.msk [vmem:[%s7230_s3 + $0x320] sm:$0xff] %vm3148_vm2, %v2992_v4  ;;  %v2021_v8 = vadd.f32 %v6140_v42, %v2020_v5  ;;  %v2811_v9 = vpop.f32.mrf.mxu3  ;;  %v263_v4 = vld [vmem:[%s7228_s0 + $0x7c8] sm:$0xff] }
 0x3c7   :  { %v1642_v10 = vpop.f32.mrf.mxu0 }
 0x3c8   :  { %v2806_v13 = vadd.f32 %v2805_v43, %v2021_v8  ;;  %v1643_v14 = vadd.f32 %v6140_v42, %v1642_v10  ;;  %3530 = vmatmul.msk.f32.gmra.mxu1 %vm549_vm1, %v255_v7  ;;  %v506_v43 = vld [vmem:[%s7228_s0 + $0xf60] sm:$0xff]  ;;  %v256_v8 = vld [vmem:[%s7228_s0 + $0x790] sm:$0xff] }
 0x3ca   :  { %v3119_v16 = vmax.f32 %v2806_v13, 0.0  ;;  %v2428_v17 = vadd.f32 %v6673_v23, %v1643_v14  ;;  %1689 = vmatmul.f32.gmra.mxu0 %v248_v11  ;;  %2070 = vmatmul.f32.gmra.mxu2 %v502_v12  ;;  %v515_v12 = vld [vmem:[%s7228_s0 + $0xfa8] sm:$0xff] }
 0x3cb   :  { %3656 = vmatmul.msk.f32.gmra.mxu3 %vm549_vm1, %v507_v15 }
 0x3cc   :  { %3376 = vst.msk [vmem:[%s7230_s3 + $0x718] sm:$0xff] %vm3148_vm2, %v3119_v16  ;;  %v2993_v18 = vmax.f32 %v2428_v17, 0.0 }
 0x3cd   :  { %v2023_v19 = vpop.f32.mrf.mxu2  ;;  %v6781_v20 = vpop.f32.mrf.mxu1 }
 0x3ce   :  { %3250 = vst.msk [vmem:[%s7230_s3 + $0x328] sm:$0xff] %vm3148_vm2, %v2993_v18  ;;  %v2024_v22 = vadd.f32 %v6140_v42, %v2023_v19  ;;  %v2814_v23 = vpop.f32.mrf.mxu3  ;;  %v265_v18 = vld [vmem:[%s7228_s0 + $0x7d8] sm:$0xff] }
 0x3cf   :  { %v1645_v24 = vpop.f32.mrf.mxu0 }
 0x3d0   :  { %v2809_v27 = vadd.f32 %v2808_v59, %v2024_v22  ;;  %v1646_v25 = vadd.f32 %v6140_v42, %v1645_v24  ;;  %3531 = vmatmul.msk.f32.gmra.mxu1 %vm549_vm1, %v257_v21  ;;  %v508_v59 = vld [vmem:[%s7228_s0 + $0xf70] sm:$0xff]  ;;  %v258_v22 = vld [vmem:[%s7228_s0 + $0x7a0] sm:$0xff] }
 0x3d2   :  { %v3120_v31 = vmax.f32 %v2809_v27, 0.0  ;;  %v2431_v32 = vadd.f32 %v6700_v30, %v1646_v25  ;;  %1692 = vmatmul.f32.gmra.mxu0 %v250_v26  ;;  %2073 = vmatmul.f32.gmra.mxu2 %v504_v28  ;;  %v517_v28 = vld [vmem:[%s7228_s0 + $0xfb8] sm:$0xff] }
 0x3d3   :  { %3657 = vmatmul.msk.f32.gmra.mxu3 %vm549_vm1, %v509_v29 }
 0x3d4   :  { %3377 = vst.msk [vmem:[%s7230_s3 + $0x720] sm:$0xff] %vm3148_vm2, %v3120_v31  ;;  %v2994_v33 = vmax.f32 %v2431_v32, 0.0 }
 0x3d5   :  { %v2026_v34 = vpop.f32.mrf.mxu2  ;;  %v6808_v36 = vpop.f32.mrf.mxu1 }
 0x3d6   :  { %3251 = vst.msk [vmem:[%s7230_s3 + $0x330] sm:$0xff] %vm3148_vm2, %v2994_v33  ;;  %v2027_v39 = vadd.f32 %v6140_v42, %v2026_v34  ;;  %v2817_v30 = vpop.f32.mrf.mxu3  ;;  %v267_v33 = vld [vmem:[%s7228_s0 + $0x7e8] sm:$0xff] }
 0x3d7   :  { %v1648_v40 = vpop.f32.mrf.mxu0 }
 0x3d8   :  { %v2812_v44 = vadd.f32 %v2811_v9, %v2027_v39  ;;  %v1649_v45 = vadd.f32 %v6140_v42, %v1648_v40  ;;  %3532 = vmatmul.msk.f32.gmra.mxu1 %vm549_vm1, %v259_v37  ;;  %v510_v9 = vld [vmem:[%s7228_s0 + $0xf80] sm:$0xff]  ;;  %v260_v39 = vld [vmem:[%s7228_s0 + $0x7b0] sm:$0xff] }
 0x3da   :  { %v3121_v48 = vmax.f32 %v2812_v44, 0.0  ;;  %v2434_v49 = vadd.f32 %v6727_v55, %v1649_v45  ;;  %1695 = vmatmul.f32.gmra.mxu0 %v252_v41  ;;  %2076 = vmatmul.f32.gmra.mxu2 %v506_v43  ;;  %v519_v43 = vld [vmem:[%s7228_s0 + $0xfc8] sm:$0xff] }
 0x3db   :  { %3658 = vmatmul.msk.f32.gmra.mxu3 %vm549_vm1, %v511_v47 }
 0x3dc   :  { %3378 = vst.msk [vmem:[%s7230_s3 + $0x728] sm:$0xff] %vm3148_vm2, %v3121_v48  ;;  %v2995_v50 = vmax.f32 %v2434_v49, 0.0 }
 0x3dd   :  { %v2029_v42 = vpop.f32.mrf.mxu2  ;;  %v6835_v51 = vpop.f32.mrf.mxu1 }
 0x3de   :  { %3252 = vst.msk [vmem:[%s7230_s3 + $0x338] sm:$0xff] %vm3148_vm2, %v2995_v50  ;;  %v2030_v54 = vadd.f32 %v6847_v53, %v2029_v42  ;;  %v2820_v55 = vpop.f32.mrf.mxu3  ;;  %v269_v50 = vld [vmem:[%s7228_s0 + $0x7f8] sm:$0xff] }
 0x3df   :  { %v1651_v56 = vpop.f32.mrf.mxu0 }
 0x3e0   :  { %v2815_v60 = vadd.f32 %v2814_v23, %v2030_v54  ;;  %v1652_v61 = vadd.f32 %v6847_v53, %v1651_v56  ;;  %3533 = vmatmul.msk.f32.gmra.mxu1 %vm549_vm1, %v261_v52  ;;  %v512_v23 = vld [vmem:[%s7228_s0 + $0xf90] sm:$0xff]  ;;  %v262_v54 = vld [vmem:[%s7228_s0 + $0x7c0] sm:$0xff] }
 0x3e2   :  { %v3122_v63 = vmax.f32 %v2815_v60, 0.0  ;;  %v2437_v0 = vadd.f32 %v6754_v6, %v1652_v61  ;;  %1698 = vmatmul.f32.gmra.mxu0 %v254_v58  ;;  %2079 = vmatmul.f32.gmra.mxu2 %v508_v59  ;;  %v521_v59 = vld [vmem:[%s7228_s0 + $0xfd8] sm:$0xff] }
 0x3e3   :  { %3659 = vmatmul.msk.f32.gmra.mxu3 %vm549_vm1, %v513_v62 }
 0x3e4   :  { %3379 = vst.msk [vmem:[%s7230_s3 + $0x730] sm:$0xff] %vm3148_vm2, %v3122_v63  ;;  %v2996_v1 = vmax.f32 %v2437_v0, 0.0 }
 0x3e5   :  { %v2032_v2 = vpop.f32.mrf.mxu2  ;;  %v6867_v3 = vpop.f32.mrf.mxu1 }
 0x3e6   :  { %3253 = vst.msk [vmem:[%s7230_s3 + $0x340] sm:$0xff] %vm3148_vm2, %v2996_v1  ;;  %v2033_v5 = vadd.f32 %v6847_v53, %v2032_v2  ;;  %v2823_v6 = vpop.f32.mrf.mxu3  ;;  %v271_v1 = vld [vmem:[%s7228_s0 + $0x808] sm:$0xff] }
 0x3e7   :  { %v1654_v7 = vpop.f32.mrf.mxu0 }
 0x3e8   :  { %v2818_v10 = vadd.f32 %v2817_v30, %v2033_v5  ;;  %v1655_v11 = vadd.f32 %v6847_v53, %v1654_v7  ;;  %3534 = vmatmul.msk.f32.gmra.mxu1 %vm549_vm1, %v263_v4  ;;  %v514_v30 = vld [vmem:[%s7228_s0 + $0xfa0] sm:$0xff]  ;;  %v264_v5 = vld [vmem:[%s7228_s0 + $0x7d0] sm:$0xff] }
 0x3ea   :  { %v3123_v13 = vmax.f32 %v2818_v10, 0.0  ;;  %v2440_v14 = vadd.f32 %v6781_v20, %v1655_v11  ;;  %1701 = vmatmul.f32.gmra.mxu0 %v256_v8  ;;  %2082 = vmatmul.f32.gmra.mxu2 %v510_v9  ;;  %v523_v9 = vld [vmem:[%s7228_s0 + $0xfe8] sm:$0xff] }
 0x3eb   :  { %3660 = vmatmul.msk.f32.gmra.mxu3 %vm549_vm1, %v515_v12 }
 0x3ec   :  { %3380 = vst.msk [vmem:[%s7230_s3 + $0x738] sm:$0xff] %vm3148_vm2, %v3123_v13  ;;  %v2997_v15 = vmax.f32 %v2440_v14, 0.0 }
 0x3ed   :  { %v2035_v16 = vpop.f32.mrf.mxu2  ;;  %v6894_v17 = vpop.f32.mrf.mxu1 }
 0x3ee   :  { %3254 = vst.msk [vmem:[%s7230_s3 + $0x348] sm:$0xff] %vm3148_vm2, %v2997_v15  ;;  %v2036_v19 = vadd.f32 %v6847_v53, %v2035_v16  ;;  %v2826_v20 = vpop.f32.mrf.mxu3  ;;  %v273_v15 = vld [vmem:[%s7228_s0 + $0x818] sm:$0xff] }
 0x3ef   :  { %v1657_v21 = vpop.f32.mrf.mxu0 }
 0x3f0   :  { %v2821_v24 = vadd.f32 %v2820_v55, %v2036_v19  ;;  %v1658_v26 = vadd.f32 %v6847_v53, %v1657_v21  ;;  %3535 = vmatmul.msk.f32.gmra.mxu1 %vm549_vm1, %v265_v18  ;;  %v516_v55 = vld [vmem:[%s7228_s0 + $0xfb0] sm:$0xff]  ;;  %v266_v19 = vld [vmem:[%s7228_s0 + $0x7e0] sm:$0xff] }
 0x3f2   :  { %v3124_v27 = vmax.f32 %v2821_v24, 0.0  ;;  %v2443_v25 = vadd.f32 %v6808_v36, %v1658_v26  ;;  %1704 = vmatmul.f32.gmra.mxu0 %v258_v22  ;;  %2085 = vmatmul.f32.gmra.mxu2 %v512_v23  ;;  %v525_v23 = vld [vmem:[%s7228_s0 + $0xff8] sm:$0xff] }
 0x3f3   :  { %3661 = vmatmul.msk.f32.gmra.mxu3 %vm549_vm1, %v517_v28 }
 0x3f4   :  { %3381 = vst.msk [vmem:[%s7230_s3 + $0x740] sm:$0xff] %vm3148_vm2, %v3124_v27  ;;  %v2998_v29 = vmax.f32 %v2443_v25, 0.0 }
 0x3f5   :  { %v2038_v31 = vpop.f32.mrf.mxu2  ;;  %v6921_v32 = vpop.f32.mrf.mxu1 }
 0x3f6   :  { %3255 = vst.msk [vmem:[%s7230_s3 + $0x350] sm:$0xff] %vm3148_vm2, %v2998_v29  ;;  %v2039_v34 = vadd.f32 %v6847_v53, %v2038_v31  ;;  %v2829_v36 = vpop.f32.mrf.mxu3 }
 0x3f7   :  { %v1660_v37 = vpop.f32.mrf.mxu0 }
 0x3f8   :  { %v2824_v40 = vadd.f32 %v2823_v6, %v2039_v34  ;;  %v1661_v41 = vadd.f32 %v6847_v53, %v1660_v37  ;;  %3536 = vmatmul.msk.f32.gmra.mxu1 %vm549_vm1, %v267_v33  ;;  %v518_v6 = vld [vmem:[%s7228_s0 + $0xfc0] sm:$0xff] }
 0x3f9   :  { %v522_v33 = vld [vmem:[%s7228_s0 + $0xfe0] sm:$0xff] }
 0x3fa   :  { %v3125_v44 = vmax.f32 %v2824_v40, 0.0  ;;  %v2446_v45 = vadd.f32 %v6835_v51, %v1661_v41  ;;  %1707 = vmatmul.f32.gmra.mxu0 %v260_v39  ;;  %2088 = vmatmul.f32.gmra.mxu2 %v514_v30 }
 0x3fb   :  { %3662 = vmatmul.msk.f32.gmra.mxu3 %vm549_vm1, %v519_v43 }
 0x3fc   :  { %3382 = vst.msk [vmem:[%s7230_s3 + $0x748] sm:$0xff] %vm3148_vm2, %v3125_v44  ;;  %v2999_v47 = vmax.f32 %v2446_v45, 0.0 }
 0x3fd   :  { %v2041_v48 = vpop.f32.mrf.mxu2  ;;  %v6948_v49 = vpop.f32.mrf.mxu1 }
 0x3fe   :  { %3256 = vst.msk [vmem:[%s7230_s3 + $0x358] sm:$0xff] %vm3148_vm2, %v2999_v47  ;;  %v2042_v42 = vadd.f32 %v6847_v53, %v2041_v48  ;;  %v2832_v51 = vpop.f32.mrf.mxu3 }
 0x3ff   :  { %v1663_v52 = vpop.f32.mrf.mxu0 }
 0x400   :  { %v2827_v56 = vadd.f32 %v2826_v20, %v2042_v42  ;;  %v1664_v58 = vadd.f32 %v6847_v53, %v1663_v52  ;;  %3537 = vmatmul.msk.f32.gmra.mxu1 %vm549_vm1, %v269_v50  ;;  %v520_v20 = vld [vmem:[%s7228_s0 + $0xfd0] sm:$0xff] }
 0x402   :  { %v3126_v60 = vmax.f32 %v2827_v56, 0.0  ;;  %v2449_v61 = vadd.f32 %v6867_v3, %v1664_v58  ;;  %1710 = vmatmul.f32.gmra.mxu0 %v262_v54  ;;  %2091 = vmatmul.f32.gmra.mxu2 %v516_v55 }
 0x403   :  { %3663 = vmatmul.msk.f32.gmra.mxu3 %vm549_vm1, %v521_v59 }
 0x404   :  { %3383 = vst.msk [vmem:[%s7230_s3 + $0x750] sm:$0xff] %vm3148_vm2, %v3126_v60  ;;  %v3000_v62 = vmax.f32 %v2449_v61, 0.0 }
 0x405   :  { %v2044_v63 = vpop.f32.mrf.mxu2  ;;  %v2460_v0 = vpop.f32.mrf.mxu1 }
 0x406   :  { %3257 = vst.msk [vmem:[%s7230_s3 + $0x360] sm:$0xff] %vm3148_vm2, %v3000_v62  ;;  %v2045_v2 = vadd.f32 %v6847_v53, %v2044_v63  ;;  %v2835_v3 = vpop.f32.mrf.mxu3 }
 0x407   :  { %v1666_v4 = vpop.f32.mrf.mxu0 }
 0x408   :  { %v2830_v7 = vadd.f32 %v2829_v36, %v2045_v2  ;;  %v1667_v8 = vadd.f32 %v6847_v53, %v1666_v4  ;;  %3538 = vmatmul.msk.f32.gmra.mxu1 %vm549_vm1, %v271_v1 }
 0x40a   :  { %v3127_v10 = vmax.f32 %v2830_v7, 0.0  ;;  %v2452_v11 = vadd.f32 %v6894_v17, %v1667_v8  ;;  %1713 = vmatmul.f32.gmra.mxu0 %v264_v5  ;;  %2094 = vmatmul.f32.gmra.mxu2 %v518_v6 }
 0x40b   :  { %3664 = vmatmul.msk.f32.gmra.mxu3 %vm549_vm1, %v523_v9 }
 0x40c   :  { %3384 = vst.msk [vmem:[%s7230_s3 + $0x758] sm:$0xff] %vm3148_vm2, %v3127_v10  ;;  %v3001_v12 = vmax.f32 %v2452_v11, 0.0 }
 0x40d   :  { %v2047_v13 = vpop.f32.mrf.mxu2  ;;  %v2463_v14 = vpop.f32.mrf.mxu1 }
 0x40e   :  { %3258 = vst.msk [vmem:[%s7230_s3 + $0x368] sm:$0xff] %vm3148_vm2, %v3001_v12  ;;  %v2048_v16 = vadd.f32 %v6847_v53, %v2047_v13  ;;  %v2838_v17 = vpop.f32.mrf.mxu3 }
 0x40f   :  { %v1669_v18 = vpop.f32.mrf.mxu0 }
 0x410   :  { %v2833_v21 = vadd.f32 %v2832_v51, %v2048_v16  ;;  %v1670_v22 = vadd.f32 %v6847_v53, %v1669_v18  ;;  %3539 = vmatmul.msk.f32.gmra.mxu1 %vm549_vm1, %v273_v15 }
 0x412   :  { %v3128_v24 = vmax.f32 %v2833_v21, 0.0  ;;  %v2455_v26 = vadd.f32 %v6921_v32, %v1670_v22  ;;  %1716 = vmatmul.f32.gmra.mxu0 %v266_v19  ;;  %2097 = vmatmul.f32.gmra.mxu2 %v520_v20 }
 0x413   :  { %3665 = vmatmul.msk.f32.gmra.mxu3 %vm549_vm1, %v525_v23 }
 0x414   :  { %3385 = vst.msk [vmem:[%s7230_s3 + $0x760] sm:$0xff] %vm3148_vm2, %v3128_v24  ;;  %v3002_v28 = vmax.f32 %v2455_v26, 0.0 }
 0x415   :  { %v2050_v27 = vpop.f32.mrf.mxu2  ;;  %v2466_v25 = vpop.f32.mrf.mxu1 }
 0x416   :  { %3259 = vst.msk [vmem:[%s7230_s3 + $0x370] sm:$0xff] %vm3148_vm2, %v3002_v28  ;;  %v2051_v29 = vadd.f32 %v6847_v53, %v2050_v27  ;;  %v2841_v31 = vpop.f32.mrf.mxu3 }
 0x417   :  { %v1672_v32 = vpop.f32.mrf.mxu0 }
 0x418   :  { %v2836_v34 = vadd.f32 %v2835_v3, %v2051_v29  ;;  %v1673_v36 = vadd.f32 %v6847_v53, %v1672_v32 }
 0x41a   :  { %v3129_v37 = vmax.f32 %v2836_v34, 0.0  ;;  %v2458_v39 = vadd.f32 %v6948_v49, %v1673_v36  ;;  %2100 = vmatmul.f32.gmra.mxu2 %v522_v33 }
 0x41c   :  { %3386 = vst.msk [vmem:[%s7230_s3 + $0x768] sm:$0xff] %vm3148_vm2, %v3129_v37  ;;  %v3003_v30 = vmax.f32 %v2458_v39, 0.0 }
 0x41d   :  { %v2053_v40 = vpop.f32.mrf.mxu2  ;;  %v2469_v41 = vpop.f32.mrf.mxu1 }
 0x41e   :  { %3260 = vst.msk [vmem:[%s7230_s3 + $0x378] sm:$0xff] %vm3148_vm2, %v3003_v30  ;;  %v2054_v43 = vadd.f32 %v6847_v53, %v2053_v40  ;;  %v2844_v44 = vpop.f32.mrf.mxu3 }
 0x41f   :  { %v1675_v45 = vpop.f32.mrf.mxu0 }
 0x420   :  { %v2839_v47 = vadd.f32 %v2838_v17, %v2054_v43  ;;  %v1676_v48 = vadd.f32 %v6847_v53, %v1675_v45 }
 0x422   :  { %v3130_v49 = vmax.f32 %v2839_v47, 0.0  ;;  %v2461_v50 = vadd.f32 %v2460_v0, %v1676_v48 }
 0x424   :  { %3387 = vst.msk [vmem:[%s7230_s3 + $0x770] sm:$0xff] %vm3148_vm2, %v3130_v49  ;;  %v3004_v42 = vmax.f32 %v2461_v50, 0.0 }
 0x425   :  { %v2056_v51 = vpop.f32.mrf.mxu2  ;;  %v2472_v52 = vpop.f32.mrf.mxu1 }
 0x426   :  { %3261 = vst.msk [vmem:[%s7230_s3 + $0x380] sm:$0xff] %vm3148_vm2, %v3004_v42  ;;  %v2057_v54 = vadd.f32 %v6847_v53, %v2056_v51  ;;  %v2847_v55 = vpop.f32.mrf.mxu3 }
 0x427   :  { %v1678_v56 = vpop.f32.mrf.mxu0 }
 0x428   :  { %v2842_v58 = vadd.f32 %v2841_v31, %v2057_v54  ;;  %v1679_v59 = vadd.f32 %v6847_v53, %v1678_v56 }
 0x42a   :  { %v3131_v60 = vmax.f32 %v2842_v58, 0.0  ;;  %v2464_v61 = vadd.f32 %v2463_v14, %v1679_v59 }
 0x42c   :  { %3388 = vst.msk [vmem:[%s7230_s3 + $0x778] sm:$0xff] %vm3148_vm2, %v3131_v60  ;;  %v3005_v62 = vmax.f32 %v2464_v61, 0.0 }
 0x42d   :  { %v2059_v63 = vpop.f32.mrf.mxu2  ;;  %v2475_v0 = vpop.f32.mrf.mxu1 }
 0x42e   :  { %3262 = vst.msk [vmem:[%s7230_s3 + $0x388] sm:$0xff] %vm3148_vm2, %v3005_v62  ;;  %v2060_v1 = vadd.f32 %v6847_v53, %v2059_v63  ;;  %v2850_v2 = vpop.f32.mrf.mxu3 }
 0x42f   :  { %v1681_v3 = vpop.f32.mrf.mxu0 }
 0x430   :  { %v2845_v4 = vadd.f32 %v2844_v44, %v2060_v1  ;;  %v1682_v5 = vadd.f32 %v6847_v53, %v1681_v3 }
 0x432   :  { %v3132_v6 = vmax.f32 %v2845_v4, 0.0  ;;  %v2467_v7 = vadd.f32 %v2466_v25, %v1682_v5 }
 0x434   :  { %3389 = vst.msk [vmem:[%s7230_s3 + $0x780] sm:$0xff] %vm3148_vm2, %v3132_v6  ;;  %v3006_v8 = vmax.f32 %v2467_v7, 0.0 }
 0x435   :  { %v2062_v9 = vpop.f32.mrf.mxu2  ;;  %v2478_v10 = vpop.f32.mrf.mxu1 }
 0x436   :  { %3263 = vst.msk [vmem:[%s7230_s3 + $0x390] sm:$0xff] %vm3148_vm2, %v3006_v8  ;;  %v2063_v11 = vadd.f32 %v6847_v53, %v2062_v9  ;;  %v2853_v12 = vpop.f32.mrf.mxu3 }
 0x437   :  { %v1684_v13 = vpop.f32.mrf.mxu0 }
 0x438   :  { %v2848_v14 = vadd.f32 %v2847_v55, %v2063_v11  ;;  %v1685_v15 = vadd.f32 %v6847_v53, %v1684_v13 }
 0x43a   :  { %v3133_v16 = vmax.f32 %v2848_v14, 0.0  ;;  %v2470_v17 = vadd.f32 %v2469_v41, %v1685_v15 }
 0x43c   :  { %3390 = vst.msk [vmem:[%s7230_s3 + $0x788] sm:$0xff] %vm3148_vm2, %v3133_v16  ;;  %v3007_v18 = vmax.f32 %v2470_v17, 0.0 }
 0x43d   :  { %v2065_v19 = vpop.f32.mrf.mxu2  ;;  %v2481_v20 = vpop.f32.mrf.mxu1 }
 0x43e   :  { %3264 = vst.msk [vmem:[%s7230_s3 + $0x398] sm:$0xff] %vm3148_vm2, %v3007_v18  ;;  %v2066_v21 = vadd.f32 %v6847_v53, %v2065_v19  ;;  %v2856_v22 = vpop.f32.mrf.mxu3 }
 0x43f   :  { %v1687_v23 = vpop.f32.mrf.mxu0 }
 0x440   :  { %v2851_v24 = vadd.f32 %v2850_v2, %v2066_v21  ;;  %v1688_v26 = vadd.f32 %v6847_v53, %v1687_v23 }
 0x442   :  { %v3134_v28 = vmax.f32 %v2851_v24, 0.0  ;;  %v2473_v27 = vadd.f32 %v2472_v52, %v1688_v26 }
 0x444   :  { %3391 = vst.msk [vmem:[%s7230_s3 + $0x790] sm:$0xff] %vm3148_vm2, %v3134_v28  ;;  %v3008_v25 = vmax.f32 %v2473_v27, 0.0 }
 0x445   :  { %v2068_v29 = vpop.f32.mrf.mxu2  ;;  %v2484_v31 = vpop.f32.mrf.mxu1 }
 0x446   :  { %3265 = vst.msk [vmem:[%s7230_s3 + $0x3a0] sm:$0xff] %vm3148_vm2, %v3008_v25  ;;  %v2069_v32 = vadd.f32 %v6847_v53, %v2068_v29  ;;  %v2859_v33 = vpop.f32.mrf.mxu3 }
 0x447   :  { %v1690_v34 = vpop.f32.mrf.mxu0 }
 0x448   :  { %v2854_v36 = vadd.f32 %v2853_v12, %v2069_v32  ;;  %v1691_v37 = vadd.f32 %v6847_v53, %v1690_v34 }
 0x44a   :  { %v3135_v39 = vmax.f32 %v2854_v36, 0.0  ;;  %v2476_v30 = vadd.f32 %v2475_v0, %v1691_v37 }
 0x44c   :  { %3392 = vst.msk [vmem:[%s7230_s3 + $0x798] sm:$0xff] %vm3148_vm2, %v3135_v39  ;;  %v3009_v40 = vmax.f32 %v2476_v30, 0.0 }
 0x44d   :  { %v2071_v41 = vpop.f32.mrf.mxu2  ;;  %v2487_v43 = vpop.f32.mrf.mxu1 }
 0x44e   :  { %3266 = vst.msk [vmem:[%s7230_s3 + $0x3a8] sm:$0xff] %vm3148_vm2, %v3009_v40  ;;  %v2072_v44 = vadd.f32 %v6847_v53, %v2071_v41  ;;  %v2862_v45 = vpop.f32.mrf.mxu3  ;;  %v1721_v41 = vadd.f32 %v6847_v53, %v4052_v35 }
 0x44f   :  { %v1693_v47 = vpop.f32.mrf.mxu0 }
 0x450   :  { %v2857_v48 = vadd.f32 %v2856_v22, %v2072_v44  ;;  %v1694_v49 = vadd.f32 %v6847_v53, %v1693_v47 }
 0x452   :  { %v3136_v50 = vmax.f32 %v2857_v48, 0.0  ;;  %v2479_v42 = vadd.f32 %v2478_v10, %v1694_v49 }
 0x454   :  { %3393 = vst.msk [vmem:[%s7230_s3 + $0x7a0] sm:$0xff] %vm3148_vm2, %v3136_v50  ;;  %v3010_v51 = vmax.f32 %v2479_v42, 0.0 }
 0x455   :  { %v2074_v52 = vpop.f32.mrf.mxu2  ;;  %v2490_v54 = vpop.f32.mrf.mxu1 }
 0x456   :  { %3267 = vst.msk [vmem:[%s7230_s3 + $0x3b0] sm:$0xff] %vm3148_vm2, %v3010_v51  ;;  %v2075_v55 = vadd.f32 %v6847_v53, %v2074_v52  ;;  %v2865_v56 = vpop.f32.mrf.mxu3 }
 0x457   :  { %v1696_v58 = vpop.f32.mrf.mxu0 }
 0x458   :  { %v2860_v59 = vadd.f32 %v2859_v33, %v2075_v55  ;;  %v1697_v60 = vadd.f32 %v6847_v53, %v1696_v58  ;;  %v1724_v55 = vadd.f32 %v6847_v53, %v4075_v46 }
 0x45a   :  { %v3137_v61 = vmax.f32 %v2860_v59, 0.0  ;;  %v2482_v62 = vadd.f32 %v2481_v20, %v1697_v60 }
 0x45c   :  { %3394 = vst.msk [vmem:[%s7230_s3 + $0x7a8] sm:$0xff] %vm3148_vm2, %v3137_v61  ;;  %v3011_v63 = vmax.f32 %v2482_v62, 0.0 }
 0x45d   :  { %v2077_v0 = vpop.f32.mrf.mxu2  ;;  %v2493_v1 = vpop.f32.mrf.mxu1 }
 0x45e   :  { %3268 = vst.msk [vmem:[%s7230_s3 + $0x3b8] sm:$0xff] %vm3148_vm2, %v3011_v63  ;;  %v2078_v2 = vadd.f32 %v6847_v53, %v2077_v0  ;;  %v2868_v3 = vpop.f32.mrf.mxu3 }
 0x45f   :  { %v1699_v4 = vpop.f32.mrf.mxu0 }
 0x460   :  { %v2863_v5 = vadd.f32 %v2862_v45, %v2078_v2  ;;  %v1700_v6 = vadd.f32 %v6847_v53, %v1699_v4  ;;  %v1727_v4 = vadd.f32 %v6847_v53, %v4098_v57 }
 0x462   :  { %v3138_v7 = vmax.f32 %v2863_v5, 0.0  ;;  %v2485_v8 = vadd.f32 %v2484_v31, %v1700_v6 }
 0x464   :  { %3395 = vst.msk [vmem:[%s7230_s3 + $0x7b0] sm:$0xff] %vm3148_vm2, %v3138_v7  ;;  %v3012_v9 = vmax.f32 %v2485_v8, 0.0 }
 0x465   :  { %v2080_v10 = vpop.f32.mrf.mxu2  ;;  %v2496_v11 = vpop.f32.mrf.mxu1 }
 0x466   :  { %3269 = vst.msk [vmem:[%s7230_s3 + $0x3c0] sm:$0xff] %vm3148_vm2, %v3012_v9  ;;  %v2081_v12 = vadd.f32 %v6847_v53, %v2080_v10  ;;  %v2871_v13 = vpop.f32.mrf.mxu3 }
 0x467   :  { %v1702_v14 = vpop.f32.mrf.mxu0 }
 0x468   :  { %v2866_v15 = vadd.f32 %v2865_v56, %v2081_v12  ;;  %v1703_v16 = vadd.f32 %v6847_v53, %v1702_v14 }
 0x46a   :  { %v3139_v17 = vmax.f32 %v2866_v15, 0.0  ;;  %v2488_v18 = vadd.f32 %v2487_v43, %v1703_v16 }
 0x46c   :  { %3396 = vst.msk [vmem:[%s7230_s3 + $0x7b8] sm:$0xff] %vm3148_vm2, %v3139_v17  ;;  %v3013_v19 = vmax.f32 %v2488_v18, 0.0  ;;  %v2105_v17 = vadd.f32 %v6847_v53, %v4061_v38 }
 0x46d   :  { %v2083_v20 = vpop.f32.mrf.mxu2  ;;  %v2499_v21 = vpop.f32.mrf.mxu1 }
 0x46e   :  { %3270 = vst.msk [vmem:[%s7230_s3 + $0x3c8] sm:$0xff] %vm3148_vm2, %v3013_v19  ;;  %v2084_v22 = vadd.f32 %v6847_v53, %v2083_v20  ;;  %v2874_v23 = vpop.f32.mrf.mxu3 }
 0x46f   :  { %v1705_v24 = vpop.f32.mrf.mxu0 }
 0x470   :  { %v2869_v26 = vadd.f32 %v2868_v3, %v2084_v22  ;;  %v1706_v28 = vadd.f32 %v6847_v53, %v1705_v24 }
 0x472   :  { %v3140_v27 = vmax.f32 %v2869_v26, 0.0  ;;  %v2491_v25 = vadd.f32 %v2490_v54, %v1706_v28 }
 0x474   :  { %3397 = vst.msk [vmem:[%s7230_s3 + $0x7c0] sm:$0xff] %vm3148_vm2, %v3140_v27  ;;  %v3014_v29 = vmax.f32 %v2491_v25, 0.0 }
 0x475   :  { %v2086_v31 = vpop.f32.mrf.mxu2  ;;  %v2502_v32 = vpop.f32.mrf.mxu1 }
 0x476   :  { %3271 = vst.msk [vmem:[%s7230_s3 + $0x3d0] sm:$0xff] %vm3148_vm2, %v3014_v29  ;;  %v2087_v33 = vadd.f32 %v6847_v53, %v2086_v31  ;;  %v2877_v34 = vpop.f32.mrf.mxu3 }
 0x477   :  { %v1708_v36 = vpop.f32.mrf.mxu0 }
 0x478   :  { %v2872_v37 = vadd.f32 %v2871_v13, %v2087_v33  ;;  %v1709_v39 = vadd.f32 %v6847_v53, %v1708_v36 }
 0x47a   :  { %v3141_v30 = vmax.f32 %v2872_v37, 0.0  ;;  %v2494_v40 = vadd.f32 %v2493_v1, %v1709_v39 }
 0x47c   :  { %3398 = vst.msk [vmem:[%s7230_s3 + $0x7c8] sm:$0xff] %vm3148_vm2, %v3141_v30  ;;  %v3015_v43 = vmax.f32 %v2494_v40, 0.0 }
 0x47d   :  { %v2089_v44 = vpop.f32.mrf.mxu2  ;;  %v2505_v45 = vpop.f32.mrf.mxu1 }
 0x47e   :  { %3272 = vst.msk [vmem:[%s7230_s3 + $0x3d8] sm:$0xff] %vm3148_vm2, %v3015_v43  ;;  %v2090_v47 = vadd.f32 %v6847_v53, %v2089_v44  ;;  %v2506_v48 = vadd.f32 %v2505_v45, %v1721_v41  ;;  %v2880_v49 = vpop.f32.mrf.mxu3 }
 0x47f   :  { %v1711_v50 = vpop.f32.mrf.mxu0 }
 0x480   :  { %v2875_v42 = vadd.f32 %v2874_v23, %v2090_v47  ;;  %v3019_v35 = vmax.f32 %v2506_v48, 0.0  ;;  %v1712_v51 = vadd.f32 %v6847_v53, %v1711_v50 }
 0x482   :  { %v3142_v52 = vmax.f32 %v2875_v42, 0.0  ;;  %3276 = vst.msk [vmem:[%s7230_s3 + $0x3f8] sm:$0xff] %vm3148_vm2, %v3019_v35  ;;  %v2497_v54 = vadd.f32 %v2496_v11, %v1712_v51 }
 0x484   :  { %3399 = vst.msk [vmem:[%s7230_s3 + $0x7d0] sm:$0xff] %vm3148_vm2, %v3142_v52  ;;  %v3016_v56 = vmax.f32 %v2497_v54, 0.0 }
 0x485   :  { %v2092_v58 = vpop.f32.mrf.mxu2  ;;  %v2508_v59 = vpop.f32.mrf.mxu1 }
 0x486   :  { %3273 = vst.msk [vmem:[%s7230_s3 + $0x3e0] sm:$0xff] %vm3148_vm2, %v3016_v56  ;;  %v2093_v60 = vadd.f32 %v6847_v53, %v2092_v58  ;;  %v2509_v61 = vadd.f32 %v2508_v59, %v1724_v55  ;;  %v2883_v62 = vpop.f32.mrf.mxu3 }
 0x487   :  { %v1714_v63 = vpop.f32.mrf.mxu0 }
 0x488   :  { %v2878_v0 = vadd.f32 %v2877_v34, %v2093_v60  ;;  %v3020_v46 = vmax.f32 %v2509_v61, 0.0  ;;  %v1715_v1 = vadd.f32 %v6847_v53, %v1714_v63 }
 0x48a   :  { %v3143_v2 = vmax.f32 %v2878_v0, 0.0  ;;  %3277 = vst.msk [vmem:[%s7230_s3 + $0x400] sm:$0xff] %vm3148_vm2, %v3020_v46  ;;  %v2500_v3 = vadd.f32 %v2499_v21, %v1715_v1 }
 0x48c   :  { %3400 = vst.msk [vmem:[%s7230_s3 + $0x7d8] sm:$0xff] %vm3148_vm2, %v3143_v2  ;;  %v3017_v5 = vmax.f32 %v2500_v3, 0.0 }
 0x48d   :  { %v2095_v6 = vpop.f32.mrf.mxu2  ;;  %v2511_v7 = vpop.f32.mrf.mxu1 }
 0x48e   :  { %3274 = vst.msk [vmem:[%s7230_s3 + $0x3e8] sm:$0xff] %vm3148_vm2, %v3017_v5  ;;  %v2096_v8 = vadd.f32 %v6847_v53, %v2095_v6  ;;  %v2512_v9 = vadd.f32 %v2511_v7, %v1727_v4  ;;  %v2886_v10 = vpop.f32.mrf.mxu3 }
 0x48f   :  { %v1717_v11 = vpop.f32.mrf.mxu0 }
 0x490   :  { %v2881_v12 = vadd.f32 %v2880_v49, %v2096_v8  ;;  %v3021_v57 = vmax.f32 %v2512_v9, 0.0  ;;  %v1718_v13 = vadd.f32 %v6847_v53, %v1717_v11 }
 0x492   :  { %v3144_v14 = vmax.f32 %v2881_v12, 0.0  ;;  %3278 = vst.msk [vmem:[%s7230_s3 + $0x408] sm:$0xff] %vm3148_vm2, %v3021_v57  ;;  %v2503_v15 = vadd.f32 %v2502_v32, %v1718_v13 }
 0x494   :  { %3401 = vst.msk [vmem:[%s7230_s3 + $0x7e0] sm:$0xff] %vm3148_vm2, %v3144_v14  ;;  %v3018_v16 = vmax.f32 %v2503_v15, 0.0 }
 0x495   :  { %v2098_v18 = vpop.f32.mrf.mxu2 }
 0x496   :  { %3275 = vst.msk [vmem:[%s7230_s3 + $0x3f0] sm:$0xff] %vm3148_vm2, %v3018_v16  ;;  %v2099_v19 = vadd.f32 %v6847_v53, %v2098_v18  ;;  %v2889_v20 = vpop.f32.mrf.mxu3 }
 0x497   :  { %v2890_v21 = vadd.f32 %v2889_v20, %v2105_v17 }
 0x498   :  { %v2884_v22 = vadd.f32 %v2883_v62, %v2099_v19 }
 0x499   :  { %v3147_v23 = vmax.f32 %v2890_v21, 0.0 }
 0x49a   :  { %v3145_v24 = vmax.f32 %v2884_v22, 0.0 }
 0x49b   :  { %3404 = vst.msk [vmem:[%s7230_s3 + $0x7f8] sm:$0xff] %vm3148_vm2, %v3147_v23 }
 0x49c   :  { %3402 = vst.msk [vmem:[%s7230_s3 + $0x7e8] sm:$0xff] %vm3148_vm2, %v3145_v24 }
 0x49d   :  { %v2101_v38 = vpop.f32.mrf.mxu2 }
 0x49e   :  { %v2102_v26 = vadd.f32 %v6847_v53, %v2101_v38 }
 0x4a0   :  { %v2887_v28 = vadd.f32 %v2886_v10, %v2102_v26 }
 0x4a2   :  { %v3146_v27 = vmax.f32 %v2887_v28, 0.0 }
 0x4a4   :  { %3403 = vst.msk [vmem:[%s7230_s3 + $0x7f0] sm:$0xff] %vm3148_vm2, %v3146_v27 }

</bundles_post_ra>
